<compile_context>
chip_gen: v6e
topology: v6e:2x2x1
jax: 0.10.0
libtpu: 0.0.40
codegen_flags: <defaults>
</compile_context>

<pallas_src>
import functools

import numpy as np
import jax
import jax.numpy as jnp
from jax.experimental import pallas as pl
from jax.experimental.pallas import tpu as pltpu

# Architecture constants implied by fc1 = Linear(576, 120): 32x32 spatial input.
_H = _W = 32
_PAD = 2
_K = 5
_C1 = 6                  # conv1 output channels
_C2 = 16                 # conv2 output channels
_P1 = 16                 # pooled spatial size after conv1 (32 conv -> /2 pool)
_P2 = 6                  # pooled spatial size after conv2 (12 conv -> /2 pool)
_HP = _H + 2 * _PAD      # 36 padded rows / cols
_N1 = _P1 * _C1          # 96 lanes of h1, lane = w*6  + c
_N2 = _P2 * _C2          # 96 lanes of h2, lane = w*16 + c


def _round_up(x, m):
    return ((x + m - 1) // m) * m


# ---------------------------------------------------------------------------
# Fused Pallas kernel: TB images per grid step, everything stays in VMEM.
# ---------------------------------------------------------------------------
def _lenet_fused_kernel(xq_ref, wt1_ref, b1_ref, wt2_ref, b2_ref,
                        wfc1_ref, bfc1_ref, wfc2_ref, bfc2_ref,
                        wfc3_ref, bfc3_ref, o_ref):
    f32 = jnp.float32
    bf16 = jnp.bfloat16
    tb = o_ref.shape[0]                      # images per grid step (multiple of 8)
    lanes_in = xq_ref.shape[-1]              # 36 * Cin

    # ---- conv1 (5x5, pad=2) + 2x2 maxpool + bias + ReLU ---------------------
    # Computed directly on the pooled 16x16 grid, split into two row-parity
    # phases t so that conv2's pooling only ever needs contiguous slices.
    # kh outermost -> each (108, 192) RHS slab is reused for all 4 (t, pi) LHS.
    acc1 = [[None, None], [None, None]]      # [t][pi] -> (8*tb, 192) f32
    for kh in range(_K):
        w = wt1_ref[kh]                      # (36*Cin, 192) bf16, resident RHS
        for t in range(2):
            for pi in range(2):
                s = 2 * t + pi + kh          # padded-input row offset (0..7)
                xs = xq_ref[s % 4, s // 4: s // 4 + 8, :, :].reshape(8 * tb, lanes_in)
                d = jnp.dot(xs, w, preferred_element_type=f32)
                acc1[t][pi] = d if acc1[t][pi] is None else acc1[t][pi] + d

    h1 = []                                  # per phase: (8, tb, 96) bf16
    for t in range(2):
        a0, a1 = acc1[t]
        pooled = jnp.maximum(jnp.maximum(a0[:, :_N1], a0[:, _N1:]),
                             jnp.maximum(a1[:, :_N1], a1[:, _N1:]))
        h1.append(jnp.maximum(pooled + b1_ref[...], 0.0)
                  .astype(bf16).reshape(8, tb, _N1))

    # ---- conv2 (5x5, valid) + 2x2 maxpool + bias + ReLU ---------------------
    acc2 = [None, None]                      # [pi] -> (6*tb, 192) f32
    for kh in range(_K):
        w = wt2_ref[kh]                      # (96, 192) bf16, resident RHS
        for pi in range(2):
            s = pi + kh                      # h1 row offset (0..5)
            hs = h1[s % 2][s // 2: s // 2 + _P2].reshape(_P2 * tb, _N1)
            d = jnp.dot(hs, w, preferred_element_type=f32)
            acc2[pi] = d if acc2[pi] is None else acc2[pi] + d

    a0, a1 = acc2
    pooled2 = jnp.maximum(jnp.maximum(a0[:, :_N2], a0[:, _N2:]),
                          jnp.maximum(a1[:, :_N2], a1[:, _N2:]))
    h2 = jnp.maximum(pooled2 + b2_ref[...], 0.0).astype(bf16)   # (6*tb, 96)

    # ---- fc1 (NCHW flatten folded into per-row weight slabs) -> fc2 -> fc3 --
    z = None
    for r in range(_P2):
        d = jnp.dot(h2[r * tb:(r + 1) * tb, :], wfc1_ref[r],
                    preferred_element_type=f32)
        z = d if z is None else z + d
    z = jnp.maximum(z + bfc1_ref[...], 0.0)
    z = jnp.dot(z.astype(bf16), wfc2_ref[...],
                preferred_element_type=f32) + bfc2_ref[...]
    z = jnp.maximum(z, 0.0)
    z = jnp.dot(z.astype(bf16), wfc3_ref[...],
                preferred_element_type=f32) + bfc3_ref[...]
    o_ref[...] = z                           # (tb, NB) dense block


# ---------------------------------------------------------------------------
# Forward pass wrapper
# ---------------------------------------------------------------------------
def lenet_multichannel_forward(x_nchw, params, *, block_b=32):
    B, Cin, H, W = x_nchw.shape
    assert (H, W) == (_H, _W), "fc1(576 -> 120) requires 32x32 spatial inputs"
    NB = params["fc3_b"].shape[-1]

    # Batch block size: multiple of 8 (sublane quantum), pad batch to a multiple.
    TB = max(8, min(block_b, _round_up(B, 8)))
    TB = _round_up(TB, 8)
    Bp = _round_up(B, TB)

    # NCHW -> NHWC, pad by 2, split rows by row%4, put batch on the sublane axis:
    # xq[p, r, b, col*Cin + ci] = padded_input[b, 4*r + p, col, ci]   (bf16)
    x = jnp.transpose(x_nchw, (0, 2, 3, 1)).astype(jnp.float32)
    xp = jnp.pad(x, ((0, 0), (_PAD, _PAD), (_PAD, _PAD), (0, 0)))    # (B,36,36,C)
    xq = xp.reshape(B, _HP // 4, 4, _HP, Cin).transpose(2, 1, 0, 3, 4)
    xq = xq.reshape(4, _HP // 4, B, _HP * Cin).astype(jnp.bfloat16)  # (4,9,B,36*C)
    if Bp > B:
        xq = jnp.pad(xq, ((0, 0), (0, 0), (0, Bp - B), (0, 0)))

    weights = (params["wt1"], params["b1"], params["wt2"], params["b2"],
               params["wfc1"], params["fc1_b"], params["wfc2"], params["fc2_b"],
               params["wfc3"], params["fc3_b"])

    def _full_spec(a):
        return pl.BlockSpec(a.shape, lambda g, _n=a.ndim: (0,) * _n)

    flops_per_img = (2 * 2 * _K * 2 * 8 * (_HP * Cin) * (2 * _N1)   # conv1 dots
                     + 2 * _K * 2 * _P2 * _N1 * (2 * _N2)           # conv2 dots
                     + _P2 * 2 * _N2 * 120                          # fc1
                     + 2 * 120 * 84 + 2 * 84 * NB)                  # fc2, fc3
    flops = Bp * flops_per_img
    bytes_accessed = int(xq.size) * xq.dtype.itemsize + Bp * NB * 4
    bytes_accessed += sum(int(w.size) * w.dtype.itemsize for w in weights)

    out = pl.pallas_call(
        _lenet_fused_kernel,
        out_shape=jax.ShapeDtypeStruct((Bp, NB), jnp.float32),
        grid=(Bp // TB,),
        in_specs=[pl.BlockSpec((4, _HP // 4, TB, _HP * Cin),
                               lambda g: (0, 0, g, 0))]
                 + [_full_spec(w) for w in weights],
        out_specs=pl.BlockSpec((TB, NB), lambda g: (g, 0)),
        compiler_params=pltpu.CompilerParams(
            dimension_semantics=("parallel",)),
        cost_estimate=pl.CostEstimate(flops=flops, transcendentals=0,
                                      bytes_accessed=bytes_accessed),
    )(xq, *weights)
    return out[:B]


# ---------------------------------------------------------------------------
# Parameter construction (PyTorch layout -> packed kernel layout)
# ---------------------------------------------------------------------------
def init_raw_params(key, input_dim, nb_classes):
    ks = jax.random.split(key, 10)

    def nrm(k, shape, scale):
        return scale * jax.random.normal(k, shape, dtype=jnp.float32)

    return dict(
        w1=nrm(ks[0], (_C1, input_dim, _K, _K), 0.1),   # (Cout, Cin, kh, kw)
        b1=nrm(ks[1], (_C1,), 0.1),
        w2=nrm(ks[2], (_C2, _C1, _K, _K), 0.1),
        b2=nrm(ks[3], (_C2,), 0.1),
        fc1_w=nrm(ks[4], (120, 576), 0.05),             # torch Linear (out, in)
        fc1_b=nrm(ks[5], (120,), 0.05),
        fc2_w=nrm(ks[6], (84, 120), 0.05),
        fc2_b=nrm(ks[7], (84,), 0.05),
        fc3_w=nrm(ks[8], (nb_classes, 84), 0.05),
        fc3_b=nrm(ks[9], (nb_classes,), 0.05),
    )


def pack_params(raw, input_dim, nb_classes):
    (w1, b1, w2, b2, fc1_w, fc1_b, fc2_w, fc2_b, fc3_w, fc3_b) = [
        np.asarray(raw[k], np.float32) for k in
        ("w1", "b1", "w2", "b2", "fc1_w", "fc1_b",
         "fc2_w", "fc2_b", "fc3_w", "fc3_b")]

    # conv1 block-Toeplitz slabs, pj (pool-col offset) fused along N (2*96 = 192):
    #   wt1[kh, (2*q + pj + kw)*Cin + ci, pj*96 + q*6 + co] = w1[co, ci, kh, kw]
    wt1 = np.zeros((_K, _HP * input_dim, 2 * _N1), np.float32)
    for kh in range(_K):
        for pj in range(2):
            for kw in range(_K):
                for q in range(_P1):
                    col = 2 * q + pj + kw
                    for ci in range(input_dim):
                        wt1[kh, col * input_dim + ci,
                            pj * _N1 + q * _C1: pj * _N1 + (q + 1) * _C1] = \
                            w1[:, ci, kh, kw]

    # conv2 block-Toeplitz slabs over h1's (w, c) lane layout, pj fused along N:
    wt2 = np.zeros((_K, _P1 * _C1, 2 * _N2), np.float32)
    for kh in range(_K):
        for pj in range(2):
            for kw in range(_K):
                for q in range(_P2):
                    col = 2 * q + pj + kw
                    for ci in range(_C1):
                        wt2[kh, col * _C1 + ci,
                            pj * _N2 + q * _C2: pj * _N2 + (q + 1) * _C2] = \
                            w2[:, ci, kh, kw]

    # fc1: permute columns from PyTorch's NCHW flatten (c, h, w) to (h, w*16+c).
    wfc1 = fc1_w.reshape(120, _C2, _P2, _P2).transpose(2, 3, 1, 0)  # (h,w,c,o)
    wfc1 = wfc1.reshape(_P2, _P2 * _C2, 120)                        # (6, 96, 120)

    bf16 = jnp.bfloat16
    return dict(
        wt1=jnp.asarray(wt1, bf16),
        b1=jnp.asarray(np.tile(b1, _P1)[None, :], jnp.float32),     # (1, 96)
        wt2=jnp.asarray(wt2, bf16),
        b2=jnp.asarray(np.tile(b2, _P2)[None, :], jnp.float32),     # (1, 96)
        wfc1=jnp.asarray(wfc1, bf16),
        fc1_b=jnp.asarray(fc1_b[None, :], jnp.float32),
        wfc2=jnp.asarray(fc2_w.T, bf16),
        fc2_b=jnp.asarray(fc2_b[None, :], jnp.float32),
        wfc3=jnp.asarray(fc3_w.T, bf16),
        fc3_b=jnp.asarray(fc3_b[None, :], jnp.float32),
    )


# ---------------------------------------------------------------------------
# Pure-JAX f32 reference (mirrors the PyTorch module) for a sanity check
# ---------------------------------------------------------------------------
def lenet_reference(x_nchw, raw):
    x = jnp.asarray(x_nchw, jnp.float32)

    def conv(x, w, b, pad):
        y = jax.lax.conv_general_dilated(
            x, jnp.asarray(w), (1, 1), ((pad, pad), (pad, pad)),
            dimension_numbers=("NCHW", "OIHW", "NCHW"))
        return y + jnp.asarray(b)[None, :, None, None]

    def pool2(y):
        B, C, H, W = y.shape
        return y.reshape(B, C, H // 2, 2, W // 2, 2).max(axis=(3, 5))

    y = pool2(jnp.maximum(conv(x, raw["w1"], raw["b1"], _PAD), 0.0))
    y = pool2(jnp.maximum(conv(y, raw["w2"], raw["b2"], 0), 0.0))
    y = y.reshape(y.shape[0], -1)                       # NCHW flatten (c, h, w)
    y = jnp.maximum(y @ raw["fc1_w"].T + raw["fc1_b"], 0.0)
    y = jnp.maximum(y @ raw["fc2_w"].T + raw["fc2_b"], 0.0)
    return y @ raw["fc3_w"].T + raw["fc3_b"]


if __name__ == "__main__":
    key = jax.random.PRNGKey(0)
    kx, kp = jax.random.split(key)

    # 32x32 spatial forced by fc1(576).  B=10 with block_b=8 exercises both the
    # multi-step grid (2 steps) and the batch-padding path (10 -> 16).
    B, C, NB = 10, 3, 10
    x = jax.random.normal(kx, (B, C, _H, _W), dtype=jnp.float32)
    raw = init_raw_params(kp, C, NB)
    params = pack_params(raw, C, NB)

    fwd = jax.jit(functools.partial(lenet_multichannel_forward,
                                    params=params, block_b=8))
    out = jax.block_until_ready(fwd(x))
    assert out.shape == (B, NB), out.shape

    # Sanity check against the f32 reference (kernel uses bf16 MXU operands).
    ref = lenet_reference(x, raw)
    rel_err = float(jnp.max(jnp.abs(out - ref)) / (jnp.max(jnp.abs(ref)) + 1e-6))
    assert rel_err < 0.1, f"relative error too large: {rel_err}"

    print("KERNEL_OK")
</pallas_src>

<mosaic_0001>
module attributes {stable_mosaic.version = 11 : i64} {
  func.func @_lenet_fused_kernel(%arg0: i32, %arg1: memref<4x9x8x108xbf16, #tpu.memory_space<vmem>>, %arg2: memref<5x108x192xbf16, #tpu.memory_space<vmem>>, %arg3: memref<1x96xf32, #tpu.memory_space<vmem>>, %arg4: memref<5x96x192xbf16, #tpu.memory_space<vmem>>, %arg5: memref<1x96xf32, #tpu.memory_space<vmem>>, %arg6: memref<6x96x120xbf16, #tpu.memory_space<vmem>>, %arg7: memref<1x120xf32, #tpu.memory_space<vmem>>, %arg8: memref<120x84xbf16, #tpu.memory_space<vmem>>, %arg9: memref<1x84xf32, #tpu.memory_space<vmem>>, %arg10: memref<84x10xbf16, #tpu.memory_space<vmem>>, %arg11: memref<1x10xf32, #tpu.memory_space<vmem>>, %arg12: memref<8x10xf32, #tpu.memory_space<vmem>>) attributes {dimension_semantics = [#tpu.dimension_semantics<parallel>], iteration_bounds = array<i64: 2>, scalar_prefetch = 0 : i64, scratch_operands = 0 : i64, tpu.core_type = #tpu.core_type<tc>, window_params = [{transform_indices = @transform_0, window_bounds = array<i64: 4, 9, 8, 108>}, {pipeline_mode = #tpu.pipeline_mode<synchronous>, transform_indices = @transform_1, window_bounds = array<i64: 5, 108, 192>}, {pipeline_mode = #tpu.pipeline_mode<synchronous>, transform_indices = @transform_2, window_bounds = array<i64: 1, 96>}, {pipeline_mode = #tpu.pipeline_mode<synchronous>, transform_indices = @transform_3, window_bounds = array<i64: 5, 96, 192>}, {pipeline_mode = #tpu.pipeline_mode<synchronous>, transform_indices = @transform_4, window_bounds = array<i64: 1, 96>}, {pipeline_mode = #tpu.pipeline_mode<synchronous>, transform_indices = @transform_5, window_bounds = array<i64: 6, 96, 120>}, {pipeline_mode = #tpu.pipeline_mode<synchronous>, transform_indices = @transform_6, window_bounds = array<i64: 1, 120>}, {pipeline_mode = #tpu.pipeline_mode<synchronous>, transform_indices = @transform_7, window_bounds = array<i64: 120, 84>}, {pipeline_mode = #tpu.pipeline_mode<synchronous>, transform_indices = @transform_8, window_bounds = array<i64: 1, 84>}, {pipeline_mode = #tpu.pipeline_mode<synchronous>, transform_indices = @transform_9, window_bounds = array<i64: 84, 10>}, {pipeline_mode = #tpu.pipeline_mode<synchronous>, transform_indices = @transform_10, window_bounds = array<i64: 1, 10>}, {transform_indices = @transform_11, window_bounds = array<i64: 8, 10>}]} {
    %c0 = arith.constant 0 : index
    %c0_0 = arith.constant 0 : index
    %c0_1 = arith.constant 0 : index
    %0 = vector.load %arg2[%c0, %c0_0, %c0_1] : memref<5x108x192xbf16, #tpu.memory_space<vmem>>, vector<1x108x192xbf16>
    %1 = vector.shape_cast %0 : vector<1x108x192xbf16> to vector<108x192xbf16>
    %c0_2 = arith.constant 0 : index
    %c0_3 = arith.constant 0 : index
    %c0_4 = arith.constant 0 : index
    %c0_5 = arith.constant 0 : index
    %2 = vector.load %arg1[%c0_2, %c0_3, %c0_4, %c0_5] : memref<4x9x8x108xbf16, #tpu.memory_space<vmem>>, vector<1x8x8x108xbf16>
    %3 = vector.shape_cast %2 : vector<1x8x8x108xbf16> to vector<8x8x108xbf16>
    %4 = vector.shape_cast %3 : vector<8x8x108xbf16> to vector<64x108xbf16>
    %cst = arith.constant dense<0.000000e+00> : vector<64x192xf32>
    %5 = tpu.matmul %4, %1, %cst {dimension_numbers = #tpu.dot_dimension_numbers<[1], [0], [0], [1], [0, 0, 1, 1], [], []>} : vector<64x108xbf16>, vector<108x192xbf16>, vector<64x192xf32> -> vector<64x192xf32>
    %c1 = arith.constant 1 : index
    %c0_6 = arith.constant 0 : index
    %c0_7 = arith.constant 0 : index
    %c0_8 = arith.constant 0 : index
    %6 = vector.load %arg1[%c1, %c0_6, %c0_7, %c0_8] : memref<4x9x8x108xbf16, #tpu.memory_space<vmem>>, vector<1x8x8x108xbf16>
    %7 = vector.shape_cast %6 : vector<1x8x8x108xbf16> to vector<8x8x108xbf16>
    %8 = vector.shape_cast %7 : vector<8x8x108xbf16> to vector<64x108xbf16>
    %cst_9 = arith.constant dense<0.000000e+00> : vector<64x192xf32>
    %9 = tpu.matmul %8, %1, %cst_9 {dimension_numbers = #tpu.dot_dimension_numbers<[1], [0], [0], [1], [0, 0, 1, 1], [], []>} : vector<64x108xbf16>, vector<108x192xbf16>, vector<64x192xf32> -> vector<64x192xf32>
    %c2 = arith.constant 2 : index
    %c0_10 = arith.constant 0 : index
    %c0_11 = arith.constant 0 : index
    %c0_12 = arith.constant 0 : index
    %10 = vector.load %arg1[%c2, %c0_10, %c0_11, %c0_12] : memref<4x9x8x108xbf16, #tpu.memory_space<vmem>>, vector<1x8x8x108xbf16>
    %11 = vector.shape_cast %10 : vector<1x8x8x108xbf16> to vector<8x8x108xbf16>
    %12 = vector.shape_cast %11 : vector<8x8x108xbf16> to vector<64x108xbf16>
    %cst_13 = arith.constant dense<0.000000e+00> : vector<64x192xf32>
    %13 = tpu.matmul %12, %1, %cst_13 {dimension_numbers = #tpu.dot_dimension_numbers<[1], [0], [0], [1], [0, 0, 1, 1], [], []>} : vector<64x108xbf16>, vector<108x192xbf16>, vector<64x192xf32> -> vector<64x192xf32>
    %c3 = arith.constant 3 : index
    %c0_14 = arith.constant 0 : index
    %c0_15 = arith.constant 0 : index
    %c0_16 = arith.constant 0 : index
    %14 = vector.load %arg1[%c3, %c0_14, %c0_15, %c0_16] : memref<4x9x8x108xbf16, #tpu.memory_space<vmem>>, vector<1x8x8x108xbf16>
    %15 = vector.shape_cast %14 : vector<1x8x8x108xbf16> to vector<8x8x108xbf16>
    %16 = vector.shape_cast %15 : vector<8x8x108xbf16> to vector<64x108xbf16>
    %cst_17 = arith.constant dense<0.000000e+00> : vector<64x192xf32>
    %17 = tpu.matmul %16, %1, %cst_17 {dimension_numbers = #tpu.dot_dimension_numbers<[1], [0], [0], [1], [0, 0, 1, 1], [], []>} : vector<64x108xbf16>, vector<108x192xbf16>, vector<64x192xf32> -> vector<64x192xf32>
    %c1_18 = arith.constant 1 : index
    %c0_19 = arith.constant 0 : index
    %c0_20 = arith.constant 0 : index
    %18 = vector.load %arg2[%c1_18, %c0_19, %c0_20] : memref<5x108x192xbf16, #tpu.memory_space<vmem>>, vector<1x108x192xbf16>
    %19 = vector.shape_cast %18 : vector<1x108x192xbf16> to vector<108x192xbf16>
    %c1_21 = arith.constant 1 : index
    %c0_22 = arith.constant 0 : index
    %c0_23 = arith.constant 0 : index
    %c0_24 = arith.constant 0 : index
    %20 = vector.load %arg1[%c1_21, %c0_22, %c0_23, %c0_24] : memref<4x9x8x108xbf16, #tpu.memory_space<vmem>>, vector<1x8x8x108xbf16>
    %21 = vector.shape_cast %20 : vector<1x8x8x108xbf16> to vector<8x8x108xbf16>
    %22 = vector.shape_cast %21 : vector<8x8x108xbf16> to vector<64x108xbf16>
    %cst_25 = arith.constant dense<0.000000e+00> : vector<64x192xf32>
    %23 = tpu.matmul %22, %19, %cst_25 {dimension_numbers = #tpu.dot_dimension_numbers<[1], [0], [0], [1], [0, 0, 1, 1], [], []>} : vector<64x108xbf16>, vector<108x192xbf16>, vector<64x192xf32> -> vector<64x192xf32>
    %24 = arith.addf %5, %23 : vector<64x192xf32>
    %c2_26 = arith.constant 2 : index
    %c0_27 = arith.constant 0 : index
    %c0_28 = arith.constant 0 : index
    %c0_29 = arith.constant 0 : index
    %25 = vector.load %arg1[%c2_26, %c0_27, %c0_28, %c0_29] : memref<4x9x8x108xbf16, #tpu.memory_space<vmem>>, vector<1x8x8x108xbf16>
    %26 = vector.shape_cast %25 : vector<1x8x8x108xbf16> to vector<8x8x108xbf16>
    %27 = vector.shape_cast %26 : vector<8x8x108xbf16> to vector<64x108xbf16>
    %cst_30 = arith.constant dense<0.000000e+00> : vector<64x192xf32>
    %28 = tpu.matmul %27, %19, %cst_30 {dimension_numbers = #tpu.dot_dimension_numbers<[1], [0], [0], [1], [0, 0, 1, 1], [], []>} : vector<64x108xbf16>, vector<108x192xbf16>, vector<64x192xf32> -> vector<64x192xf32>
    %29 = arith.addf %9, %28 : vector<64x192xf32>
    %c3_31 = arith.constant 3 : index
    %c0_32 = arith.constant 0 : index
    %c0_33 = arith.constant 0 : index
    %c0_34 = arith.constant 0 : index
    %30 = vector.load %arg1[%c3_31, %c0_32, %c0_33, %c0_34] : memref<4x9x8x108xbf16, #tpu.memory_space<vmem>>, vector<1x8x8x108xbf16>
    %31 = vector.shape_cast %30 : vector<1x8x8x108xbf16> to vector<8x8x108xbf16>
    %32 = vector.shape_cast %31 : vector<8x8x108xbf16> to vector<64x108xbf16>
    %cst_35 = arith.constant dense<0.000000e+00> : vector<64x192xf32>
    %33 = tpu.matmul %32, %19, %cst_35 {dimension_numbers = #tpu.dot_dimension_numbers<[1], [0], [0], [1], [0, 0, 1, 1], [], []>} : vector<64x108xbf16>, vector<108x192xbf16>, vector<64x192xf32> -> vector<64x192xf32>
    %34 = arith.addf %13, %33 : vector<64x192xf32>
    %c0_36 = arith.constant 0 : index
    %c1_37 = arith.constant 1 : index
    %c0_38 = arith.constant 0 : index
    %c0_39 = arith.constant 0 : index
    %35 = vector.load %arg1[%c0_36, %c1_37, %c0_38, %c0_39] : memref<4x9x8x108xbf16, #tpu.memory_space<vmem>>, vector<1x8x8x108xbf16>
    %36 = vector.shape_cast %35 : vector<1x8x8x108xbf16> to vector<8x8x108xbf16>
    %37 = vector.shape_cast %36 : vector<8x8x108xbf16> to vector<64x108xbf16>
    %cst_40 = arith.constant dense<0.000000e+00> : vector<64x192xf32>
    %38 = tpu.matmul %37, %19, %cst_40 {dimension_numbers = #tpu.dot_dimension_numbers<[1], [0], [0], [1], [0, 0, 1, 1], [], []>} : vector<64x108xbf16>, vector<108x192xbf16>, vector<64x192xf32> -> vector<64x192xf32>
    %39 = arith.addf %17, %38 : vector<64x192xf32>
    %c2_41 = arith.constant 2 : index
    %c0_42 = arith.constant 0 : index
    %c0_43 = arith.constant 0 : index
    %40 = vector.load %arg2[%c2_41, %c0_42, %c0_43] : memref<5x108x192xbf16, #tpu.memory_space<vmem>>, vector<1x108x192xbf16>
    %41 = vector.shape_cast %40 : vector<1x108x192xbf16> to vector<108x192xbf16>
    %c2_44 = arith.constant 2 : index
    %c0_45 = arith.constant 0 : index
    %c0_46 = arith.constant 0 : index
    %c0_47 = arith.constant 0 : index
    %42 = vector.load %arg1[%c2_44, %c0_45, %c0_46, %c0_47] : memref<4x9x8x108xbf16, #tpu.memory_space<vmem>>, vector<1x8x8x108xbf16>
    %43 = vector.shape_cast %42 : vector<1x8x8x108xbf16> to vector<8x8x108xbf16>
    %44 = vector.shape_cast %43 : vector<8x8x108xbf16> to vector<64x108xbf16>
    %cst_48 = arith.constant dense<0.000000e+00> : vector<64x192xf32>
    %45 = tpu.matmul %44, %41, %cst_48 {dimension_numbers = #tpu.dot_dimension_numbers<[1], [0], [0], [1], [0, 0, 1, 1], [], []>} : vector<64x108xbf16>, vector<108x192xbf16>, vector<64x192xf32> -> vector<64x192xf32>
    %46 = arith.addf %24, %45 : vector<64x192xf32>
    %c3_49 = arith.constant 3 : index
    %c0_50 = arith.constant 0 : index
    %c0_51 = arith.constant 0 : index
    %c0_52 = arith.constant 0 : index
    %47 = vector.load %arg1[%c3_49, %c0_50, %c0_51, %c0_52] : memref<4x9x8x108xbf16, #tpu.memory_space<vmem>>, vector<1x8x8x108xbf16>
    %48 = vector.shape_cast %47 : vector<1x8x8x108xbf16> to vector<8x8x108xbf16>
    %49 = vector.shape_cast %48 : vector<8x8x108xbf16> to vector<64x108xbf16>
    %cst_53 = arith.constant dense<0.000000e+00> : vector<64x192xf32>
    %50 = tpu.matmul %49, %41, %cst_53 {dimension_numbers = #tpu.dot_dimension_numbers<[1], [0], [0], [1], [0, 0, 1, 1], [], []>} : vector<64x108xbf16>, vector<108x192xbf16>, vector<64x192xf32> -> vector<64x192xf32>
    %51 = arith.addf %29, %50 : vector<64x192xf32>
    %c0_54 = arith.constant 0 : index
    %c1_55 = arith.constant 1 : index
    %c0_56 = arith.constant 0 : index
    %c0_57 = arith.constant 0 : index
    %52 = vector.load %arg1[%c0_54, %c1_55, %c0_56, %c0_57] : memref<4x9x8x108xbf16, #tpu.memory_space<vmem>>, vector<1x8x8x108xbf16>
    %53 = vector.shape_cast %52 : vector<1x8x8x108xbf16> to vector<8x8x108xbf16>
    %54 = vector.shape_cast %53 : vector<8x8x108xbf16> to vector<64x108xbf16>
    %cst_58 = arith.constant dense<0.000000e+00> : vector<64x192xf32>
    %55 = tpu.matmul %54, %41, %cst_58 {dimension_numbers = #tpu.dot_dimension_numbers<[1], [0], [0], [1], [0, 0, 1, 1], [], []>} : vector<64x108xbf16>, vector<108x192xbf16>, vector<64x192xf32> -> vector<64x192xf32>
    %56 = arith.addf %34, %55 : vector<64x192xf32>
    %c1_59 = arith.constant 1 : index
    %c1_60 = arith.constant 1 : index
    %c0_61 = arith.constant 0 : index
    %c0_62 = arith.constant 0 : index
    %57 = vector.load %arg1[%c1_59, %c1_60, %c0_61, %c0_62] : memref<4x9x8x108xbf16, #tpu.memory_space<vmem>>, vector<1x8x8x108xbf16>
    %58 = vector.shape_cast %57 : vector<1x8x8x108xbf16> to vector<8x8x108xbf16>
    %59 = vector.shape_cast %58 : vector<8x8x108xbf16> to vector<64x108xbf16>
    %cst_63 = arith.constant dense<0.000000e+00> : vector<64x192xf32>
    %60 = tpu.matmul %59, %41, %cst_63 {dimension_numbers = #tpu.dot_dimension_numbers<[1], [0], [0], [1], [0, 0, 1, 1], [], []>} : vector<64x108xbf16>, vector<108x192xbf16>, vector<64x192xf32> -> vector<64x192xf32>
    %61 = arith.addf %39, %60 : vector<64x192xf32>
    %c3_64 = arith.constant 3 : index
    %c0_65 = arith.constant 0 : index
    %c0_66 = arith.constant 0 : index
    %62 = vector.load %arg2[%c3_64, %c0_65, %c0_66] : memref<5x108x192xbf16, #tpu.memory_space<vmem>>, vector<1x108x192xbf16>
    %63 = vector.shape_cast %62 : vector<1x108x192xbf16> to vector<108x192xbf16>
    %c3_67 = arith.constant 3 : index
    %c0_68 = arith.constant 0 : index
    %c0_69 = arith.constant 0 : index
    %c0_70 = arith.constant 0 : index
    %64 = vector.load %arg1[%c3_67, %c0_68, %c0_69, %c0_70] : memref<4x9x8x108xbf16, #tpu.memory_space<vmem>>, vector<1x8x8x108xbf16>
    %65 = vector.shape_cast %64 : vector<1x8x8x108xbf16> to vector<8x8x108xbf16>
    %66 = vector.shape_cast %65 : vector<8x8x108xbf16> to vector<64x108xbf16>
    %cst_71 = arith.constant dense<0.000000e+00> : vector<64x192xf32>
    %67 = tpu.matmul %66, %63, %cst_71 {dimension_numbers = #tpu.dot_dimension_numbers<[1], [0], [0], [1], [0, 0, 1, 1], [], []>} : vector<64x108xbf16>, vector<108x192xbf16>, vector<64x192xf32> -> vector<64x192xf32>
    %68 = arith.addf %46, %67 : vector<64x192xf32>
    %c0_72 = arith.constant 0 : index
    %c1_73 = arith.constant 1 : index
    %c0_74 = arith.constant 0 : index
    %c0_75 = arith.constant 0 : index
    %69 = vector.load %arg1[%c0_72, %c1_73, %c0_74, %c0_75] : memref<4x9x8x108xbf16, #tpu.memory_space<vmem>>, vector<1x8x8x108xbf16>
    %70 = vector.shape_cast %69 : vector<1x8x8x108xbf16> to vector<8x8x108xbf16>
    %71 = vector.shape_cast %70 : vector<8x8x108xbf16> to vector<64x108xbf16>
    %cst_76 = arith.constant dense<0.000000e+00> : vector<64x192xf32>
    %72 = tpu.matmul %71, %63, %cst_76 {dimension_numbers = #tpu.dot_dimension_numbers<[1], [0], [0], [1], [0, 0, 1, 1], [], []>} : vector<64x108xbf16>, vector<108x192xbf16>, vector<64x192xf32> -> vector<64x192xf32>
    %73 = arith.addf %51, %72 : vector<64x192xf32>
    %c1_77 = arith.constant 1 : index
    %c1_78 = arith.constant 1 : index
    %c0_79 = arith.constant 0 : index
    %c0_80 = arith.constant 0 : index
    %74 = vector.load %arg1[%c1_77, %c1_78, %c0_79, %c0_80] : memref<4x9x8x108xbf16, #tpu.memory_space<vmem>>, vector<1x8x8x108xbf16>
    %75 = vector.shape_cast %74 : vector<1x8x8x108xbf16> to vector<8x8x108xbf16>
    %76 = vector.shape_cast %75 : vector<8x8x108xbf16> to vector<64x108xbf16>
    %cst_81 = arith.constant dense<0.000000e+00> : vector<64x192xf32>
    %77 = tpu.matmul %76, %63, %cst_81 {dimension_numbers = #tpu.dot_dimension_numbers<[1], [0], [0], [1], [0, 0, 1, 1], [], []>} : vector<64x108xbf16>, vector<108x192xbf16>, vector<64x192xf32> -> vector<64x192xf32>
    %78 = arith.addf %56, %77 : vector<64x192xf32>
    %c2_82 = arith.constant 2 : index
    %c1_83 = arith.constant 1 : index
    %c0_84 = arith.constant 0 : index
    %c0_85 = arith.constant 0 : index
    %79 = vector.load %arg1[%c2_82, %c1_83, %c0_84, %c0_85] : memref<4x9x8x108xbf16, #tpu.memory_space<vmem>>, vector<1x8x8x108xbf16>
    %80 = vector.shape_cast %79 : vector<1x8x8x108xbf16> to vector<8x8x108xbf16>
    %81 = vector.shape_cast %80 : vector<8x8x108xbf16> to vector<64x108xbf16>
    %cst_86 = arith.constant dense<0.000000e+00> : vector<64x192xf32>
    %82 = tpu.matmul %81, %63, %cst_86 {dimension_numbers = #tpu.dot_dimension_numbers<[1], [0], [0], [1], [0, 0, 1, 1], [], []>} : vector<64x108xbf16>, vector<108x192xbf16>, vector<64x192xf32> -> vector<64x192xf32>
    %83 = arith.addf %61, %82 : vector<64x192xf32>
    %c4 = arith.constant 4 : index
    %c0_87 = arith.constant 0 : index
    %c0_88 = arith.constant 0 : index
    %84 = vector.load %arg2[%c4, %c0_87, %c0_88] : memref<5x108x192xbf16, #tpu.memory_space<vmem>>, vector<1x108x192xbf16>
    %85 = vector.shape_cast %84 : vector<1x108x192xbf16> to vector<108x192xbf16>
    %c0_89 = arith.constant 0 : index
    %c1_90 = arith.constant 1 : index
    %c0_91 = arith.constant 0 : index
    %c0_92 = arith.constant 0 : index
    %86 = vector.load %arg1[%c0_89, %c1_90, %c0_91, %c0_92] : memref<4x9x8x108xbf16, #tpu.memory_space<vmem>>, vector<1x8x8x108xbf16>
    %87 = vector.shape_cast %86 : vector<1x8x8x108xbf16> to vector<8x8x108xbf16>
    %88 = vector.shape_cast %87 : vector<8x8x108xbf16> to vector<64x108xbf16>
    %cst_93 = arith.constant dense<0.000000e+00> : vector<64x192xf32>
    %89 = tpu.matmul %88, %85, %cst_93 {dimension_numbers = #tpu.dot_dimension_numbers<[1], [0], [0], [1], [0, 0, 1, 1], [], []>} : vector<64x108xbf16>, vector<108x192xbf16>, vector<64x192xf32> -> vector<64x192xf32>
    %90 = arith.addf %68, %89 : vector<64x192xf32>
    %c1_94 = arith.constant 1 : index
    %c1_95 = arith.constant 1 : index
    %c0_96 = arith.constant 0 : index
    %c0_97 = arith.constant 0 : index
    %91 = vector.load %arg1[%c1_94, %c1_95, %c0_96, %c0_97] : memref<4x9x8x108xbf16, #tpu.memory_space<vmem>>, vector<1x8x8x108xbf16>
    %92 = vector.shape_cast %91 : vector<1x8x8x108xbf16> to vector<8x8x108xbf16>
    %93 = vector.shape_cast %92 : vector<8x8x108xbf16> to vector<64x108xbf16>
    %cst_98 = arith.constant dense<0.000000e+00> : vector<64x192xf32>
    %94 = tpu.matmul %93, %85, %cst_98 {dimension_numbers = #tpu.dot_dimension_numbers<[1], [0], [0], [1], [0, 0, 1, 1], [], []>} : vector<64x108xbf16>, vector<108x192xbf16>, vector<64x192xf32> -> vector<64x192xf32>
    %95 = arith.addf %73, %94 : vector<64x192xf32>
    %c2_99 = arith.constant 2 : index
    %c1_100 = arith.constant 1 : index
    %c0_101 = arith.constant 0 : index
    %c0_102 = arith.constant 0 : index
    %96 = vector.load %arg1[%c2_99, %c1_100, %c0_101, %c0_102] : memref<4x9x8x108xbf16, #tpu.memory_space<vmem>>, vector<1x8x8x108xbf16>
    %97 = vector.shape_cast %96 : vector<1x8x8x108xbf16> to vector<8x8x108xbf16>
    %98 = vector.shape_cast %97 : vector<8x8x108xbf16> to vector<64x108xbf16>
    %cst_103 = arith.constant dense<0.000000e+00> : vector<64x192xf32>
    %99 = tpu.matmul %98, %85, %cst_103 {dimension_numbers = #tpu.dot_dimension_numbers<[1], [0], [0], [1], [0, 0, 1, 1], [], []>} : vector<64x108xbf16>, vector<108x192xbf16>, vector<64x192xf32> -> vector<64x192xf32>
    %100 = arith.addf %78, %99 : vector<64x192xf32>
    %c3_104 = arith.constant 3 : index
    %c1_105 = arith.constant 1 : index
    %c0_106 = arith.constant 0 : index
    %c0_107 = arith.constant 0 : index
    %101 = vector.load %arg1[%c3_104, %c1_105, %c0_106, %c0_107] : memref<4x9x8x108xbf16, #tpu.memory_space<vmem>>, vector<1x8x8x108xbf16>
    %102 = vector.shape_cast %101 : vector<1x8x8x108xbf16> to vector<8x8x108xbf16>
    %103 = vector.shape_cast %102 : vector<8x8x108xbf16> to vector<64x108xbf16>
    %cst_108 = arith.constant dense<0.000000e+00> : vector<64x192xf32>
    %104 = tpu.matmul %103, %85, %cst_108 {dimension_numbers = #tpu.dot_dimension_numbers<[1], [0], [0], [1], [0, 0, 1, 1], [], []>} : vector<64x108xbf16>, vector<108x192xbf16>, vector<64x192xf32> -> vector<64x192xf32>
    %105 = arith.addf %83, %104 : vector<64x192xf32>
    %106 = vector.extract_strided_slice %90 {offsets = [0, 0], sizes = [64, 96], strides = [1, 1]} : vector<64x192xf32> to vector<64x96xf32>
    %107 = vector.extract_strided_slice %90 {offsets = [0, 96], sizes = [64, 96], strides = [1, 1]} : vector<64x192xf32> to vector<64x96xf32>
    %108 = arith.maximumf %106, %107 : vector<64x96xf32>
    %109 = vector.extract_strided_slice %95 {offsets = [0, 0], sizes = [64, 96], strides = [1, 1]} : vector<64x192xf32> to vector<64x96xf32>
    %110 = vector.extract_strided_slice %95 {offsets = [0, 96], sizes = [64, 96], strides = [1, 1]} : vector<64x192xf32> to vector<64x96xf32>
    %111 = arith.maximumf %109, %110 : vector<64x96xf32>
    %112 = arith.maximumf %108, %111 : vector<64x96xf32>
    %c0_109 = arith.constant 0 : index
    %c0_110 = arith.constant 0 : index
    %113 = vector.load %arg3[%c0_109, %c0_110] : memref<1x96xf32, #tpu.memory_space<vmem>>, vector<1x96xf32>
    %114 = vector.broadcast %113 : vector<1x96xf32> to vector<64x96xf32>
    %115 = arith.addf %112, %114 : vector<64x96xf32>
    %cst_111 = arith.constant 0.000000e+00 : f32
    %116 = vector.broadcast %cst_111 : f32 to vector<64x96xf32>
    %117 = arith.maximumf %115, %116 : vector<64x96xf32>
    %118 = arith.truncf %117 : vector<64x96xf32> to vector<64x96xbf16>
    %119 = vector.shape_cast %118 : vector<64x96xbf16> to vector<8x8x96xbf16>
    %120 = vector.extract_strided_slice %100 {offsets = [0, 0], sizes = [64, 96], strides = [1, 1]} : vector<64x192xf32> to vector<64x96xf32>
    %121 = vector.extract_strided_slice %100 {offsets = [0, 96], sizes = [64, 96], strides = [1, 1]} : vector<64x192xf32> to vector<64x96xf32>
    %122 = arith.maximumf %120, %121 : vector<64x96xf32>
    %123 = vector.extract_strided_slice %105 {offsets = [0, 0], sizes = [64, 96], strides = [1, 1]} : vector<64x192xf32> to vector<64x96xf32>
    %124 = vector.extract_strided_slice %105 {offsets = [0, 96], sizes = [64, 96], strides = [1, 1]} : vector<64x192xf32> to vector<64x96xf32>
    %125 = arith.maximumf %123, %124 : vector<64x96xf32>
    %126 = arith.maximumf %122, %125 : vector<64x96xf32>
    %c0_112 = arith.constant 0 : index
    %c0_113 = arith.constant 0 : index
    %127 = vector.load %arg3[%c0_112, %c0_113] : memref<1x96xf32, #tpu.memory_space<vmem>>, vector<1x96xf32>
    %128 = vector.broadcast %127 : vector<1x96xf32> to vector<64x96xf32>
    %129 = arith.addf %126, %128 : vector<64x96xf32>
    %cst_114 = arith.constant 0.000000e+00 : f32
    %130 = vector.broadcast %cst_114 : f32 to vector<64x96xf32>
    %131 = arith.maximumf %129, %130 : vector<64x96xf32>
    %132 = arith.truncf %131 : vector<64x96xf32> to vector<64x96xbf16>
    %133 = vector.shape_cast %132 : vector<64x96xbf16> to vector<8x8x96xbf16>
    %c0_115 = arith.constant 0 : index
    %c0_116 = arith.constant 0 : index
    %c0_117 = arith.constant 0 : index
    %134 = vector.load %arg4[%c0_115, %c0_116, %c0_117] : memref<5x96x192xbf16, #tpu.memory_space<vmem>>, vector<1x96x192xbf16>
    %135 = vector.shape_cast %134 : vector<1x96x192xbf16> to vector<96x192xbf16>
    %136 = vector.extract_strided_slice %119 {offsets = [0, 0, 0], sizes = [6, 8, 96], strides = [1, 1, 1]} : vector<8x8x96xbf16> to vector<6x8x96xbf16>
    %137 = vector.shape_cast %136 : vector<6x8x96xbf16> to vector<48x96xbf16>
    %cst_118 = arith.constant dense<0.000000e+00> : vector<48x192xf32>
    %138 = tpu.matmul %137, %135, %cst_118 {dimension_numbers = #tpu.dot_dimension_numbers<[1], [0], [0], [1], [0, 0, 1, 1], [], []>} : vector<48x96xbf16>, vector<96x192xbf16>, vector<48x192xf32> -> vector<48x192xf32>
    %139 = vector.extract_strided_slice %133 {offsets = [0, 0, 0], sizes = [6, 8, 96], strides = [1, 1, 1]} : vector<8x8x96xbf16> to vector<6x8x96xbf16>
    %140 = vector.shape_cast %139 : vector<6x8x96xbf16> to vector<48x96xbf16>
    %cst_119 = arith.constant dense<0.000000e+00> : vector<48x192xf32>
    %141 = tpu.matmul %140, %135, %cst_119 {dimension_numbers = #tpu.dot_dimension_numbers<[1], [0], [0], [1], [0, 0, 1, 1], [], []>} : vector<48x96xbf16>, vector<96x192xbf16>, vector<48x192xf32> -> vector<48x192xf32>
    %c1_120 = arith.constant 1 : index
    %c0_121 = arith.constant 0 : index
    %c0_122 = arith.constant 0 : index
    %142 = vector.load %arg4[%c1_120, %c0_121, %c0_122] : memref<5x96x192xbf16, #tpu.memory_space<vmem>>, vector<1x96x192xbf16>
    %143 = vector.shape_cast %142 : vector<1x96x192xbf16> to vector<96x192xbf16>
    %144 = vector.extract_strided_slice %133 {offsets = [0, 0, 0], sizes = [6, 8, 96], strides = [1, 1, 1]} : vector<8x8x96xbf16> to vector<6x8x96xbf16>
    %145 = vector.shape_cast %144 : vector<6x8x96xbf16> to vector<48x96xbf16>
    %cst_123 = arith.constant dense<0.000000e+00> : vector<48x192xf32>
    %146 = tpu.matmul %145, %143, %cst_123 {dimension_numbers = #tpu.dot_dimension_numbers<[1], [0], [0], [1], [0, 0, 1, 1], [], []>} : vector<48x96xbf16>, vector<96x192xbf16>, vector<48x192xf32> -> vector<48x192xf32>
    %147 = arith.addf %138, %146 : vector<48x192xf32>
    %148 = vector.extract_strided_slice %119 {offsets = [1, 0, 0], sizes = [6, 8, 96], strides = [1, 1, 1]} : vector<8x8x96xbf16> to vector<6x8x96xbf16>
    %149 = vector.shape_cast %148 : vector<6x8x96xbf16> to vector<48x96xbf16>
    %cst_124 = arith.constant dense<0.000000e+00> : vector<48x192xf32>
    %150 = tpu.matmul %149, %143, %cst_124 {dimension_numbers = #tpu.dot_dimension_numbers<[1], [0], [0], [1], [0, 0, 1, 1], [], []>} : vector<48x96xbf16>, vector<96x192xbf16>, vector<48x192xf32> -> vector<48x192xf32>
    %151 = arith.addf %141, %150 : vector<48x192xf32>
    %c2_125 = arith.constant 2 : index
    %c0_126 = arith.constant 0 : index
    %c0_127 = arith.constant 0 : index
    %152 = vector.load %arg4[%c2_125, %c0_126, %c0_127] : memref<5x96x192xbf16, #tpu.memory_space<vmem>>, vector<1x96x192xbf16>
    %153 = vector.shape_cast %152 : vector<1x96x192xbf16> to vector<96x192xbf16>
    %154 = vector.extract_strided_slice %119 {offsets = [1, 0, 0], sizes = [6, 8, 96], strides = [1, 1, 1]} : vector<8x8x96xbf16> to vector<6x8x96xbf16>
    %155 = vector.shape_cast %154 : vector<6x8x96xbf16> to vector<48x96xbf16>
    %cst_128 = arith.constant dense<0.000000e+00> : vector<48x192xf32>
    %156 = tpu.matmul %155, %153, %cst_128 {dimension_numbers = #tpu.dot_dimension_numbers<[1], [0], [0], [1], [0, 0, 1, 1], [], []>} : vector<48x96xbf16>, vector<96x192xbf16>, vector<48x192xf32> -> vector<48x192xf32>
    %157 = arith.addf %147, %156 : vector<48x192xf32>
    %158 = vector.extract_strided_slice %133 {offsets = [1, 0, 0], sizes = [6, 8, 96], strides = [1, 1, 1]} : vector<8x8x96xbf16> to vector<6x8x96xbf16>
    %159 = vector.shape_cast %158 : vector<6x8x96xbf16> to vector<48x96xbf16>
    %cst_129 = arith.constant dense<0.000000e+00> : vector<48x192xf32>
    %160 = tpu.matmul %159, %153, %cst_129 {dimension_numbers = #tpu.dot_dimension_numbers<[1], [0], [0], [1], [0, 0, 1, 1], [], []>} : vector<48x96xbf16>, vector<96x192xbf16>, vector<48x192xf32> -> vector<48x192xf32>
    %161 = arith.addf %151, %160 : vector<48x192xf32>
    %c3_130 = arith.constant 3 : index
    %c0_131 = arith.constant 0 : index
    %c0_132 = arith.constant 0 : index
    %162 = vector.load %arg4[%c3_130, %c0_131, %c0_132] : memref<5x96x192xbf16, #tpu.memory_space<vmem>>, vector<1x96x192xbf16>
    %163 = vector.shape_cast %162 : vector<1x96x192xbf16> to vector<96x192xbf16>
    %164 = vector.extract_strided_slice %133 {offsets = [1, 0, 0], sizes = [6, 8, 96], strides = [1, 1, 1]} : vector<8x8x96xbf16> to vector<6x8x96xbf16>
    %165 = vector.shape_cast %164 : vector<6x8x96xbf16> to vector<48x96xbf16>
    %cst_133 = arith.constant dense<0.000000e+00> : vector<48x192xf32>
    %166 = tpu.matmul %165, %163, %cst_133 {dimension_numbers = #tpu.dot_dimension_numbers<[1], [0], [0], [1], [0, 0, 1, 1], [], []>} : vector<48x96xbf16>, vector<96x192xbf16>, vector<48x192xf32> -> vector<48x192xf32>
    %167 = arith.addf %157, %166 : vector<48x192xf32>
    %168 = vector.extract_strided_slice %119 {offsets = [2, 0, 0], sizes = [6, 8, 96], strides = [1, 1, 1]} : vector<8x8x96xbf16> to vector<6x8x96xbf16>
    %169 = vector.shape_cast %168 : vector<6x8x96xbf16> to vector<48x96xbf16>
    %cst_134 = arith.constant dense<0.000000e+00> : vector<48x192xf32>
    %170 = tpu.matmul %169, %163, %cst_134 {dimension_numbers = #tpu.dot_dimension_numbers<[1], [0], [0], [1], [0, 0, 1, 1], [], []>} : vector<48x96xbf16>, vector<96x192xbf16>, vector<48x192xf32> -> vector<48x192xf32>
    %171 = arith.addf %161, %170 : vector<48x192xf32>
    %c4_135 = arith.constant 4 : index
    %c0_136 = arith.constant 0 : index
    %c0_137 = arith.constant 0 : index
    %172 = vector.load %arg4[%c4_135, %c0_136, %c0_137] : memref<5x96x192xbf16, #tpu.memory_space<vmem>>, vector<1x96x192xbf16>
    %173 = vector.shape_cast %172 : vector<1x96x192xbf16> to vector<96x192xbf16>
    %174 = vector.extract_strided_slice %119 {offsets = [2, 0, 0], sizes = [6, 8, 96], strides = [1, 1, 1]} : vector<8x8x96xbf16> to vector<6x8x96xbf16>
    %175 = vector.shape_cast %174 : vector<6x8x96xbf16> to vector<48x96xbf16>
    %cst_138 = arith.constant dense<0.000000e+00> : vector<48x192xf32>
    %176 = tpu.matmul %175, %173, %cst_138 {dimension_numbers = #tpu.dot_dimension_numbers<[1], [0], [0], [1], [0, 0, 1, 1], [], []>} : vector<48x96xbf16>, vector<96x192xbf16>, vector<48x192xf32> -> vector<48x192xf32>
    %177 = arith.addf %167, %176 : vector<48x192xf32>
    %178 = vector.extract_strided_slice %133 {offsets = [2, 0, 0], sizes = [6, 8, 96], strides = [1, 1, 1]} : vector<8x8x96xbf16> to vector<6x8x96xbf16>
    %179 = vector.shape_cast %178 : vector<6x8x96xbf16> to vector<48x96xbf16>
    %cst_139 = arith.constant dense<0.000000e+00> : vector<48x192xf32>
    %180 = tpu.matmul %179, %173, %cst_139 {dimension_numbers = #tpu.dot_dimension_numbers<[1], [0], [0], [1], [0, 0, 1, 1], [], []>} : vector<48x96xbf16>, vector<96x192xbf16>, vector<48x192xf32> -> vector<48x192xf32>
    %181 = arith.addf %171, %180 : vector<48x192xf32>
    %182 = vector.extract_strided_slice %177 {offsets = [0, 0], sizes = [48, 96], strides = [1, 1]} : vector<48x192xf32> to vector<48x96xf32>
    %183 = vector.extract_strided_slice %177 {offsets = [0, 96], sizes = [48, 96], strides = [1, 1]} : vector<48x192xf32> to vector<48x96xf32>
    %184 = arith.maximumf %182, %183 : vector<48x96xf32>
    %185 = vector.extract_strided_slice %181 {offsets = [0, 0], sizes = [48, 96], strides = [1, 1]} : vector<48x192xf32> to vector<48x96xf32>
    %186 = vector.extract_strided_slice %181 {offsets = [0, 96], sizes = [48, 96], strides = [1, 1]} : vector<48x192xf32> to vector<48x96xf32>
    %187 = arith.maximumf %185, %186 : vector<48x96xf32>
    %188 = arith.maximumf %184, %187 : vector<48x96xf32>
    %c0_140 = arith.constant 0 : index
    %c0_141 = arith.constant 0 : index
    %189 = vector.load %arg5[%c0_140, %c0_141] : memref<1x96xf32, #tpu.memory_space<vmem>>, vector<1x96xf32>
    %190 = vector.broadcast %189 : vector<1x96xf32> to vector<48x96xf32>
    %191 = arith.addf %188, %190 : vector<48x96xf32>
    %cst_142 = arith.constant 0.000000e+00 : f32
    %192 = vector.broadcast %cst_142 : f32 to vector<48x96xf32>
    %193 = arith.maximumf %191, %192 : vector<48x96xf32>
    %194 = arith.truncf %193 : vector<48x96xf32> to vector<48x96xbf16>
    %195 = vector.extract_strided_slice %194 {offsets = [0, 0], sizes = [8, 96], strides = [1, 1]} : vector<48x96xbf16> to vector<8x96xbf16>
    %c0_143 = arith.constant 0 : index
    %c0_144 = arith.constant 0 : index
    %c0_145 = arith.constant 0 : index
    %196 = vector.load %arg6[%c0_143, %c0_144, %c0_145] : memref<6x96x120xbf16, #tpu.memory_space<vmem>>, vector<1x96x120xbf16>
    %197 = vector.shape_cast %196 : vector<1x96x120xbf16> to vector<96x120xbf16>
    %cst_146 = arith.constant dense<0.000000e+00> : vector<8x120xf32>
    %198 = tpu.matmul %195, %197, %cst_146 {dimension_numbers = #tpu.dot_dimension_numbers<[1], [0], [0], [1], [0, 0, 1, 1], [], []>} : vector<8x96xbf16>, vector<96x120xbf16>, vector<8x120xf32> -> vector<8x120xf32>
    %199 = vector.extract_strided_slice %194 {offsets = [8, 0], sizes = [8, 96], strides = [1, 1]} : vector<48x96xbf16> to vector<8x96xbf16>
    %c1_147 = arith.constant 1 : index
    %c0_148 = arith.constant 0 : index
    %c0_149 = arith.constant 0 : index
    %200 = vector.load %arg6[%c1_147, %c0_148, %c0_149] : memref<6x96x120xbf16, #tpu.memory_space<vmem>>, vector<1x96x120xbf16>
    %201 = vector.shape_cast %200 : vector<1x96x120xbf16> to vector<96x120xbf16>
    %cst_150 = arith.constant dense<0.000000e+00> : vector<8x120xf32>
    %202 = tpu.matmul %199, %201, %cst_150 {dimension_numbers = #tpu.dot_dimension_numbers<[1], [0], [0], [1], [0, 0, 1, 1], [], []>} : vector<8x96xbf16>, vector<96x120xbf16>, vector<8x120xf32> -> vector<8x120xf32>
    %203 = arith.addf %198, %202 : vector<8x120xf32>
    %204 = vector.extract_strided_slice %194 {offsets = [16, 0], sizes = [8, 96], strides = [1, 1]} : vector<48x96xbf16> to vector<8x96xbf16>
    %c2_151 = arith.constant 2 : index
    %c0_152 = arith.constant 0 : index
    %c0_153 = arith.constant 0 : index
    %205 = vector.load %arg6[%c2_151, %c0_152, %c0_153] : memref<6x96x120xbf16, #tpu.memory_space<vmem>>, vector<1x96x120xbf16>
    %206 = vector.shape_cast %205 : vector<1x96x120xbf16> to vector<96x120xbf16>
    %cst_154 = arith.constant dense<0.000000e+00> : vector<8x120xf32>
    %207 = tpu.matmul %204, %206, %cst_154 {dimension_numbers = #tpu.dot_dimension_numbers<[1], [0], [0], [1], [0, 0, 1, 1], [], []>} : vector<8x96xbf16>, vector<96x120xbf16>, vector<8x120xf32> -> vector<8x120xf32>
    %208 = arith.addf %203, %207 : vector<8x120xf32>
    %209 = vector.extract_strided_slice %194 {offsets = [24, 0], sizes = [8, 96], strides = [1, 1]} : vector<48x96xbf16> to vector<8x96xbf16>
    %c3_155 = arith.constant 3 : index
    %c0_156 = arith.constant 0 : index
    %c0_157 = arith.constant 0 : index
    %210 = vector.load %arg6[%c3_155, %c0_156, %c0_157] : memref<6x96x120xbf16, #tpu.memory_space<vmem>>, vector<1x96x120xbf16>
    %211 = vector.shape_cast %210 : vector<1x96x120xbf16> to vector<96x120xbf16>
    %cst_158 = arith.constant dense<0.000000e+00> : vector<8x120xf32>
    %212 = tpu.matmul %209, %211, %cst_158 {dimension_numbers = #tpu.dot_dimension_numbers<[1], [0], [0], [1], [0, 0, 1, 1], [], []>} : vector<8x96xbf16>, vector<96x120xbf16>, vector<8x120xf32> -> vector<8x120xf32>
    %213 = arith.addf %208, %212 : vector<8x120xf32>
    %214 = vector.extract_strided_slice %194 {offsets = [32, 0], sizes = [8, 96], strides = [1, 1]} : vector<48x96xbf16> to vector<8x96xbf16>
    %c4_159 = arith.constant 4 : index
    %c0_160 = arith.constant 0 : index
    %c0_161 = arith.constant 0 : index
    %215 = vector.load %arg6[%c4_159, %c0_160, %c0_161] : memref<6x96x120xbf16, #tpu.memory_space<vmem>>, vector<1x96x120xbf16>
    %216 = vector.shape_cast %215 : vector<1x96x120xbf16> to vector<96x120xbf16>
    %cst_162 = arith.constant dense<0.000000e+00> : vector<8x120xf32>
    %217 = tpu.matmul %214, %216, %cst_162 {dimension_numbers = #tpu.dot_dimension_numbers<[1], [0], [0], [1], [0, 0, 1, 1], [], []>} : vector<8x96xbf16>, vector<96x120xbf16>, vector<8x120xf32> -> vector<8x120xf32>
    %218 = arith.addf %213, %217 : vector<8x120xf32>
    %219 = vector.extract_strided_slice %194 {offsets = [40, 0], sizes = [8, 96], strides = [1, 1]} : vector<48x96xbf16> to vector<8x96xbf16>
    %c5 = arith.constant 5 : index
    %c0_163 = arith.constant 0 : index
    %c0_164 = arith.constant 0 : index
    %220 = vector.load %arg6[%c5, %c0_163, %c0_164] : memref<6x96x120xbf16, #tpu.memory_space<vmem>>, vector<1x96x120xbf16>
    %221 = vector.shape_cast %220 : vector<1x96x120xbf16> to vector<96x120xbf16>
    %cst_165 = arith.constant dense<0.000000e+00> : vector<8x120xf32>
    %222 = tpu.matmul %219, %221, %cst_165 {dimension_numbers = #tpu.dot_dimension_numbers<[1], [0], [0], [1], [0, 0, 1, 1], [], []>} : vector<8x96xbf16>, vector<96x120xbf16>, vector<8x120xf32> -> vector<8x120xf32>
    %223 = arith.addf %218, %222 : vector<8x120xf32>
    %c0_166 = arith.constant 0 : index
    %c0_167 = arith.constant 0 : index
    %224 = vector.load %arg7[%c0_166, %c0_167] : memref<1x120xf32, #tpu.memory_space<vmem>>, vector<1x120xf32>
    %225 = vector.broadcast %224 : vector<1x120xf32> to vector<8x120xf32>
    %226 = arith.addf %223, %225 : vector<8x120xf32>
    %cst_168 = arith.constant 0.000000e+00 : f32
    %227 = vector.broadcast %cst_168 : f32 to vector<8x120xf32>
    %228 = arith.maximumf %226, %227 : vector<8x120xf32>
    %229 = arith.truncf %228 : vector<8x120xf32> to vector<8x120xbf16>
    %c0_169 = arith.constant 0 : index
    %c0_170 = arith.constant 0 : index
    %230 = vector.load %arg8[%c0_169, %c0_170] : memref<120x84xbf16, #tpu.memory_space<vmem>>, vector<120x84xbf16>
    %cst_171 = arith.constant dense<0.000000e+00> : vector<8x84xf32>
    %231 = tpu.matmul %229, %230, %cst_171 {dimension_numbers = #tpu.dot_dimension_numbers<[1], [0], [0], [1], [0, 0, 1, 1], [], []>} : vector<8x120xbf16>, vector<120x84xbf16>, vector<8x84xf32> -> vector<8x84xf32>
    %c0_172 = arith.constant 0 : index
    %c0_173 = arith.constant 0 : index
    %232 = vector.load %arg9[%c0_172, %c0_173] : memref<1x84xf32, #tpu.memory_space<vmem>>, vector<1x84xf32>
    %233 = vector.broadcast %232 : vector<1x84xf32> to vector<8x84xf32>
    %234 = arith.addf %231, %233 : vector<8x84xf32>
    %cst_174 = arith.constant 0.000000e+00 : f32
    %235 = vector.broadcast %cst_174 : f32 to vector<8x84xf32>
    %236 = arith.maximumf %234, %235 : vector<8x84xf32>
    %237 = arith.truncf %236 : vector<8x84xf32> to vector<8x84xbf16>
    %c0_175 = arith.constant 0 : index
    %c0_176 = arith.constant 0 : index
    %238 = vector.load %arg10[%c0_175, %c0_176] : memref<84x10xbf16, #tpu.memory_space<vmem>>, vector<84x10xbf16>
    %cst_177 = arith.constant dense<0.000000e+00> : vector<8x10xf32>
    %239 = tpu.matmul %237, %238, %cst_177 {dimension_numbers = #tpu.dot_dimension_numbers<[1], [0], [0], [1], [0, 0, 1, 1], [], []>} : vector<8x84xbf16>, vector<84x10xbf16>, vector<8x10xf32> -> vector<8x10xf32>
    %c0_178 = arith.constant 0 : index
    %c0_179 = arith.constant 0 : index
    %240 = vector.load %arg11[%c0_178, %c0_179] : memref<1x10xf32, #tpu.memory_space<vmem>>, vector<1x10xf32>
    %241 = vector.broadcast %240 : vector<1x10xf32> to vector<8x10xf32>
    %242 = arith.addf %239, %241 : vector<8x10xf32>
    %c0_180 = arith.constant 0 : index
    %c0_181 = arith.constant 0 : index
    %243 = vector.load %arg12[%c0_180, %c0_181] : memref<8x10xf32, #tpu.memory_space<vmem>>, vector<8x10xf32>
    tpu.vector_store %arg12[%c0_180, %c0_181], %242 {strides = array<i32>} : memref<8x10xf32, #tpu.memory_space<vmem>>, vector<8x10xf32>,
    return
  }
  func.func @transform_0(%arg0: i32) -> (i32, i32, i32, i32) {
    %c0_i32 = arith.constant 0 : i32
    %c0_i32_0 = arith.constant 0 : i32
    %c0_i32_1 = arith.constant 0 : i32
    %c0_i32_2 = arith.constant 0 : i32
    return %c0_i32, %c0_i32_0, %arg0, %c0_i32_1 : i32, i32, i32, i32
  }
  func.func @transform_1(%arg0: i32) -> (i32, i32, i32) {
    %c0_i32 = arith.constant 0 : i32
    %c0_i32_0 = arith.constant 0 : i32
    %c0_i32_1 = arith.constant 0 : i32
    %c0_i32_2 = arith.constant 0 : i32
    return %c0_i32, %c0_i32_0, %c0_i32_1 : i32, i32, i32
  }
  func.func @transform_2(%arg0: i32) -> (i32, i32) {
    %c0_i32 = arith.constant 0 : i32
    %c0_i32_0 = arith.constant 0 : i32
    %c0_i32_1 = arith.constant 0 : i32
    return %c0_i32, %c0_i32_0 : i32, i32
  }
  func.func @transform_3(%arg0: i32) -> (i32, i32, i32) {
    %c0_i32 = arith.constant 0 : i32
    %c0_i32_0 = arith.constant 0 : i32
    %c0_i32_1 = arith.constant 0 : i32
    %c0_i32_2 = arith.constant 0 : i32
    return %c0_i32, %c0_i32_0, %c0_i32_1 : i32, i32, i32
  }
  func.func @transform_4(%arg0: i32) -> (i32, i32) {
    %c0_i32 = arith.constant 0 : i32
    %c0_i32_0 = arith.constant 0 : i32
    %c0_i32_1 = arith.constant 0 : i32
    return %c0_i32, %c0_i32_0 : i32, i32
  }
  func.func @transform_5(%arg0: i32) -> (i32, i32, i32) {
    %c0_i32 = arith.constant 0 : i32
    %c0_i32_0 = arith.constant 0 : i32
    %c0_i32_1 = arith.constant 0 : i32
    %c0_i32_2 = arith.constant 0 : i32
    return %c0_i32, %c0_i32_0, %c0_i32_1 : i32, i32, i32
  }
  func.func @transform_6(%arg0: i32) -> (i32, i32) {
    %c0_i32 = arith.constant 0 : i32
    %c0_i32_0 = arith.constant 0 : i32
    %c0_i32_1 = arith.constant 0 : i32
    return %c0_i32, %c0_i32_0 : i32, i32
  }
  func.func @transform_7(%arg0: i32) -> (i32, i32) {
    %c0_i32 = arith.constant 0 : i32
    %c0_i32_0 = arith.constant 0 : i32
    %c0_i32_1 = arith.constant 0 : i32
    return %c0_i32, %c0_i32_0 : i32, i32
  }
  func.func @transform_8(%arg0: i32) -> (i32, i32) {
    %c0_i32 = arith.constant 0 : i32
    %c0_i32_0 = arith.constant 0 : i32
    %c0_i32_1 = arith.constant 0 : i32
    return %c0_i32, %c0_i32_0 : i32, i32
  }
  func.func @transform_9(%arg0: i32) -> (i32, i32) {
    %c0_i32 = arith.constant 0 : i32
    %c0_i32_0 = arith.constant 0 : i32
    %c0_i32_1 = arith.constant 0 : i32
    return %c0_i32, %c0_i32_0 : i32, i32
  }
  func.func @transform_10(%arg0: i32) -> (i32, i32) {
    %c0_i32 = arith.constant 0 : i32
    %c0_i32_0 = arith.constant 0 : i32
    %c0_i32_1 = arith.constant 0 : i32
    return %c0_i32, %c0_i32_0 : i32, i32
  }
  func.func @transform_11(%arg0: i32) -> (i32, i32) {
    %c0_i32 = arith.constant 0 : i32
    %c0_i32_0 = arith.constant 0 : i32
    return %arg0, %c0_i32 : i32, i32
  }
}

</mosaic_0001>

<bundles_post_ra>
// kernel: lenet_multichannel_forward.1
= control target key start
LH: loop header
LB: loop body
LE: loop exit
PB: predicated region body
PF: predicated region fallthrough
CT: control target
= control target key end

     0   :  { %s9630_s0 = inlined_call_operand.vmem [shape: bf16[4,9,16,108], index: 0, kind: input, shape index: {}]   ;;  %s9631_s1 = inlined_call_operand.vmem [shape: bf16[5,108,192], index: 1, kind: input, shape index: {}]   ;;  %s9632_s2 = inlined_call_operand.vmem [shape: f32[1,96], index: 2, kind: input, shape index: {}]   ;;  %s9633_s3 = inlined_call_operand.vmem [shape: bf16[5,96,192], index: 3, kind: input, shape index: {}]   ;;  %s9634_s4 = inlined_call_operand.vmem [shape: f32[1,96], index: 4, kind: input, shape index: {}]   ;;  %s9635_s5 = inlined_call_operand.vmem [shape: bf16[6,96,120], index: 5, kind: input, shape index: {}]   ;;  %s9636_s6 = inlined_call_operand.vmem [shape: f32[1,120], index: 6, kind: input, shape index: {}]   ;;  %s9637_s7 = inlined_call_operand.vmem [shape: bf16[120,84], index: 7, kind: input, shape index: {}]   ;;  %s9638_s8 = inlined_call_operand.vmem [shape: f32[1,84], index: 8, kind: input, shape index: {}]   ;;  %s9639_s9 = inlined_call_operand.vmem [shape: bf16[84,10], index: 9, kind: input, shape index: {}]   ;;  %s9640_s10 = inlined_call_operand.vmem [shape: f32[1,10], index: 10, kind: input, shape index: {}]   ;;  %s9641_s11 = inlined_call_operand.hbm [shape: f32[16,10], index: 11, kind: output, shape index: {}]  }
   0x1   :  { %9667 = sst [smem:[#allocation69_spill]] %s9630_s0 }
   0x2   :  { %16 = vsyncpa [#allocation4], 0 }
   0x3   :  { %18 = vsyncpa [#allocation4 + $0x1], 0  ;;  %s6721_s17 = smov 0   ;;  %s6723_s18 = smov 0  }
   0x4   :  { %s6725_s19 = smov 0   ;;  %s6727_s20 = smov 0  }
   0x5 LB: > { %s9642_s21 = sadd.s32 4294967295, %s6654_s20   ;;  %s5497_s22 = sadd.s32 4294967294, %s6654_s20   ;;  %s6654_s20 = sphi %s6727_s20, %s9826_s20   ;;  %s6650_s19 = sphi %s6725_s19, %s9825_s19   ;;  %s6646_s18 = sphi %s6723_s18, %s9824_s18   ;;  %s6642_s17 = sphi %s6721_s17, %s9823_s17  }
   0x6   : > { %s6744_s23 = sadd.s32 1, %s6654_s20   ;;  %s31_s24 = sadd.s32 1, %s6650_s19 }
   0x7   : > { %s28_s25 = ssub.s32 %s6654_s20, %s6744_s23  ;;  %p38_p0 = scmp.ne.s32.totalorder %s6650_s19, %s6646_s18 }
   0x8   : > { %p29_p1 = scmp.eq.s32.totalorder %s28_s25, 0  ;;  %p39_p2 = scmp.eq.s32.totalorder %s6654_s20, 0 }
   0x9   : > { %p278_p3 = scmp.eq.s32.totalorder %s9642_s21, 1  ;;  %p283_p4 = scmp.ne.s32.totalorder %s6646_s18, %s6642_s17 }
   0xa   : > { %s6757_s26 = scalar_select %p29_p1, %s6650_s19, %s31_s24  }
   0xb   : > { %p40_p5 = por %p39_p2, %p38_p0  ;;  %p6759_p6 = por %p278_p3, %p38_p0 }
   0xc   : > { %p284_p7 = scmp.eq.s32.totalorder %s5497_s22, 1  ;;  %p5499_p9 = scmp.ge.s32.totalorder %s6654_s20, 2 }
   0xe   : > { %p6763_p8 = por %p284_p7, %p283_p4  ;;  %330 = sbr.rel (%p5499_p9) target bundleno = 53 (0x35), region = 56 }
  0x13   : > { %333 = sbr.rel (!%p40_p5) target bundleno = 53 (0x35), region = 60  ;;  %s335_s29 = sand.u32 (%p40_p5), 1, %s6650_s19  }
  0x14   : > { %s5500_s30 = sshll.u32 (%p40_p5), %s6654_s20, 2  ;;  %s6272_s12 = smul.u32 (%p40_p5), 144, %s335_s29 }
  0x15   : > { %s9670_s0 = sld [smem:[#allocation69_spill]] (%p40_p5) }
  0x16   : > { %s6782_s16 = scalar_lea.vmem (%p40_p5), [#allocation2], %s6272_s12 }
  0x1b   : > { %s6775_s15 = scalar_lea.vmem %s9670_s0, %s5500_s30 }
  0x1c   : > { %v356_v0 = vld [vmem:[%s6775_s15] sm:$0xf]  ;;  %v358_v1 = vld [vmem:[%s6775_s15 + $0x8] sm:$0xf]  ;;  %v360_v2 = vld [vmem:[%s6775_s15 + $0x10] sm:$0xf] }
  0x1d   : > { %v362_v3 = vld [vmem:[%s6775_s15 + $0x18] sm:$0xf]  ;;  %v364_v4 = vld [vmem:[%s6775_s15 + $0x20] sm:$0xf]  ;;  %357 = vst [vmem:[%s6782_s16] sm:$0xf] %v356_v0 }
  0x1e   : > { %359 = vst [vmem:[%s6782_s16 + $0x4] sm:$0xf] %v358_v1  ;;  %361 = vst [vmem:[%s6782_s16 + $0x8] sm:$0xf] %v360_v2  ;;  %v366_v5 = vld [vmem:[%s6775_s15 + $0x28] sm:$0xf] }
  0x1f   : > { %363 = vst [vmem:[%s6782_s16 + $0xc] sm:$0xf] %v362_v3  ;;  %365 = vst [vmem:[%s6782_s16 + $0x10] sm:$0xf] %v364_v4  ;;  %v368_v6 = vld [vmem:[%s6775_s15 + $0x30] sm:$0xf] }
  0x20   : > { %v370_v7 = vld [vmem:[%s6775_s15 + $0x38] sm:$0xf]  ;;  %367 = vst [vmem:[%s6782_s16 + $0x14] sm:$0xf] %v366_v5  ;;  %369 = vst [vmem:[%s6782_s16 + $0x18] sm:$0xf] %v368_v6 }
  0x21   : > { %371 = vst [vmem:[%s6782_s16 + $0x1c] sm:$0xf] %v370_v7  ;;  %v372_v8 = vld [vmem:[%s6775_s15 + $0x40] sm:$0xf]  ;;  %v374_v9 = vld [vmem:[%s6775_s15 + $0x48] sm:$0xf] }
  0x22   : > { %v376_v10 = vld [vmem:[%s6775_s15 + $0x50] sm:$0xf]  ;;  %373 = vst [vmem:[%s6782_s16 + $0x20] sm:$0xf] %v372_v8  ;;  %375 = vst [vmem:[%s6782_s16 + $0x24] sm:$0xf] %v374_v9 }
  0x23   : > { %377 = vst [vmem:[%s6782_s16 + $0x28] sm:$0xf] %v376_v10  ;;  %v378_v11 = vld [vmem:[%s6775_s15 + $0x58] sm:$0xf]  ;;  %v380_v12 = vld [vmem:[%s6775_s15 + $0x60] sm:$0xf] }
  0x24   : > { %v382_v13 = vld [vmem:[%s6775_s15 + $0x68] sm:$0xf]  ;;  %379 = vst [vmem:[%s6782_s16 + $0x2c] sm:$0xf] %v378_v11  ;;  %381 = vst [vmem:[%s6782_s16 + $0x30] sm:$0xf] %v380_v12 }
  0x25   : > { %383 = vst [vmem:[%s6782_s16 + $0x34] sm:$0xf] %v382_v13  ;;  %v384_v14 = vld [vmem:[%s6775_s15 + $0x70] sm:$0xf]  ;;  %v386_v15 = vld [vmem:[%s6775_s15 + $0x78] sm:$0xf] }
  0x26   : > { %v388_v16 = vld [vmem:[%s6775_s15 + $0x80] sm:$0xf]  ;;  %385 = vst [vmem:[%s6782_s16 + $0x38] sm:$0xf] %v384_v14  ;;  %387 = vst [vmem:[%s6782_s16 + $0x3c] sm:$0xf] %v386_v15 }
  0x27   : > { %389 = vst [vmem:[%s6782_s16 + $0x40] sm:$0xf] %v388_v16  ;;  %v390_v17 = vld [vmem:[%s6775_s15 + $0x88] sm:$0xf]  ;;  %v392_v18 = vld [vmem:[%s6775_s15 + $0x90] sm:$0xf] }
  0x28   : > { %v394_v19 = vld [vmem:[%s6775_s15 + $0x98] sm:$0xf]  ;;  %391 = vst [vmem:[%s6782_s16 + $0x44] sm:$0xf] %v390_v17  ;;  %393 = vst [vmem:[%s6782_s16 + $0x48] sm:$0xf] %v392_v18 }
  0x29   : > { %395 = vst [vmem:[%s6782_s16 + $0x4c] sm:$0xf] %v394_v19  ;;  %v396_v20 = vld [vmem:[%s6775_s15 + $0xa0] sm:$0xf]  ;;  %v398_v21 = vld [vmem:[%s6775_s15 + $0xa8] sm:$0xf] }
  0x2a   : > { %v400_v22 = vld [vmem:[%s6775_s15 + $0xb0] sm:$0xf]  ;;  %397 = vst [vmem:[%s6782_s16 + $0x50] sm:$0xf] %v396_v20  ;;  %399 = vst [vmem:[%s6782_s16 + $0x54] sm:$0xf] %v398_v21 }
  0x2b   : > { %401 = vst [vmem:[%s6782_s16 + $0x58] sm:$0xf] %v400_v22  ;;  %v402_v23 = vld [vmem:[%s6775_s15 + $0xb8] sm:$0xf]  ;;  %v404_v24 = vld [vmem:[%s6775_s15 + $0xc0] sm:$0xf] }
  0x2c   : > { %v406_v25 = vld [vmem:[%s6775_s15 + $0xc8] sm:$0xf]  ;;  %403 = vst [vmem:[%s6782_s16 + $0x5c] sm:$0xf] %v402_v23  ;;  %405 = vst [vmem:[%s6782_s16 + $0x60] sm:$0xf] %v404_v24 }
  0x2d   : > { %407 = vst [vmem:[%s6782_s16 + $0x64] sm:$0xf] %v406_v25  ;;  %v408_v26 = vld [vmem:[%s6775_s15 + $0xd0] sm:$0xf]  ;;  %v410_v27 = vld [vmem:[%s6775_s15 + $0xd8] sm:$0xf] }
  0x2e   : > { %v412_v28 = vld [vmem:[%s6775_s15 + $0xe0] sm:$0xf]  ;;  %409 = vst [vmem:[%s6782_s16 + $0x68] sm:$0xf] %v408_v26  ;;  %411 = vst [vmem:[%s6782_s16 + $0x6c] sm:$0xf] %v410_v27 }
  0x2f   : > { %413 = vst [vmem:[%s6782_s16 + $0x70] sm:$0xf] %v412_v28  ;;  %v414_v29 = vld [vmem:[%s6775_s15 + $0xe8] sm:$0xf]  ;;  %v416_v30 = vld [vmem:[%s6775_s15 + $0xf0] sm:$0xf] }
  0x30   : > { %v418_v31 = vld [vmem:[%s6775_s15 + $0xf8] sm:$0xf]  ;;  %415 = vst [vmem:[%s6782_s16 + $0x74] sm:$0xf] %v414_v29  ;;  %417 = vst [vmem:[%s6782_s16 + $0x78] sm:$0xf] %v416_v30 }
  0x31   : > { %419 = vst [vmem:[%s6782_s16 + $0x7c] sm:$0xf] %v418_v31  ;;  %v420_v32 = vld [vmem:[%s6775_s15 + $0x100] sm:$0xf]  ;;  %v422_v33 = vld [vmem:[%s6775_s15 + $0x108] sm:$0xf] }
  0x32   : > { %v424_v34 = vld [vmem:[%s6775_s15 + $0x110] sm:$0xf]  ;;  %421 = vst [vmem:[%s6782_s16 + $0x80] sm:$0xf] %v420_v32  ;;  %423 = vst [vmem:[%s6782_s16 + $0x84] sm:$0xf] %v422_v33 }
  0x33   : > { %425 = vst [vmem:[%s6782_s16 + $0x88] sm:$0xf] %v424_v34  ;;  %v426_v35 = vld [vmem:[%s6775_s15 + $0x118] sm:$0xf] }
  0x34   : > { %427 = vst [vmem:[%s6782_s16 + $0x8c] sm:$0xf] %v426_v35 }
  0x35 PF: > { %p5501_p10 = scmp.ge.s32.totalorder %s6654_s20, 1  ;;  %p522_p11 = scmp.lt.s32.totalorder %s6654_s20, 3 }
  0x37   : > { %p523_p12 = pnand %p5501_p10, %p522_p11 }
  0x39   : > { %526 = sbr.rel (%p523_p12) target bundleno = 1836 (0x72c), region = 101 }
  0x3e   : > { %v6856_v36 = vld [vmem:[%s9631_s1 + $0xd4] ss:$8 sps:$4 sm:$0x3f]   ;;  %vm734_vm0 = vcmask 1045504   ;;  %v9643_v39 = vmov 0   ;;  %s6940_s15 = sand.u32 1, %s6646_s18  }
  0x3f   : > { %5559 = vmatprep.subr.msk.bf16.mxu0 %vm734_vm0, %v6856_v36  ;;  %v6863_v37 = vld [vmem:[%s9631_s1 + $0x64] ss:$8 sps:$4 sm:$0x3f]   ;;  %v6321_v38 = vld [vmem:[%s9631_s1 + $0xd0] ss:$8 sps:$4 sm:$0x3f]   ;;  %773 = vmatprep.mubr.bf16.mxu0 %v9643_v39 }
  0x40   : > { %v6322_v40 = vld [vmem:[%s9631_s1 + $0x60] ss:$8 sps:$4 sm:$0x3f]   ;;  %v6875_v41 = vld [vmem:[%s9631_s1 + $0xc4] ss:$8 sps:$4 sm:$0xff]   ;;  %952 = vmatprep.mubr.bf16.mxu1 %v9643_v39  ;;  %5582 = vmatprep.subr.msk.bf16.mxu1 %vm734_vm0, %v6863_v37  ;;  %v6881_v42 = vsel %vm734_vm0, %v6321_v38, 0 }
  0x41   : > { %v6886_v43 = vld [vmem:[%s9631_s1 + $0x54] ss:$8 sps:$4 sm:$0xff]   ;;  %744 = vmatpush1.bf16.msra.mxu0 %v6881_v42  ;;  %v6890_v44 = vsel %vm734_vm0, %v6322_v40, 0  ;;  %v6895_v45 = vld [vmem:[%s9631_s1 + $0xc0] ss:$8 sps:$4 sm:$0xff]   ;;  %s6273_s12 = smul.u32 144, %s6940_s15 }
  0x42   : > { %v6900_v46 = vld [vmem:[%s9631_s1 + $0x50] ss:$8 sps:$4 sm:$0xff]   ;;  %923 = vmatpush1.bf16.msra.mxu1 %v6890_v44  ;;  %745 = vmatprep.subr.bf16.mxu0 %v6875_v41  ;;  %v6907_v47 = vld [vmem:[%s9631_s1 + $0xb4] ss:$8 sps:$4 sm:$0xff]   ;;  %v6913_v48 = vld [vmem:[%s9631_s1 + $0x44] ss:$8 sps:$4 sm:$0xff]  }
  0x43   : > { %924 = vmatprep.subr.bf16.mxu1 %v6886_v43  ;;  %v6919_v49 = vld [vmem:[%s9631_s1 + $0xb0] ss:$8 sps:$4 sm:$0xff]   ;;  %v6926_v50 = vld [vmem:[%s9631_s1 + $0x40] ss:$8 sps:$4 sm:$0xff]   ;;  %v6931_v51 = vld [vmem:[%s9631_s1 + $0xa4] ss:$8 sps:$4 sm:$0xff]  }
  0x44   : > { %v6937_v52 = vld [vmem:[%s9631_s1 + $0x34] ss:$8 sps:$4 sm:$0xff]   ;;  %v6946_v53 = vld [vmem:[%s9631_s1 + $0xa0] ss:$8 sps:$4 sm:$0xff]   ;;  %v6951_v54 = vld [vmem:[%s9631_s1 + $0x30] ss:$8 sps:$4 sm:$0xff]  }
  0x45   : > { %746 = vmatpush1.bf16.msra.mxu0 %v6895_v45  ;;  %v6958_v55 = vld [vmem:[%s9631_s1 + $0x94] ss:$8 sps:$4 sm:$0xff]   ;;  %v6965_v56 = vld [vmem:[%s9631_s1 + $0x24] ss:$8 sps:$4 sm:$0xff]   ;;  %v6971_v57 = vld [vmem:[%s9631_s1 + $0x90] ss:$8 sps:$4 sm:$0xff]  }
  0x46   : > { %925 = vmatpush1.bf16.msra.mxu1 %v6900_v46  ;;  %747 = vmatprep.subr.bf16.mxu0 %v6907_v47  ;;  %v6978_v58 = vld [vmem:[%s9631_s1 + $0x20] ss:$8 sps:$4 sm:$0xff]   ;;  %v6983_v59 = vld [vmem:[%s9631_s1 + $0x84] ss:$8 sps:$4 sm:$0xff]   ;;  %v6989_v60 = vld [vmem:[%s9631_s1 + $0x14] ss:$8 sps:$4 sm:$0xff]  }
  0x47   : > { %926 = vmatprep.subr.bf16.mxu1 %v6913_v48  ;;  %s6991_s16 = scalar_lea.vmem [#allocation2], %s6273_s12  ;;  %v6996_v61 = vld [vmem:[%s9631_s1 + $0x80] ss:$8 sps:$4 sm:$0xff]   ;;  %v7002_v62 = vld [vmem:[%s9631_s1 + $0x10] ss:$8 sps:$4 sm:$0xff]   ;;  %vm721_vm1 = vcmask 883712  }
  0x48   : > { %v7009_v63 = vld [vmem:[%s9631_s1 + $0x74] ss:$8 sps:$4 sm:$0xff]   ;;  %v7015_v0 = vld [vmem:[%s9631_s1 + $0x4] ss:$8 sps:$4 sm:$0xff]   ;;  %v7021_v1 = vld [vmem:[%s9631_s1 + $0x70] ss:$8 sps:$4 sm:$0xff]  }
  0x49   : > { %748 = vmatpush1.bf16.msra.mxu0 %v6919_v49  ;;  %v7028_v2 = vld [vmem:[%s9631_s1] ss:$8 sps:$4 sm:$0xff]   ;;  %v7207_v19 = vld [vmem:[%s9631_s1 + $0x144] ss:$8 sps:$4 sm:$0x3f]   ;;  %s6657_s14 = smov 32  }
  0x4a   : > { %927 = vmatpush1.bf16.msra.mxu1 %v6926_v50  ;;  %749 = vmatprep.subr.bf16.mxu0 %v6931_v51  ;;  %v6359_v3 = vld [vmem:[%s6991_s16 + $0x24] sm:$0xff]   ;;  %v6361_v5 = vld [vmem:[%s6991_s16 + $0x2c] sm:$0xff]   ;;  %v6363_v7 = vld [vmem:[%s6991_s16 + $0x34] sm:$0xff]   ;;  %vm3042_vm2 = vcmask 261120   ;;  %vm3458_vm3 = vcmask 785408   ;;  %vm6659_vm4 = vmmov 0  }
  0x4b   : > { %928 = vmatprep.subr.bf16.mxu1 %v6937_v52  ;;  %v6360_v4 = vld [vmem:[%s6991_s16] sm:$0xff]   ;;  %v6362_v6 = vld [vmem:[%s6991_s16 + $0x8] sm:$0xff]   ;;  %v6364_v8 = vld [vmem:[%s6991_s16 + $0x10] sm:$0xff]   ;;  %vm5271_vm5 = vcmask 1043456   ;;  %vm5372_vm6 = vcmask 1041408   ;;  %vm5267_vm7 = vcmask 982016  }
  0x4c   : > { %v6365_v9 = vld [vmem:[%s6991_s16 + $0x3c] sm:$0xff]   ;;  %v7087_v11 = vld [vmem:[%s6991_s16 + $0x48] sm:$0xff]   ;;  %v7103_v12 = vld [vmem:[%s6991_s16 + $0x50] sm:$0xff]   ;;  %vm5368_vm8 = vcmask 687104   ;;  %s5502_s30 = sshll.u32 %s6940_s15, 3  ;;  %s9822_s24 = sadd.s32 4294967295, %s6654_s20  }
  0x4d   : > { %750 = vmatpush1.bf16.msra.mxu0 %v6946_v53  ;;  %v6366_v10 = vld [vmem:[%s6991_s16 + $0x18] sm:$0xff]   ;;  %v7135_v14 = vld [vmem:[%s6991_s16 + $0x60] sm:$0xff]   ;;  %v7149_v15 = vld [vmem:[%s6991_s16 + $0x6c] sm:$0xff]   ;;  %s6079_s25 = sshll.u32 %s9822_s24, 7  ;;  %s567_s12 = scalar_lea.vmem [#allocation3], %s5502_s30  ;;  %vm5416_vm9 = vcmask 80896  }
  0x4e   : > { %929 = vmatpush1.bf16.msra.mxu1 %v6951_v54  ;;  %751 = vmatprep.subr.bf16.mxu0 %v6958_v55  ;;  %v7119_v13 = vld [vmem:[%s6991_s16 + $0x58] sm:$0xff]   ;;  %v7198_v18 = vld [vmem:[%s6991_s16 + $0x84] sm:$0xff]   ;;  %v7253_v26 = vld [vmem:[%s6991_s16 + $0xc] sm:$0xff]   ;;  %s5432_s29 = sshll.u32 %s567_s12, 4  ;;  %s9587_s21 = scalar_lea.hbm %s9641_s11, %s6079_s25  ;;  %s9589_s29 = int_to_ptr.vmem [resolvable:$true] %s5432_s29 }
  0x4f   : > { %930 = vmatprep.subr.bf16.mxu1 %v6965_v56  ;;  %v7164_v16 = vld [vmem:[%s6991_s16 + $0x74] sm:$0xff]   ;;  %v7181_v17 = vld [vmem:[%s6991_s16 + $0x7c] sm:$0xff]   ;;  %v7226_v21 = vld [vmem:[%s6991_s16 + $0x4] sm:$0xff]   ;;  %s5419_s13 = scalar_lea.sflag [#allocation4], %s6940_s15  ;;  %s6594_s22 = scalar_lea.vmem %s9589_s29, 128 }
  0x50   : > { %v6378_v20 = vld [vmem:[%s9631_s1 + $0x140] ss:$8 sps:$4 sm:$0x3f]   ;;  %v7234_v23 = vld [vmem:[%s9631_s1 + $0x134] ss:$8 sps:$4 sm:$0xff]   ;;  %p6595_p13 = scmp.ne.s32.totalorder %s9589_s29, %s6594_s22  ;;  %s6660_s30 = smov [#allocation3]  }
  0x51   : > { %752 = vmatpush1.bf16.msra.mxu0 %v6971_v57  ;;  %v1620_v22 = vsel %vm734_vm0, %v6378_v20, 0  ;;  %v7243_v24 = vld [vmem:[%s9631_s1 + $0x130] ss:$8 sps:$4 sm:$0xff]   ;;  %v6383_v25 = vld [vmem:[%s9631_s1 + $0x124] ss:$8 sps:$4 sm:$0xff]   ;;  %s6598_s24 = sshll.u32 %s6660_s30, 4  ;;  %s6599_s24 = int_to_ptr.vmem [resolvable:$false] %s6598_s24 }
  0x52   : > { %931 = vmatpush1.bf16.msra.mxu1 %v6978_v58  ;;  %753 = vmatprep.subr.bf16.mxu0 %v6983_v59  ;;  %v6385_v27 = vld [vmem:[%s9631_s1 + $0x120] ss:$8 sps:$4 sm:$0xff]   ;;  %v6386_v28 = vld [vmem:[%s9631_s1 + $0x114] ss:$8 sps:$4 sm:$0xff]   ;;  %v6388_v29 = vld [vmem:[%s9631_s1 + $0x110] ss:$8 sps:$4 sm:$0xff]   ;;  %p6596_p0 = pnand %p6595_p13, %p6759_p6  ;;  %p6601_p2 = scmp.lt.s32.totalorder %s9589_s29, %s6599_s24 }
  0x53   : > { %932 = vmatprep.subr.bf16.mxu1 %v6989_v60  ;;  %v6390_v30 = vld [vmem:[%s9631_s1 + $0x104] ss:$8 sps:$4 sm:$0xff]   ;;  %v6392_v32 = vld [vmem:[%s9631_s1 + $0x100] ss:$8 sps:$4 sm:$0xff]   ;;  %v6393_v33 = vld [vmem:[%s9631_s1 + $0xf4] ss:$8 sps:$4 sm:$0xff]  }
  0x54   : > { %v7276_v31 = vld [vmem:[%s6991_s16 + $0x14] sm:$0xff]   ;;  %p6597_p1 = pneg %p6596_p0 }
  0x55   : > { %754 = vmatpush1.bf16.msra.mxu0 %v6996_v61  ;;  %v6396_v34 = vld [vmem:[%s9631_s1 + $0xf0] ss:$8 sps:$4 sm:$0xff]   ;;  %v6397_v35 = vld [vmem:[%s9631_s1 + $0xe4] ss:$8 sps:$4 sm:$0xff]  }
  0x56   : > { %933 = vmatpush1.bf16.msra.mxu1 %v7002_v62  ;;  %755 = vmatprep.subr.bf16.mxu0 %v7009_v63  ;;  %v7337_v38 = vld [vmem:[%s9631_s1 + $0x1b4] ss:$8 sps:$4 sm:$0x3f]   ;;  %v6403_v40 = vld [vmem:[%s9631_s1 + $0x1b0] ss:$8 sps:$4 sm:$0x3f]  }
  0x57   : > { %934 = vmatprep.subr.bf16.mxu1 %v7015_v0 }
  0x59   : > { %756 = vmatpush1.bf16.msra.mxu0 %v7021_v1 }
  0x5a   : > { %935 = vmatpush1.bf16.msra.mxu1 %v7028_v2  ;;  %5591 = vmatprep.subr.msk.bf16.mxu0 %vm734_vm0, %v6856_v36 }
  0x5b   : > { %5596 = vmatprep.subr.msk.bf16.mxu1 %vm734_vm0, %v6863_v37 }
  0x5c   : > { %5560 = vmatmul.mubr.msk.bf16.vlgmr.msra.gmra.mxu0 %vm721_vm1, %v6359_v3 }
  0x5d   : > { %5583 = vmatmul.mubr.msk.bf16.vlgmr.msra.gmra.mxu1 %vm721_vm1, %v6360_v4  ;;  %1028 = vmatpush1.bf16.msra.mxu0 %v6881_v42 }
  0x5e   : > { %1101 = vmatpush1.bf16.msra.mxu1 %v6890_v44  ;;  %783 = vmatprep.mubr.bf16.mxu0 %v9643_v39 }
  0x5f   : > { %1102 = vmatprep.subr.bf16.mxu1 %v6886_v43  ;;  %962 = vmatprep.mubr.bf16.mxu1 %v9643_v39 }
  0x60   : > { %1029 = vmatprep.subr.bf16.mxu0 %v6875_v41 }
  0x61   : > { %1030 = vmatpush1.bf16.msra.mxu0 %v6895_v45 }
  0x62   : > { %1103 = vmatpush1.bf16.msra.mxu1 %v6900_v46  ;;  %1031 = vmatprep.subr.bf16.mxu0 %v6907_v47 }
  0x63   : > { %1104 = vmatprep.subr.bf16.mxu1 %v6913_v48 }
  0x64   : > { %5561 = vmatmul.mubr.msk.bf16.gmra.mxu0 %vm721_vm1, %v6361_v5 }
  0x65   : > { %5584 = vmatmul.mubr.msk.bf16.gmra.mxu1 %vm721_vm1, %v6362_v6  ;;  %1032 = vmatpush1.bf16.msra.mxu0 %v6919_v49 }
  0x66   : > { %1105 = vmatpush1.bf16.msra.mxu1 %v6926_v50  ;;  %793 = vmatprep.mubr.bf16.mxu0 %v9643_v39 }
  0x67   : > { %1106 = vmatprep.subr.bf16.mxu1 %v6937_v52  ;;  %972 = vmatprep.mubr.bf16.mxu1 %v9643_v39 }
  0x68   : > { %1033 = vmatprep.subr.bf16.mxu0 %v6931_v51 }
  0x69   : > { %1034 = vmatpush1.bf16.msra.mxu0 %v6946_v53 }
  0x6a   : > { %1107 = vmatpush1.bf16.msra.mxu1 %v6951_v54  ;;  %1035 = vmatprep.subr.bf16.mxu0 %v6958_v55 }
  0x6b   : > { %1108 = vmatprep.subr.bf16.mxu1 %v6965_v56 }
  0x6c   : > { %5562 = vmatmul.mubr.msk.bf16.gmra.mxu0 %vm721_vm1, %v6363_v7 }
  0x6d   : > { %5585 = vmatmul.mubr.msk.bf16.gmra.mxu1 %vm721_vm1, %v6364_v8  ;;  %1036 = vmatpush1.bf16.msra.mxu0 %v6971_v57 }
  0x6e   : > { %1109 = vmatpush1.bf16.msra.mxu1 %v6978_v58  ;;  %803 = vmatprep.mubr.bf16.mxu0 %v9643_v39 }
  0x6f   : > { %982 = vmatprep.mubr.bf16.mxu1 %v9643_v39  ;;  %1110 = vmatprep.subr.bf16.mxu1 %v6989_v60 }
  0x70   : > { %1037 = vmatprep.subr.bf16.mxu0 %v6983_v59 }
  0x71   : > { %1038 = vmatpush1.bf16.msra.mxu0 %v6996_v61 }
  0x72   : > { %1111 = vmatpush1.bf16.msra.mxu1 %v7002_v62  ;;  %1039 = vmatprep.subr.bf16.mxu0 %v7009_v63 }
  0x73   : > { %1112 = vmatprep.subr.bf16.mxu1 %v7015_v0 }
  0x74   : > { %5563 = vmatmul.mubr.msk.bf16.gmra.mxu0 %vm721_vm1, %v6365_v9 }
  0x75   : > { %5586 = vmatmul.mubr.msk.bf16.gmra.mxu1 %vm721_vm1, %v6366_v10  ;;  %1040 = vmatpush1.bf16.msra.mxu0 %v7021_v1 }
  0x76   : > { %1113 = vmatpush1.bf16.msra.mxu1 %v7028_v2  ;;  %1057 = vmatprep.mubr.bf16.mxu0 %v9643_v39 }
  0x77   : > { %1130 = vmatprep.mubr.bf16.mxu1 %v9643_v39  ;;  %5610 = vmatprep.subr.msk.bf16.mxu1 %vm734_vm0, %v6863_v37 }
  0x78   : > { %5605 = vmatprep.subr.msk.bf16.mxu0 %vm734_vm0, %v6856_v36 }
  0x7c   : > { %5592 = vmatmul.mubr.msk.bf16.vlgmr.msra.gmra.mxu0 %vm721_vm1, %v7087_v11 }
  0x7d   : > { %5597 = vmatmul.mubr.msk.bf16.vlgmr.msra.gmra.mxu1 %vm721_vm1, %v6359_v3  ;;  %1206 = vmatpush1.bf16.msra.mxu0 %v6881_v42 }
  0x7e   : > { %1279 = vmatpush1.bf16.msra.mxu1 %v6890_v44  ;;  %1067 = vmatprep.mubr.bf16.mxu0 %v9643_v39 }
  0x7f   : > { %1280 = vmatprep.subr.bf16.mxu1 %v6886_v43  ;;  %1140 = vmatprep.mubr.bf16.mxu1 %v9643_v39 }
  0x80   : > { %1207 = vmatprep.subr.bf16.mxu0 %v6875_v41 }
  0x81   : > { %1208 = vmatpush1.bf16.msra.mxu0 %v6895_v45 }
  0x82   : > { %1281 = vmatpush1.bf16.msra.mxu1 %v6900_v46  ;;  %1209 = vmatprep.subr.bf16.mxu0 %v6907_v47 }
  0x83   : > { %1282 = vmatprep.subr.bf16.mxu1 %v6913_v48 }
  0x84   : > { %5593 = vmatmul.mubr.msk.bf16.gmra.mxu0 %vm721_vm1, %v7103_v12 }
  0x85   : > { %5598 = vmatmul.mubr.msk.bf16.gmra.mxu1 %vm721_vm1, %v6361_v5  ;;  %1210 = vmatpush1.bf16.msra.mxu0 %v6919_v49 }
  0x86   : > { %1283 = vmatpush1.bf16.msra.mxu1 %v6926_v50  ;;  %1077 = vmatprep.mubr.bf16.mxu0 %v9643_v39 }
  0x87   : > { %1284 = vmatprep.subr.bf16.mxu1 %v6937_v52  ;;  %1150 = vmatprep.mubr.bf16.mxu1 %v9643_v39 }
  0x88   : > { %1211 = vmatprep.subr.bf16.mxu0 %v6931_v51 }
  0x89   : > { %1212 = vmatpush1.bf16.msra.mxu0 %v6946_v53 }
  0x8a   : > { %1285 = vmatpush1.bf16.msra.mxu1 %v6951_v54  ;;  %1213 = vmatprep.subr.bf16.mxu0 %v6958_v55 }
  0x8b   : > { %1286 = vmatprep.subr.bf16.mxu1 %v6965_v56 }
  0x8c   : > { %5594 = vmatmul.mubr.msk.bf16.gmra.mxu0 %vm721_vm1, %v7119_v13 }
  0x8d   : > { %5599 = vmatmul.mubr.msk.bf16.gmra.mxu1 %vm721_vm1, %v6363_v7  ;;  %1214 = vmatpush1.bf16.msra.mxu0 %v6971_v57 }
  0x8e   : > { %1287 = vmatpush1.bf16.msra.mxu1 %v6978_v58  ;;  %1087 = vmatprep.mubr.bf16.mxu0 %v9643_v39 }
  0x8f   : > { %1160 = vmatprep.mubr.bf16.mxu1 %v9643_v39  ;;  %1288 = vmatprep.subr.bf16.mxu1 %v6989_v60 }
  0x90   : > { %1215 = vmatprep.subr.bf16.mxu0 %v6983_v59 }
  0x91   : > { %1216 = vmatpush1.bf16.msra.mxu0 %v6996_v61 }
  0x92   : > { %1289 = vmatpush1.bf16.msra.mxu1 %v7002_v62  ;;  %1217 = vmatprep.subr.bf16.mxu0 %v7009_v63 }
  0x93   : > { %1290 = vmatprep.subr.bf16.mxu1 %v7015_v0 }
  0x94   : > { %5595 = vmatmul.mubr.msk.bf16.gmra.mxu0 %vm721_vm1, %v7135_v14 }
  0x95   : > { %5600 = vmatmul.mubr.msk.bf16.gmra.mxu1 %vm721_vm1, %v6365_v9  ;;  %1218 = vmatpush1.bf16.msra.mxu0 %v7021_v1 }
  0x96   : > { %1291 = vmatpush1.bf16.msra.mxu1 %v7028_v2  ;;  %1235 = vmatprep.mubr.bf16.mxu0 %v9643_v39 }
  0x97   : > { %1308 = vmatprep.mubr.bf16.mxu1 %v9643_v39  ;;  %5632 = vmatprep.subr.msk.bf16.mxu1 %vm734_vm0, %v6863_v37  ;;  %v6399_v37 = vld [vmem:[%s9631_s1 + $0xe0] ss:$8 sps:$4 sm:$0xff]  }
  0x98   : > { %5627 = vmatprep.subr.msk.bf16.mxu0 %vm734_vm0, %v6856_v36  ;;  %v7297_v36 = vld [vmem:[%s6991_s16 + $0x1c] sm:$0xff]  }
  0x9c   : > { %5606 = vmatmul.mubr.msk.bf16.vlgmr.msra.gmra.mxu0 %vm721_vm1, %v7149_v15 }
  0x9d   : > { %5611 = vmatmul.mubr.msk.bf16.vlgmr.msra.gmra.mxu1 %vm721_vm1, %v7087_v11  ;;  %1393 = vmatpush1.bf16.msra.mxu0 %v6881_v42  ;;  %v7356_v42 = vsel %vm734_vm0, %v6403_v40, 0 }
  0x9e   : > { %1466 = vmatpush1.bf16.msra.mxu1 %v6890_v44  ;;  %1245 = vmatprep.mubr.bf16.mxu0 %v9643_v39  ;;  %v7371_v44 = vld [vmem:[%s9631_s1 + $0x1a0] ss:$8 sps:$4 sm:$0xff]  }
  0x9f   : > { %1467 = vmatprep.subr.bf16.mxu1 %v6886_v43  ;;  %1318 = vmatprep.mubr.bf16.mxu1 %v9643_v39  ;;  %v7361_v43 = vld [vmem:[%s9631_s1 + $0x1a4] ss:$8 sps:$4 sm:$0xff]  }
  0xa0   : > { %1394 = vmatprep.subr.bf16.mxu0 %v6875_v41  ;;  %v7353_v41 = vld [vmem:[%s6991_s16 + $0x28] sm:$0xff]  }
  0xa1   : > { %1395 = vmatpush1.bf16.msra.mxu0 %v6895_v45  ;;  %v7378_v45 = vld [vmem:[%s9631_s1 + $0x194] ss:$8 sps:$4 sm:$0xff]  }
  0xa2   : > { %1468 = vmatpush1.bf16.msra.mxu1 %v6900_v46  ;;  %1396 = vmatprep.subr.bf16.mxu0 %v6907_v47  ;;  %v7384_v46 = vld [vmem:[%s6991_s16 + $0x30] sm:$0xff]  }
  0xa3   : > { %1469 = vmatprep.subr.bf16.mxu1 %v6913_v48  ;;  %v7390_v47 = vld [vmem:[%s9631_s1 + $0x190] ss:$8 sps:$4 sm:$0xff]   ;;  %v7398_v48 = vld [vmem:[%s9631_s1 + $0x184] ss:$8 sps:$4 sm:$0xff]  }
  0xa4   : > { %5607 = vmatmul.mubr.msk.bf16.gmra.mxu0 %vm721_vm1, %v7164_v16 }
  0xa5   : > { %5612 = vmatmul.mubr.msk.bf16.gmra.mxu1 %vm721_vm1, %v7103_v12  ;;  %1397 = vmatpush1.bf16.msra.mxu0 %v6919_v49  ;;  %v7408_v49 = vld [vmem:[%s9631_s1 + $0x180] ss:$8 sps:$4 sm:$0xff]  }
  0xa6   : > { %1470 = vmatpush1.bf16.msra.mxu1 %v6926_v50  ;;  %1255 = vmatprep.mubr.bf16.mxu0 %v9643_v39  ;;  %v7415_v50 = vld [vmem:[%s9631_s1 + $0x174] ss:$8 sps:$4 sm:$0xff]  }
  0xa7   : > { %1471 = vmatprep.subr.bf16.mxu1 %v6937_v52  ;;  %1328 = vmatprep.mubr.bf16.mxu1 %v9643_v39  ;;  %v7427_v52 = vld [vmem:[%s9631_s1 + $0x170] ss:$8 sps:$4 sm:$0xff]  }
  0xa8   : > { %1398 = vmatprep.subr.bf16.mxu0 %v6931_v51  ;;  %v7421_v51 = vld [vmem:[%s6991_s16 + $0x38] sm:$0xff]  }
  0xa9   : > { %1399 = vmatpush1.bf16.msra.mxu0 %v6946_v53  ;;  %v7435_v53 = vld [vmem:[%s9631_s1 + $0x164] ss:$8 sps:$4 sm:$0xff]  }
  0xaa   : > { %1472 = vmatpush1.bf16.msra.mxu1 %v6951_v54  ;;  %1400 = vmatprep.subr.bf16.mxu0 %v6958_v55  ;;  %v7445_v54 = vld [vmem:[%s9631_s1 + $0x160] ss:$8 sps:$4 sm:$0xff]   ;;  %v7452_v55 = vld [vmem:[%s9631_s1 + $0x154] ss:$8 sps:$4 sm:$0xff]  }
  0xab   : > { %1473 = vmatprep.subr.bf16.mxu1 %v6965_v56  ;;  %v7458_v56 = vld [vmem:[%s6991_s16 + $0x40] sm:$0xff]  }
  0xac   : > { %5608 = vmatmul.mubr.msk.bf16.gmra.mxu0 %vm721_vm1, %v7181_v17 }
  0xad   : > { %5613 = vmatmul.mubr.msk.bf16.gmra.mxu1 %vm721_vm1, %v7119_v13  ;;  %1401 = vmatpush1.bf16.msra.mxu0 %v6971_v57  ;;  %v7464_v57 = vld [vmem:[%s9631_s1 + $0x150] ss:$8 sps:$4 sm:$0xff]  }
  0xae   : > { %1474 = vmatpush1.bf16.msra.mxu1 %v6978_v58  ;;  %1265 = vmatprep.mubr.bf16.mxu0 %v9643_v39 }
  0xaf   : > { %1338 = vmatprep.mubr.bf16.mxu1 %v9643_v39  ;;  %1475 = vmatprep.subr.bf16.mxu1 %v6989_v60 }
  0xb0   : > { %1402 = vmatprep.subr.bf16.mxu0 %v6983_v59 }
  0xb1   : > { %1403 = vmatpush1.bf16.msra.mxu0 %v6996_v61 }
  0xb2   : > { %1476 = vmatpush1.bf16.msra.mxu1 %v7002_v62  ;;  %1404 = vmatprep.subr.bf16.mxu0 %v7009_v63 }
  0xb3   : > { %1477 = vmatprep.subr.bf16.mxu1 %v7015_v0 }
  0xb4   : > { %5609 = vmatmul.mubr.msk.bf16.gmra.mxu0 %vm721_vm1, %v7198_v18 }
  0xb5   : > { %5614 = vmatmul.mubr.msk.bf16.gmra.mxu1 %vm721_vm1, %v7135_v14  ;;  %1405 = vmatpush1.bf16.msra.mxu0 %v7021_v1 }
  0xb6   : > { %1478 = vmatpush1.bf16.msra.mxu1 %v7028_v2  ;;  %1422 = vmatprep.mubr.bf16.mxu0 %v9643_v39 }
  0xb7   : > { %1495 = vmatprep.mubr.bf16.mxu1 %v9643_v39  ;;  %5670 = vmatprep.subr.msk.bf16.mxu1 %vm734_vm0, %v7207_v19 }
  0xb8   : > { %5665 = vmatprep.subr.msk.bf16.mxu0 %vm734_vm0, %v7207_v19 }
  0xbc   : > { %5628 = vmatmul.mubr.msk.bf16.vlgmr.msra.gmra.mxu0 %vm721_vm1, %v7226_v21 }
  0xbd   : > { %5633 = vmatmul.mubr.msk.bf16.vlgmr.msra.gmra.mxu1 %vm721_vm1, %v7149_v15  ;;  %1628 = vmatpush1.bf16.msra.mxu0 %v1620_v22 }
  0xbe   : > { %1717 = vmatpush1.bf16.msra.mxu1 %v1620_v22  ;;  %1432 = vmatprep.mubr.bf16.mxu0 %v9643_v39 }
  0xbf   : > { %1718 = vmatprep.subr.bf16.mxu1 %v7234_v23  ;;  %1505 = vmatprep.mubr.bf16.mxu1 %v9643_v39 }
  0xc0   : > { %1629 = vmatprep.subr.bf16.mxu0 %v7234_v23 }
  0xc1   : > { %1630 = vmatpush1.bf16.msra.mxu0 %v7243_v24 }
  0xc2   : > { %1719 = vmatpush1.bf16.msra.mxu1 %v7243_v24  ;;  %1631 = vmatprep.subr.bf16.mxu0 %v6383_v25 }
  0xc3   : > { %1720 = vmatprep.subr.bf16.mxu1 %v6383_v25 }
  0xc4   : > { %5629 = vmatmul.mubr.msk.bf16.gmra.mxu0 %vm721_vm1, %v7253_v26 }
  0xc5   : > { %5634 = vmatmul.mubr.msk.bf16.gmra.mxu1 %vm721_vm1, %v7164_v16  ;;  %1632 = vmatpush1.bf16.msra.mxu0 %v6385_v27 }
  0xc6   : > { %1721 = vmatpush1.bf16.msra.mxu1 %v6385_v27  ;;  %1442 = vmatprep.mubr.bf16.mxu0 %v9643_v39 }
  0xc7   : > { %1722 = vmatprep.subr.bf16.mxu1 %v6386_v28  ;;  %1515 = vmatprep.mubr.bf16.mxu1 %v9643_v39 }
  0xc8   : > { %1633 = vmatprep.subr.bf16.mxu0 %v6386_v28 }
  0xc9   : > { %1634 = vmatpush1.bf16.msra.mxu0 %v6388_v29 }
  0xca   : > { %1723 = vmatpush1.bf16.msra.mxu1 %v6388_v29  ;;  %1635 = vmatprep.subr.bf16.mxu0 %v6390_v30 }
  0xcb   : > { %1724 = vmatprep.subr.bf16.mxu1 %v6390_v30 }
  0xcc   : > { %5630 = vmatmul.mubr.msk.bf16.gmra.mxu0 %vm721_vm1, %v7276_v31 }
  0xcd   : > { %5635 = vmatmul.mubr.msk.bf16.gmra.mxu1 %vm721_vm1, %v7181_v17  ;;  %1636 = vmatpush1.bf16.msra.mxu0 %v6392_v32 }
  0xce   : > { %1725 = vmatpush1.bf16.msra.mxu1 %v6392_v32  ;;  %1452 = vmatprep.mubr.bf16.mxu0 %v9643_v39 }
  0xcf   : > { %1525 = vmatprep.mubr.bf16.mxu1 %v9643_v39  ;;  %1726 = vmatprep.subr.bf16.mxu1 %v6393_v33 }
  0xd0   : > { %1637 = vmatprep.subr.bf16.mxu0 %v6393_v33 }
  0xd1   : > { %1638 = vmatpush1.bf16.msra.mxu0 %v6396_v34 }
  0xd2   : > { %1727 = vmatpush1.bf16.msra.mxu1 %v6396_v34  ;;  %1639 = vmatprep.subr.bf16.mxu0 %v6397_v35 }
  0xd3   : > { %1728 = vmatprep.subr.bf16.mxu1 %v6397_v35 }
  0xd4   : > { %5631 = vmatmul.mubr.msk.bf16.gmra.mxu0 %vm721_vm1, %v7297_v36 }
  0xd5   : > { %5636 = vmatmul.mubr.msk.bf16.gmra.mxu1 %vm721_vm1, %v7198_v18  ;;  %1640 = vmatpush1.bf16.msra.mxu0 %v6399_v37 }
  0xd6   : > { %1729 = vmatpush1.bf16.msra.mxu1 %v6399_v37  ;;  %1657 = vmatprep.mubr.bf16.mxu0 %v9643_v39 }
  0xd7   : > { %1746 = vmatprep.mubr.bf16.mxu1 %v9643_v39  ;;  %5692 = vmatprep.subr.msk.bf16.mxu1 %vm734_vm0, %v7207_v19 }
  0xd8   : > { %5675 = vmatprep.subr.msk.bf16.mxu0 %vm734_vm0, %v7207_v19 }
  0xdc   : > { %5666 = vmatmul.mubr.msk.bf16.vlgmr.msra.gmra.mxu0 %vm721_vm1, %v7087_v11 }
  0xdd   : > { %5671 = vmatmul.mubr.msk.bf16.vlgmr.msra.gmra.mxu1 %vm721_vm1, %v7149_v15  ;;  %1806 = vmatpush1.bf16.msra.mxu0 %v1620_v22 }
  0xde   : > { %1936 = vmatpush1.bf16.msra.mxu1 %v1620_v22  ;;  %1667 = vmatprep.mubr.bf16.mxu0 %v9643_v39 }
  0xdf   : > { %1937 = vmatprep.subr.bf16.mxu1 %v7234_v23  ;;  %1756 = vmatprep.mubr.bf16.mxu1 %v9643_v39 }
  0xe0   : > { %1807 = vmatprep.subr.bf16.mxu0 %v7234_v23 }
  0xe1   : > { %1808 = vmatpush1.bf16.msra.mxu0 %v7243_v24 }
  0xe2   : > { %1938 = vmatpush1.bf16.msra.mxu1 %v7243_v24  ;;  %1809 = vmatprep.subr.bf16.mxu0 %v6383_v25 }
  0xe3   : > { %1939 = vmatprep.subr.bf16.mxu1 %v6383_v25 }
  0xe4   : > { %5667 = vmatmul.mubr.msk.bf16.gmra.mxu0 %vm721_vm1, %v7103_v12 }
  0xe5   : > { %5672 = vmatmul.mubr.msk.bf16.gmra.mxu1 %vm721_vm1, %v7164_v16  ;;  %1810 = vmatpush1.bf16.msra.mxu0 %v6385_v27 }
  0xe6   : > { %1940 = vmatpush1.bf16.msra.mxu1 %v6385_v27  ;;  %1677 = vmatprep.mubr.bf16.mxu0 %v9643_v39 }
  0xe7   : > { %1941 = vmatprep.subr.bf16.mxu1 %v6386_v28  ;;  %1766 = vmatprep.mubr.bf16.mxu1 %v9643_v39 }
  0xe8   : > { %1811 = vmatprep.subr.bf16.mxu0 %v6386_v28 }
  0xe9   : > { %1812 = vmatpush1.bf16.msra.mxu0 %v6388_v29 }
  0xea   : > { %1942 = vmatpush1.bf16.msra.mxu1 %v6388_v29  ;;  %1813 = vmatprep.subr.bf16.mxu0 %v6390_v30 }
  0xeb   : > { %1943 = vmatprep.subr.bf16.mxu1 %v6390_v30 }
  0xec   : > { %5668 = vmatmul.mubr.msk.bf16.gmra.mxu0 %vm721_vm1, %v7119_v13 }
  0xed   : > { %5673 = vmatmul.mubr.msk.bf16.gmra.mxu1 %vm721_vm1, %v7181_v17  ;;  %1814 = vmatpush1.bf16.msra.mxu0 %v6392_v32 }
  0xee   : > { %1944 = vmatpush1.bf16.msra.mxu1 %v6392_v32  ;;  %1687 = vmatprep.mubr.bf16.mxu0 %v9643_v39 }
  0xef   : > { %1776 = vmatprep.mubr.bf16.mxu1 %v9643_v39  ;;  %1945 = vmatprep.subr.bf16.mxu1 %v6393_v33 }
  0xf0   : > { %1815 = vmatprep.subr.bf16.mxu0 %v6393_v33  ;;  %v7548_v33 = vld [vmem:[%s9631_s1 + $0x224] ss:$8 sps:$4 sm:$0x3f]  }
  0xf1   : > { %1816 = vmatpush1.bf16.msra.mxu0 %v6396_v34 }
  0xf2   : > { %1946 = vmatpush1.bf16.msra.mxu1 %v6396_v34  ;;  %1817 = vmatprep.subr.bf16.mxu0 %v6397_v35 }
  0xf3   : > { %1947 = vmatprep.subr.bf16.mxu1 %v6397_v35 }
  0xf4   : > { %5669 = vmatmul.mubr.msk.bf16.gmra.mxu0 %vm721_vm1, %v7135_v14 }
  0xf5   : > { %5674 = vmatmul.mubr.msk.bf16.gmra.mxu1 %vm721_vm1, %v7198_v18  ;;  %1818 = vmatpush1.bf16.msra.mxu0 %v6399_v37 }
  0xf6   : > { %1948 = vmatpush1.bf16.msra.mxu1 %v6399_v37  ;;  %1835 = vmatprep.mubr.bf16.mxu0 %v9643_v39 }
  0xf7   : > { %1965 = vmatprep.mubr.bf16.mxu1 %v9643_v39  ;;  %5730 = vmatprep.subr.msk.bf16.mxu1 %vm734_vm0, %v7337_v38 }
  0xf8   : > { %5725 = vmatprep.subr.msk.bf16.mxu0 %vm734_vm0, %v7337_v38 }
  0xfc   : > { %5676 = vmatmul.mubr.msk.bf16.vlgmr.msra.gmra.mxu0 %vm721_vm1, %v7226_v21 }
  0xfd   : > { %5693 = vmatmul.mubr.msk.bf16.vlgmr.msra.gmra.mxu1 %vm721_vm1, %v7353_v41  ;;  %2114 = vmatpush1.bf16.msra.mxu0 %v7356_v42 }
  0xfe   : > { %2203 = vmatpush1.bf16.msra.mxu1 %v7356_v42  ;;  %1845 = vmatprep.mubr.bf16.mxu0 %v9643_v39 }
  0xff   : > { %2204 = vmatprep.subr.bf16.mxu1 %v7361_v43  ;;  %1975 = vmatprep.mubr.bf16.mxu1 %v9643_v39 }
 0x100   : > { %2115 = vmatprep.subr.bf16.mxu0 %v7361_v43 }
 0x101   : > { %2116 = vmatpush1.bf16.msra.mxu0 %v7371_v44 }
 0x102   : > { %2205 = vmatpush1.bf16.msra.mxu1 %v7371_v44  ;;  %2117 = vmatprep.subr.bf16.mxu0 %v7378_v45 }
 0x103   : > { %2206 = vmatprep.subr.bf16.mxu1 %v7378_v45 }
 0x104   : > { %5677 = vmatmul.mubr.msk.bf16.gmra.mxu0 %vm721_vm1, %v7253_v26 }
 0x105   : > { %5694 = vmatmul.mubr.msk.bf16.gmra.mxu1 %vm721_vm1, %v7384_v46  ;;  %2118 = vmatpush1.bf16.msra.mxu0 %v7390_v47 }
 0x106   : > { %2207 = vmatpush1.bf16.msra.mxu1 %v7390_v47  ;;  %1855 = vmatprep.mubr.bf16.mxu0 %v9643_v39 }
 0x107   : > { %2208 = vmatprep.subr.bf16.mxu1 %v7398_v48  ;;  %1985 = vmatprep.mubr.bf16.mxu1 %v9643_v39 }
 0x108   : > { %2119 = vmatprep.subr.bf16.mxu0 %v7398_v48 }
 0x109   : > { %2120 = vmatpush1.bf16.msra.mxu0 %v7408_v49 }
 0x10a   : > { %2209 = vmatpush1.bf16.msra.mxu1 %v7408_v49  ;;  %2121 = vmatprep.subr.bf16.mxu0 %v7415_v50 }
 0x10b   : > { %2210 = vmatprep.subr.bf16.mxu1 %v7415_v50 }
 0x10c   : > { %5678 = vmatmul.mubr.msk.bf16.gmra.mxu0 %vm721_vm1, %v7276_v31 }
 0x10d   : > { %5695 = vmatmul.mubr.msk.bf16.gmra.mxu1 %vm721_vm1, %v7421_v51  ;;  %2122 = vmatpush1.bf16.msra.mxu0 %v7427_v52 }
 0x10e   : > { %2211 = vmatpush1.bf16.msra.mxu1 %v7427_v52  ;;  %1865 = vmatprep.mubr.bf16.mxu0 %v9643_v39 }
 0x10f   : > { %1995 = vmatprep.mubr.bf16.mxu1 %v9643_v39  ;;  %2212 = vmatprep.subr.bf16.mxu1 %v7435_v53 }
 0x110   : > { %2123 = vmatprep.subr.bf16.mxu0 %v7435_v53 }
 0x111   : > { %2124 = vmatpush1.bf16.msra.mxu0 %v7445_v54 }
 0x112   : > { %2213 = vmatpush1.bf16.msra.mxu1 %v7445_v54  ;;  %2125 = vmatprep.subr.bf16.mxu0 %v7452_v55 }
 0x113   : > { %2214 = vmatprep.subr.bf16.mxu1 %v7452_v55 }
 0x114   : > { %5679 = vmatmul.mubr.msk.bf16.gmra.mxu0 %vm721_vm1, %v7297_v36 }
 0x115   : > { %5696 = vmatmul.mubr.msk.bf16.gmra.mxu1 %vm721_vm1, %v7458_v56  ;;  %2126 = vmatpush1.bf16.msra.mxu0 %v7464_v57 }
 0x116   : > { %2215 = vmatpush1.bf16.msra.mxu1 %v7464_v57  ;;  %2143 = vmatprep.mubr.bf16.mxu0 %v9643_v39 }
 0x117   : > { %2232 = vmatprep.mubr.bf16.mxu1 %v9643_v39  ;;  %5752 = vmatprep.subr.msk.bf16.mxu1 %vm734_vm0, %v7337_v38 }
 0x118   : > { %5735 = vmatprep.subr.msk.bf16.mxu0 %vm734_vm0, %v7337_v38 }
 0x11c   : > { %v775_v58 = vpop.f32.mrf.mxu0  ;;  %5726 = vmatmul.mubr.msk.bf16.vlgmr.msra.gmra.mxu0 %vm721_vm1, %v7149_v15 }
 0x11d   : > { %v954_v59 = vpop.f32.mrf.mxu1  ;;  %5731 = vmatmul.mubr.msk.bf16.vlgmr.msra.gmra.mxu1 %vm721_vm1, %v7226_v21  ;;  %2292 = vmatpush1.bf16.msra.mxu0 %v7356_v42 }
 0x11e   : > { %v7486_v60 = vadd.f32 %v954_v59, %v775_v58  ;;  %2422 = vmatpush1.bf16.msra.mxu1 %v7356_v42  ;;  %v777_v61 = vpop.f32.mrf.mxu0  ;;  %2153 = vmatprep.mubr.bf16.mxu0 %v9643_v39  ;;  %v6428_v42 = vld [vmem:[%s9631_s1 + $0x220] ss:$8 sps:$4 sm:$0x3f]   ;;  %v7594_v58 = vld [vmem:[%s9631_s1 + $0x210] ss:$8 sps:$4 sm:$0xff]  }
 0x11f   : > { %v956_v62 = vpop.f32.mrf.mxu1  ;;  %2423 = vmatprep.subr.bf16.mxu1 %v7361_v43  ;;  %2242 = vmatprep.mubr.bf16.mxu1 %v9643_v39 }
 0x120   : > { %v7492_v63 = vadd.f32 %v956_v62, %v777_v61  ;;  %v779_v0 = vpop.f32.mrf.mxu0  ;;  %2293 = vmatprep.subr.bf16.mxu0 %v7361_v43  ;;  %v7603_v62 = vld [vmem:[%s9631_s1 + $0x204] ss:$8 sps:$4 sm:$0xff]  }
 0x121   : > { %v958_v1 = vpop.f32.mrf.mxu1  ;;  %2294 = vmatpush1.bf16.msra.mxu0 %v7371_v44 }
 0x122   : > { %v7496_v2 = vadd.f32 %v958_v1, %v779_v0  ;;  %v781_v3 = vpop.f32.mrf.mxu0  ;;  %2424 = vmatpush1.bf16.msra.mxu1 %v7371_v44  ;;  %2295 = vmatprep.subr.bf16.mxu0 %v7378_v45 }
 0x123   : > { %v960_v4 = vpop.f32.mrf.mxu1  ;;  %2425 = vmatprep.subr.bf16.mxu1 %v7378_v45 }
 0x124   : > { %v7501_v5 = vadd.f32 %v960_v4, %v781_v3  ;;  %v785_v6 = vpop.f32.mrf.mxu0  ;;  %5727 = vmatmul.mubr.msk.bf16.gmra.mxu0 %vm721_vm1, %v7164_v16 }
 0x125   : > { %v964_v7 = vpop.f32.mrf.mxu1  ;;  %5732 = vmatmul.mubr.msk.bf16.gmra.mxu1 %vm721_vm1, %v7253_v26  ;;  %2296 = vmatpush1.bf16.msra.mxu0 %v7390_v47 }
 0x126   : > { %v7508_v8 = vadd.f32 %v964_v7, %v785_v6  ;;  %v787_v9 = vpop.f32.mrf.mxu0  ;;  %2426 = vmatpush1.bf16.msra.mxu1 %v7390_v47  ;;  %2163 = vmatprep.mubr.bf16.mxu0 %v9643_v39  ;;  %v7572_v47 = vld [vmem:[%s6991_s16 + $0x4c] sm:$0xff]   ;;  %v7611_v6 = vld [vmem:[%s6991_s16 + $0x54] sm:$0xff]  }
 0x127   : > { %v966_v10 = vpop.f32.mrf.mxu1  ;;  %2427 = vmatprep.subr.bf16.mxu1 %v7398_v48  ;;  %2252 = vmatprep.mubr.bf16.mxu1 %v9643_v39  ;;  %v7617_v7 = vld [vmem:[%s9631_s1 + $0x200] ss:$8 sps:$4 sm:$0xff]  }
 0x128   : > { %v7514_v11 = vadd.f32 %v966_v10, %v787_v9  ;;  %v789_v12 = vpop.f32.mrf.mxu0  ;;  %2297 = vmatprep.subr.bf16.mxu0 %v7398_v48 }
 0x129   : > { %v968_v13 = vpop.f32.mrf.mxu1  ;;  %2298 = vmatpush1.bf16.msra.mxu0 %v7408_v49 }
 0x12a   : > { %v7518_v14 = vadd.f32 %v968_v13, %v789_v12  ;;  %v791_v15 = vpop.f32.mrf.mxu0  ;;  %2428 = vmatpush1.bf16.msra.mxu1 %v7408_v49  ;;  %2299 = vmatprep.subr.bf16.mxu0 %v7415_v50  ;;  %v7627_v13 = vld [vmem:[%s9631_s1 + $0x1f4] ss:$8 sps:$4 sm:$0xff]  }
 0x12b   : > { %v970_v16 = vpop.f32.mrf.mxu1  ;;  %2429 = vmatprep.subr.bf16.mxu1 %v7415_v50  ;;  %v7577_v50 = vsel %vm734_vm0, %v6428_v42, 0 }
 0x12c   : > { %v7523_v19 = vadd.f32 %v970_v16, %v791_v15  ;;  %v795_v20 = vpop.f32.mrf.mxu0  ;;  %5728 = vmatmul.mubr.msk.bf16.gmra.mxu0 %vm721_vm1, %v7181_v17 }
 0x12d   : > { %v974_v22 = vpop.f32.mrf.mxu1  ;;  %5733 = vmatmul.mubr.msk.bf16.gmra.mxu1 %vm721_vm1, %v7276_v31  ;;  %2300 = vmatpush1.bf16.msra.mxu0 %v7427_v52 }
 0x12e   : > { %9671 = vst [vmem:[#allocation6_spill] sm:$0xff] %v7523_v19  ;;  %v7530_v23 = vadd.f32 %v974_v22, %v795_v20  ;;  %v797_v24 = vpop.f32.mrf.mxu0  ;;  %2430 = vmatpush1.bf16.msra.mxu1 %v7427_v52  ;;  %2173 = vmatprep.mubr.bf16.mxu0 %v9643_v39  ;;  %v7639_v22 = vld [vmem:[%s9631_s1 + $0x1f0] ss:$8 sps:$4 sm:$0xff]  }
 0x12f   : > { %v976_v25 = vpop.f32.mrf.mxu1  ;;  %2262 = vmatprep.mubr.bf16.mxu1 %v9643_v39  ;;  %2431 = vmatprep.subr.bf16.mxu1 %v7435_v53 }
 0x130   : > { %v7536_v27 = vadd.f32 %v976_v25, %v797_v24  ;;  %v799_v17 = vpop.f32.mrf.mxu0  ;;  %2301 = vmatprep.subr.bf16.mxu0 %v7435_v53  ;;  %v7582_v53 = vld [vmem:[%s9631_s1 + $0x214] ss:$8 sps:$4 sm:$0xff]  }
 0x131   : > { %v978_v28 = vpop.f32.mrf.mxu1  ;;  %2302 = vmatpush1.bf16.msra.mxu0 %v7445_v54 }
 0x132   : > { %v7540_v29 = vadd.f32 %v978_v28, %v799_v17  ;;  %v801_v30 = vpop.f32.mrf.mxu0  ;;  %2432 = vmatpush1.bf16.msra.mxu1 %v7445_v54  ;;  %2303 = vmatprep.subr.bf16.mxu0 %v7452_v55  ;;  %v7648_v17 = vld [vmem:[%s9631_s1 + $0x1e4] ss:$8 sps:$4 sm:$0xff]  }
 0x133   : > { %v980_v32 = vpop.f32.mrf.mxu1  ;;  %2433 = vmatprep.subr.bf16.mxu1 %v7452_v55 }
 0x134   : > { %v7550_v34 = vadd.f32 %v980_v32, %v801_v30  ;;  %v805_v35 = vpop.f32.mrf.mxu0  ;;  %5729 = vmatmul.mubr.msk.bf16.gmra.mxu0 %vm721_vm1, %v7198_v18 }
 0x135   : > { %v984_v37 = vpop.f32.mrf.mxu1  ;;  %5734 = vmatmul.mubr.msk.bf16.gmra.mxu1 %vm721_vm1, %v7297_v36  ;;  %2304 = vmatpush1.bf16.msra.mxu0 %v7464_v57 }
 0x136   : > { %9672 = vst [vmem:[#allocation7_spill] sm:$0xff] %v7550_v34  ;;  %v7557_v38 = vadd.f32 %v984_v37, %v805_v35  ;;  %v807_v40 = vpop.f32.mrf.mxu0  ;;  %2434 = vmatpush1.bf16.msra.mxu1 %v7464_v57  ;;  %2321 = vmatprep.mubr.bf16.mxu0 %v9643_v39  ;;  %v7656_v37 = vld [vmem:[%s6991_s16 + $0x5c] sm:$0xff]  }
 0x137   : > { %v986_v43 = vpop.f32.mrf.mxu1  ;;  %2451 = vmatprep.mubr.bf16.mxu1 %v9643_v39  ;;  %5790 = vmatprep.subr.msk.bf16.mxu1 %vm734_vm0, %v7548_v33 }
 0x138   : > { %v7567_v18 = vadd.f32 %v986_v43, %v807_v40  ;;  %v809_v44 = vpop.f32.mrf.mxu0  ;;  %5785 = vmatprep.subr.msk.bf16.mxu0 %vm734_vm0, %v7548_v33  ;;  %v7662_v40 = vld [vmem:[%s9631_s1 + $0x1e0] ss:$8 sps:$4 sm:$0xff]  }
 0x139   : > { %v988_v45 = vpop.f32.mrf.mxu1 }
 0x13a   : > { %v7574_v48 = vadd.f32 %v988_v45, %v809_v44  ;;  %v811_v49 = vpop.f32.mrf.mxu0  ;;  %v7672_v45 = vld [vmem:[%s9631_s1 + $0x1d4] ss:$8 sps:$4 sm:$0xff]  }
 0x13b   : > { %v990_v52 = vpop.f32.mrf.mxu1 }
 0x13c   : > { %v7584_v54 = vadd.f32 %v990_v52, %v811_v49  ;;  %v1059_v55 = vpop.f32.mrf.mxu0  ;;  %5736 = vmatmul.mubr.msk.bf16.vlgmr.msra.gmra.mxu0 %vm721_vm1, %v7353_v41 }
 0x13d   : > { %v1132_v57 = vpop.f32.mrf.mxu1  ;;  %5753 = vmatmul.mubr.msk.bf16.vlgmr.msra.gmra.mxu1 %vm721_vm1, %v7572_v47  ;;  %2600 = vmatpush1.bf16.msra.mxu0 %v7577_v50 }
 0x13e   : > { %9673 = vst [vmem:[#allocation8_spill] sm:$0xff] %v7584_v54  ;;  %v7596_v59 = vadd.f32 %v1132_v57, %v1059_v55  ;;  %2689 = vmatpush1.bf16.msra.mxu1 %v7577_v50  ;;  %v1061_v61 = vpop.f32.mrf.mxu0  ;;  %2331 = vmatprep.mubr.bf16.mxu0 %v9643_v39  ;;  %v7684_v57 = vld [vmem:[%s9631_s1 + $0x1d0] ss:$8 sps:$4 sm:$0xff]  }
 0x13f   : > { %v1134_v0 = vpop.f32.mrf.mxu1  ;;  %2690 = vmatprep.subr.bf16.mxu1 %v7582_v53  ;;  %2461 = vmatprep.mubr.bf16.mxu1 %v9643_v39 }
 0x140   : > { %v7607_v1 = vadd.f32 %v1134_v0, %v1061_v61  ;;  %v1063_v3 = vpop.f32.mrf.mxu0  ;;  %2601 = vmatprep.subr.bf16.mxu0 %v7582_v53 }
 0x141   : > { %v1136_v4 = vpop.f32.mrf.mxu1  ;;  %2602 = vmatpush1.bf16.msra.mxu0 %v7594_v58 }
 0x142   : > { %v7619_v9 = vadd.f32 %v1136_v4, %v1063_v3  ;;  %v1065_v10 = vpop.f32.mrf.mxu0  ;;  %2691 = vmatpush1.bf16.msra.mxu1 %v7594_v58  ;;  %2603 = vmatprep.subr.bf16.mxu0 %v7603_v62  ;;  %v7693_v3 = vld [vmem:[%s9631_s1 + $0x1c4] ss:$8 sps:$4 sm:$0xff]  }
 0x143   : > { %v1138_v12 = vpop.f32.mrf.mxu1  ;;  %2692 = vmatprep.subr.bf16.mxu1 %v7603_v62 }
 0x144   : > { %v7629_v15 = vadd.f32 %v1138_v12, %v1065_v10  ;;  %v1069_v16 = vpop.f32.mrf.mxu0  ;;  %5737 = vmatmul.mubr.msk.bf16.gmra.mxu0 %vm721_vm1, %v7384_v46 }
 0x145   : > { %v1142_v20 = vpop.f32.mrf.mxu1  ;;  %5754 = vmatmul.mubr.msk.bf16.gmra.mxu1 %vm721_vm1, %v7611_v6  ;;  %2604 = vmatpush1.bf16.msra.mxu0 %v7617_v7 }
 0x146   : > { %9674 = vst [vmem:[#allocation9_spill] sm:$0xff] %v7629_v15  ;;  %v7641_v24 = vadd.f32 %v1142_v20, %v1069_v16  ;;  %v1071_v25 = vpop.f32.mrf.mxu0  ;;  %2693 = vmatpush1.bf16.msra.mxu1 %v7617_v7  ;;  %2341 = vmatprep.mubr.bf16.mxu0 %v9643_v39  ;;  %v7701_v20 = vld [vmem:[%s6991_s16 + $0x64] sm:$0xff]  }
 0x147   : > { %v1144_v28 = vpop.f32.mrf.mxu1  ;;  %2694 = vmatprep.subr.bf16.mxu1 %v7627_v13  ;;  %2471 = vmatprep.mubr.bf16.mxu1 %v9643_v39 }
 0x148   : > { %v7652_v30 = vadd.f32 %v1144_v28, %v1071_v25  ;;  %v1073_v32 = vpop.f32.mrf.mxu0  ;;  %2605 = vmatprep.subr.bf16.mxu0 %v7627_v13  ;;  %v7707_v25 = vld [vmem:[%s9631_s1 + $0x1c0] ss:$8 sps:$4 sm:$0xff]  }
 0x149   : > { %v1146_v35 = vpop.f32.mrf.mxu1  ;;  %2606 = vmatpush1.bf16.msra.mxu0 %v7639_v22 }
 0x14a   : > { %v7664_v42 = vadd.f32 %v1146_v35, %v1073_v32  ;;  %v1075_v43 = vpop.f32.mrf.mxu0  ;;  %2695 = vmatpush1.bf16.msra.mxu1 %v7639_v22  ;;  %2607 = vmatprep.subr.bf16.mxu0 %v7648_v17 }
 0x14b   : > { %v1148_v44 = vpop.f32.mrf.mxu1  ;;  %2696 = vmatprep.subr.bf16.mxu1 %v7648_v17 }
 0x14c   : > { %v7674_v49 = vadd.f32 %v1148_v44, %v1075_v43  ;;  %v1079_v52 = vpop.f32.mrf.mxu0  ;;  %5738 = vmatmul.mubr.msk.bf16.gmra.mxu0 %vm721_vm1, %v7421_v51 }
 0x14d   : > { %v1152_v55 = vpop.f32.mrf.mxu1  ;;  %5755 = vmatmul.mubr.msk.bf16.gmra.mxu1 %vm721_vm1, %v7656_v37  ;;  %2608 = vmatpush1.bf16.msra.mxu0 %v7662_v40 }
 0x14e   : > { %9675 = vst [vmem:[#allocation10_spill] sm:$0xff] %v7674_v49  ;;  %v7686_v61 = vadd.f32 %v1152_v55, %v1079_v52  ;;  %v1081_v0 = vpop.f32.mrf.mxu0  ;;  %2697 = vmatpush1.bf16.msra.mxu1 %v7662_v40  ;;  %2351 = vmatprep.mubr.bf16.mxu0 %v9643_v39 }
 0x14f   : > { %v1154_v4 = vpop.f32.mrf.mxu1  ;;  %2481 = vmatprep.mubr.bf16.mxu1 %v9643_v39  ;;  %2698 = vmatprep.subr.bf16.mxu1 %v7672_v45 }
 0x150   : > { %v7697_v10 = vadd.f32 %v1154_v4, %v1081_v0  ;;  %v1083_v12 = vpop.f32.mrf.mxu0  ;;  %2609 = vmatprep.subr.bf16.mxu0 %v7672_v45 }
 0x151   : > { %v1156_v16 = vpop.f32.mrf.mxu1  ;;  %2610 = vmatpush1.bf16.msra.mxu0 %v7684_v57 }
 0x152   : > { %v7709_v28 = vadd.f32 %v1156_v16, %v1083_v12  ;;  %v1085_v32 = vpop.f32.mrf.mxu0  ;;  %2699 = vmatpush1.bf16.msra.mxu1 %v7684_v57  ;;  %2611 = vmatprep.subr.bf16.mxu0 %v7693_v3 }
 0x153   : > { %v1158_v35 = vpop.f32.mrf.mxu1  ;;  %2700 = vmatprep.subr.bf16.mxu1 %v7693_v3 }
 0x154   : > { %v7714_v43 = vadd.f32 %v1158_v35, %v1085_v32  ;;  %v1089_v44 = vpop.f32.mrf.mxu0  ;;  %5739 = vmatmul.mubr.msk.bf16.gmra.mxu0 %vm721_vm1, %v7458_v56 }
 0x155   : > { %v1162_v52 = vpop.f32.mrf.mxu1  ;;  %5756 = vmatmul.mubr.msk.bf16.gmra.mxu1 %vm721_vm1, %v7701_v20  ;;  %2612 = vmatpush1.bf16.msra.mxu0 %v7707_v25 }
 0x156   : > { %9676 = vst [vmem:[#allocation11_spill] sm:$0xff] %v7714_v43  ;;  %v7721_v55 = vadd.f32 %v1162_v52, %v1089_v44  ;;  %v1091_v0 = vpop.f32.mrf.mxu0  ;;  %2701 = vmatpush1.bf16.msra.mxu1 %v7707_v25  ;;  %2629 = vmatprep.mubr.bf16.mxu0 %v9643_v39 }
 0x157   : > { %v1164_v4 = vpop.f32.mrf.mxu1  ;;  %2718 = vmatprep.mubr.bf16.mxu1 %v9643_v39  ;;  %5795 = vmatprep.subr.msk.bf16.mxu0 %vm734_vm0, %v7548_v33 }
 0x158   : > { %v7728_v12 = vadd.f32 %v1164_v4, %v1091_v0  ;;  %v1093_v16 = vpop.f32.mrf.mxu0  ;;  %5812 = vmatprep.subr.msk.bf16.mxu1 %vm734_vm0, %v7548_v33  ;;  %v9678_v4 = vmov 0  }
 0x159   : > { %v1166_v32 = vpop.f32.mrf.mxu1 }
 0x15a   : > { %v7732_v35 = vadd.f32 %v1166_v32, %v1093_v16  ;;  %v1095_v44 = vpop.f32.mrf.mxu0 }
 0x15b   : > { %v1168_v52 = vpop.f32.mrf.mxu1 }
 0x15c   : > { %v7734_v54 = vadd.f32 %v1168_v52, %v1095_v44  ;;  %v1237_v43 = vpop.f32.mrf.mxu0  ;;  %5786 = vmatmul.mubr.msk.bf16.vlgmr.msra.gmra.mxu0 %vm721_vm1, %v7226_v21 }
 0x15d   : > { %v1310_v39 = vpop.f32.mrf.mxu1  ;;  %5791 = vmatmul.mubr.msk.bf16.vlgmr.msra.gmra.mxu1 %vm721_vm1, %v7353_v41  ;;  %2778 = vmatpush1.bf16.msra.mxu0 %v7577_v50 }
 0x15e   : > { %9677 = vst [vmem:[#allocation12_spill] sm:$0xff] %v7734_v54  ;;  %v7741_v0 = vadd.f32 %v1310_v39, %v1237_v43  ;;  %v1239_v33 = vpop.f32.mrf.mxu0  ;;  %2908 = vmatpush1.bf16.msra.mxu1 %v7577_v50  ;;  %2639 = vmatprep.mubr.bf16.mxu0 %v9678_v4  ;;  %v6452_v54 = vld [vmem:[%s6991_s16 + $0x80] sm:$0xff]  }
 0x15f   : > { %v1312_v16 = vpop.f32.mrf.mxu1  ;;  %2728 = vmatprep.mubr.bf16.mxu1 %v9678_v4  ;;  %2779 = vmatprep.subr.bf16.mxu0 %v7582_v53 }
 0x160   : > { %v7747_v32 = vadd.f32 %v1312_v16, %v1239_v33  ;;  %v1241_v21 = vpop.f32.mrf.mxu0  ;;  %2909 = vmatprep.subr.bf16.mxu1 %v7582_v53 }
 0x161   : > { %v1314_v41 = vpop.f32.mrf.mxu1  ;;  %2780 = vmatpush1.bf16.msra.mxu0 %v7594_v58 }
 0x162   : > { %v7751_v39 = vadd.f32 %v1314_v41, %v1241_v21  ;;  %v1243_v43 = vpop.f32.mrf.mxu0  ;;  %2910 = vmatpush1.bf16.msra.mxu1 %v7594_v58  ;;  %2781 = vmatprep.subr.bf16.mxu0 %v7603_v62 }
 0x163   : > { %v1316_v50 = vpop.f32.mrf.mxu1  ;;  %2911 = vmatprep.subr.bf16.mxu1 %v7603_v62 }
 0x164   : > { %v7756_v44 = vadd.f32 %v1316_v50, %v1243_v43  ;;  %v1247_v52 = vpop.f32.mrf.mxu0  ;;  %5787 = vmatmul.mubr.msk.bf16.gmra.mxu0 %vm721_vm1, %v7253_v26 }
 0x165   : > { %v1320_v53 = vpop.f32.mrf.mxu1  ;;  %5792 = vmatmul.mubr.msk.bf16.gmra.mxu1 %vm721_vm1, %v7384_v46  ;;  %2782 = vmatpush1.bf16.msra.mxu0 %v7617_v7 }
 0x166   : > { %9679 = vst [vmem:[#allocation13_spill] sm:$0xff] %v7756_v44  ;;  %v7763_v33 = vadd.f32 %v1320_v53, %v1247_v52  ;;  %v1249_v58 = vpop.f32.mrf.mxu0  ;;  %2912 = vmatpush1.bf16.msra.mxu1 %v7617_v7  ;;  %2649 = vmatprep.mubr.bf16.mxu0 %v9678_v4 }
 0x167   : > { %v1322_v62 = vpop.f32.mrf.mxu1  ;;  %2738 = vmatprep.mubr.bf16.mxu1 %v9678_v4  ;;  %2783 = vmatprep.subr.bf16.mxu0 %v7627_v13 }
 0x168   : > { %v7769_v16 = vadd.f32 %v1322_v62, %v1249_v58  ;;  %v1251_v26 = vpop.f32.mrf.mxu0  ;;  %2913 = vmatprep.subr.bf16.mxu1 %v7627_v13 }
 0x169   : > { %v1324_v46 = vpop.f32.mrf.mxu1  ;;  %2784 = vmatpush1.bf16.msra.mxu0 %v7639_v22 }
 0x16a   : > { %v7773_v21 = vadd.f32 %v1324_v46, %v1251_v26  ;;  %v1253_v41 = vpop.f32.mrf.mxu0  ;;  %2914 = vmatpush1.bf16.msra.mxu1 %v7639_v22  ;;  %2785 = vmatprep.subr.bf16.mxu0 %v7648_v17 }
 0x16b   : > { %v1326_v7 = vpop.f32.mrf.mxu1  ;;  %2915 = vmatprep.subr.bf16.mxu1 %v7648_v17 }
 0x16c   : > { %v7778_v43 = vadd.f32 %v1326_v7, %v1253_v41  ;;  %v1257_v50 = vpop.f32.mrf.mxu0  ;;  %5788 = vmatmul.mubr.msk.bf16.gmra.mxu0 %vm721_vm1, %v7276_v31 }
 0x16d   : > { %v1330_v13 = vpop.f32.mrf.mxu1  ;;  %5793 = vmatmul.mubr.msk.bf16.gmra.mxu1 %vm721_vm1, %v7421_v51  ;;  %2786 = vmatpush1.bf16.msra.mxu0 %v7662_v40 }
 0x16e   : > { %9680 = vst [vmem:[#allocation14_spill] sm:$0xff] %v7778_v43  ;;  %v7785_v52 = vadd.f32 %v1330_v13, %v1257_v50  ;;  %v1259_v22 = vpop.f32.mrf.mxu0  ;;  %2916 = vmatpush1.bf16.msra.mxu1 %v7662_v40  ;;  %2659 = vmatprep.mubr.bf16.mxu0 %v9678_v4  ;;  %v6450_v13 = vld [vmem:[%s6991_s16 + $0x70] sm:$0xff]  }
 0x16f   : > { %v1332_v17 = vpop.f32.mrf.mxu1  ;;  %2748 = vmatprep.mubr.bf16.mxu1 %v9678_v4  ;;  %2787 = vmatprep.subr.bf16.mxu0 %v7672_v45 }
 0x170   : > { %v7791_v53 = vadd.f32 %v1332_v17, %v1259_v22  ;;  %v1261_v31 = vpop.f32.mrf.mxu0  ;;  %2917 = vmatprep.subr.bf16.mxu1 %v7672_v45 }
 0x171   : > { %v1334_v51 = vpop.f32.mrf.mxu1  ;;  %2788 = vmatpush1.bf16.msra.mxu0 %v7684_v57 }
 0x172   : > { %v7795_v58 = vadd.f32 %v1334_v51, %v1261_v31  ;;  %v1263_v62 = vpop.f32.mrf.mxu0  ;;  %2918 = vmatpush1.bf16.msra.mxu1 %v7684_v57  ;;  %2789 = vmatprep.subr.bf16.mxu0 %v7693_v3 }
 0x173   : > { %v1336_v40 = vpop.f32.mrf.mxu1  ;;  %2919 = vmatprep.subr.bf16.mxu1 %v7693_v3 }
 0x174   : > { %v7800_v26 = vadd.f32 %v1336_v40, %v1263_v62  ;;  %v1267_v46 = vpop.f32.mrf.mxu0  ;;  %5789 = vmatmul.mubr.msk.bf16.gmra.mxu0 %vm721_vm1, %v7297_v36 }
 0x175   : > { %v1340_v45 = vpop.f32.mrf.mxu1  ;;  %5794 = vmatmul.mubr.msk.bf16.gmra.mxu1 %vm721_vm1, %v7458_v56  ;;  %2790 = vmatpush1.bf16.msra.mxu0 %v7707_v25 }
 0x176   : > { %9681 = vst [vmem:[#allocation15_spill] sm:$0xff] %v7800_v26  ;;  %v7807_v41 = vadd.f32 %v1340_v45, %v1267_v46  ;;  %v1269_v57 = vpop.f32.mrf.mxu0  ;;  %2920 = vmatpush1.bf16.msra.mxu1 %v7707_v25  ;;  %2807 = vmatprep.mubr.bf16.mxu0 %v9678_v4 }
 0x177   : > { %v1342_v3 = vpop.f32.mrf.mxu1  ;;  %2937 = vmatprep.mubr.bf16.mxu1 %v9678_v4 }
 0x178   : > { %v7812_v7 = vadd.f32 %v1342_v3, %v1269_v57  ;;  %v1271_v50 = vpop.f32.mrf.mxu0 }
 0x179   : > { %v1344_v36 = vpop.f32.mrf.mxu1 }
 0x17a   : > { %v7815_v22 = vadd.f32 %v1344_v36, %v1271_v50  ;;  %v1273_v56 = vpop.f32.mrf.mxu0  ;;  %v6451_v50 = vld [vmem:[%s6991_s16 + $0x78] sm:$0xff]  }
 0x17b   : > { %v1346_v17 = vpop.f32.mrf.mxu1 }
 0x17c   : > { %v7817_v31 = vadd.f32 %v1346_v17, %v1273_v56  ;;  %v1424_v51 = vpop.f32.mrf.mxu0  ;;  %5796 = vmatmul.mubr.msk.bf16.vlgmr.msra.gmra.mxu0 %vm721_vm1, %v7572_v47 }
 0x17d   : > { %v1497_v25 = vpop.f32.mrf.mxu1  ;;  %5813 = vmatmul.mubr.msk.bf16.vlgmr.msra.gmra.mxu1 %vm721_vm1, %v6450_v13  ;;  %2817 = vmatprep.mubr.bf16.mxu0 %v9678_v4 }
 0x17e   : > { %v7823_v62 = vadd.f32 %v1497_v25, %v1424_v51  ;;  %v1426_v40 = vpop.f32.mrf.mxu0  ;;  %2947 = vmatprep.mubr.bf16.mxu1 %v9678_v4 }
 0x17f   : > { %v1499_v46 = vpop.f32.mrf.mxu1 }
 0x180   : > { %v7826_v45 = vadd.f32 %v1499_v46, %v1426_v40  ;;  %v1428_v57 = vpop.f32.mrf.mxu0 }
 0x181   : > { %v1501_v3 = vpop.f32.mrf.mxu1 }
 0x182   : > { %v7829_v36 = vadd.f32 %v1501_v3, %v1428_v57  ;;  %v7831_v47 = vpop.f32.mrf.mxu0 }
 0x183   : > { %9682 = vst [vmem:[#allocation16_spill] sm:$0xff] %v7831_v47  ;;  %v7833_v56 = vpop.f32.mrf.mxu1 }
 0x184   : > { %9683 = vst [vmem:[#allocation17_spill] sm:$0xff] %v7833_v56  ;;  %v1434_v13 = vpop.f32.mrf.mxu0  ;;  %5797 = vmatmul.mubr.msk.bf16.gmra.mxu0 %vm721_vm1, %v7611_v6 }
 0x185   : > { %v1507_v17 = vpop.f32.mrf.mxu1  ;;  %5814 = vmatmul.mubr.msk.bf16.gmra.mxu1 %vm721_vm1, %v6451_v50  ;;  %2827 = vmatprep.mubr.bf16.mxu0 %v9678_v4 }
 0x186   : > { %v7839_v51 = vadd.f32 %v1507_v17, %v1434_v13  ;;  %v1436_v25 = vpop.f32.mrf.mxu0  ;;  %2957 = vmatprep.mubr.bf16.mxu1 %v9678_v4 }
 0x187   : > { %v1509_v40 = vpop.f32.mrf.mxu1 }
 0x188   : > { %v7842_v46 = vadd.f32 %v1509_v40, %v1436_v25  ;;  %v1438_v57 = vpop.f32.mrf.mxu0 }
 0x189   : > { %v1511_v3 = vpop.f32.mrf.mxu1 }
 0x18a   : > { %v7845_v26 = vadd.f32 %v1511_v3, %v1438_v57  ;;  %v7847_v6 = vpop.f32.mrf.mxu0 }
 0x18b   : > { %9684 = vst [vmem:[#allocation18_spill] sm:$0xff] %v7847_v6  ;;  %v7849_v43 = vpop.f32.mrf.mxu1 }
 0x18c   : > { %9685 = vst [vmem:[#allocation19_spill] sm:$0xff] %v7849_v43  ;;  %v1444_v50 = vpop.f32.mrf.mxu0  ;;  %5798 = vmatmul.mubr.msk.bf16.gmra.mxu0 %vm721_vm1, %v7656_v37  ;;  %v6453_v43 = vld [vmem:[%s6991_s16 + $0x88] sm:$0xff]   ;;  %s6600_s16 = scalar_lea.vmem %s6599_s24, 256 }
 0x18d   : > { %v1517_v13 = vpop.f32.mrf.mxu1  ;;  %5815 = vmatmul.mubr.msk.bf16.gmra.mxu1 %vm721_vm1, %v6452_v54  ;;  %2837 = vmatprep.mubr.bf16.mxu0 %v9678_v4  ;;  %p6602_p3 = scmp.lt.s32.totalorder %s6600_s16, %s6594_s22 }
 0x18e   : > { %v7855_v17 = vadd.f32 %v1517_v13, %v1444_v50  ;;  %v1446_v25 = vpop.f32.mrf.mxu0  ;;  %2967 = vmatprep.mubr.bf16.mxu1 %v9678_v4 }
 0x18f   : > { %v1519_v40 = vpop.f32.mrf.mxu1  ;;  %p6603_p4 = por %p6602_p3, %p6601_p2 }
 0x190   : > { %v7858_v57 = vadd.f32 %v1519_v40, %v1446_v25  ;;  %v1448_v3 = vpop.f32.mrf.mxu0 }
 0x191   : > { %v1521_v6 = vpop.f32.mrf.mxu1  ;;  %p6604_p5 = pnand %p6603_p4, %p6597_p1 }
 0x192   : > { %v7861_v56 = vadd.f32 %v1521_v6, %v1448_v3  ;;  %v7863_v47 = vpop.f32.mrf.mxu0 }
 0x193   : > { %9686 = vst [vmem:[#allocation20_spill] sm:$0xff] %v7863_v47  ;;  %v7865_v37 = vpop.f32.mrf.mxu1 }
 0x194   : > { %9687 = vst [vmem:[#allocation21_spill] sm:$0xff] %v7865_v37  ;;  %v1454_v54 = vpop.f32.mrf.mxu0  ;;  %5799 = vmatmul.mubr.msk.bf16.gmra.mxu0 %vm721_vm1, %v7701_v20 }
 0x195   : > { %v1527_v50 = vpop.f32.mrf.mxu1  ;;  %5816 = vmatmul.mubr.msk.bf16.gmra.mxu1 %vm721_vm1, %v6453_v43  ;;  %3500 = vmatprep.mubr.bf16.mxu0 %v9678_v4 }
 0x196   : > { %v7871_v13 = vadd.f32 %v1527_v50, %v1454_v54  ;;  %v1456_v25 = vpop.f32.mrf.mxu0  ;;  %3635 = vmatprep.mubr.bf16.mxu1 %v9678_v4 }
 0x197   : > { %v1529_v6 = vpop.f32.mrf.mxu1 }
 0x198   : > { %v7874_v40 = vadd.f32 %v1529_v6, %v1456_v25  ;;  %v1458_v3 = vpop.f32.mrf.mxu0 }
 0x199   : > { %v1531_v47 = vpop.f32.mrf.mxu1 }
 0x19a   : > { %v7876_v37 = vadd.f32 %v1531_v47, %v1458_v3  ;;  %v7878_v44 = vpop.f32.mrf.mxu0 }
 0x19b   : > { %9688 = vst [vmem:[#allocation22_spill] sm:$0xff] %v7878_v44  ;;  %v7880_v20 = vpop.f32.mrf.mxu1 }
 0x19c   : > { %9689 = vst [vmem:[#allocation23_spill] sm:$0xff] %v7880_v20  ;;  %v1659_v34 = vpop.f32.mrf.mxu0 }
 0x19d   : > { %v7883_v43 = vadd.f32 %v1659_v34, %v7486_v60  ;;  %v1748_v54 = vpop.f32.mrf.mxu1 }
 0x19e   : > { %v7886_v50 = vadd.f32 %v1748_v54, %v7596_v59  ;;  %v1661_v4 = vpop.f32.mrf.mxu0 }
 0x19f   : > { %v7889_v25 = vadd.f32 %v1661_v4, %v7492_v63  ;;  %v1750_v6 = vpop.f32.mrf.mxu1 }
 0x1a0   : > { %v7892_v47 = vadd.f32 %v1750_v6, %v7607_v1  ;;  %v1663_v3 = vpop.f32.mrf.mxu0 }
 0x1a1   : > { %v7895_v44 = vadd.f32 %v1663_v3, %v7496_v2  ;;  %v1752_v20 = vpop.f32.mrf.mxu1 }
 0x1a2   : > { %v7898_v60 = vadd.f32 %v1752_v20, %v7619_v9  ;;  %v7900_v34 = vpop.f32.mrf.mxu0 }
 0x1a3   : > { %v7902_v59 = vpop.f32.mrf.mxu1 }
 0x1a4   : > { %9690 = vst [vmem:[#allocation24_spill] sm:$0xff] %v7902_v59  ;;  %v1669_v54 = vpop.f32.mrf.mxu0 }
 0x1a5   : > { %v7905_v63 = vadd.f32 %v1669_v54, %v7508_v8  ;;  %v1758_v4 = vpop.f32.mrf.mxu1 }
 0x1a6   : > { %v7908_v1 = vadd.f32 %v1758_v4, %v7641_v24  ;;  %v1671_v6 = vpop.f32.mrf.mxu0 }
 0x1a7   : > { %v7911_v2 = vadd.f32 %v1671_v6, %v7514_v11  ;;  %v1760_v3 = vpop.f32.mrf.mxu1 }
 0x1a8   : > { %v7914_v9 = vadd.f32 %v1760_v3, %v7652_v30  ;;  %v1673_v20 = vpop.f32.mrf.mxu0 }
 0x1a9   : > { %v7917_v49 = vadd.f32 %v1673_v20, %v7518_v14  ;;  %v1762_v19 = vpop.f32.mrf.mxu1 }
 0x1aa   : > { %v7920_v8 = vadd.f32 %v1762_v19, %v7664_v42  ;;  %v7922_v54 = vpop.f32.mrf.mxu0 }
 0x1ab   : > { %9691 = vst [vmem:[#allocation25_spill] sm:$0xff] %v7922_v54  ;;  %v7924_v24 = vpop.f32.mrf.mxu1 }
 0x1ac   : > { %9692 = vst [vmem:[#allocation26_spill] sm:$0xff] %v7924_v24  ;;  %v1679_v4 = vpop.f32.mrf.mxu0 }
 0x1ad   : > { %v7927_v11 = vadd.f32 %v1679_v4, %v7530_v23  ;;  %v1768_v6 = vpop.f32.mrf.mxu1 }
 0x1ae   : > { %v7930_v30 = vadd.f32 %v1768_v6, %v7686_v61  ;;  %v1681_v3 = vpop.f32.mrf.mxu0 }
 0x1af   : > { %v7933_v14 = vadd.f32 %v1681_v3, %v7536_v27  ;;  %v1770_v20 = vpop.f32.mrf.mxu1 }
 0x1b0   : > { %v7936_v19 = vadd.f32 %v1770_v20, %v7697_v10  ;;  %v1683_v42 = vpop.f32.mrf.mxu0 }
 0x1b1   : > { %v7939_v54 = vadd.f32 %v1683_v42, %v7540_v29  ;;  %v1772_v24 = vpop.f32.mrf.mxu1 }
 0x1b2   : > { %v7942_v23 = vadd.f32 %v1772_v24, %v7709_v28  ;;  %v7944_v4 = vpop.f32.mrf.mxu0 }
 0x1b3   : > { %9693 = vst [vmem:[#allocation27_spill] sm:$0xff] %v7944_v4  ;;  %v7946_v61 = vpop.f32.mrf.mxu1 }
 0x1b4   : > { %9694 = vst [vmem:[#allocation28_spill] sm:$0xff] %v7946_v61  ;;  %v1689_v6 = vpop.f32.mrf.mxu0 }
 0x1b5   : > { %v7949_v27 = vadd.f32 %v1689_v6, %v7557_v38  ;;  %v1778_v3 = vpop.f32.mrf.mxu1 }
 0x1b6   : > { %v7952_v10 = vadd.f32 %v1778_v3, %v7721_v55  ;;  %v1691_v20 = vpop.f32.mrf.mxu0 }
 0x1b7   : > { %v7955_v29 = vadd.f32 %v1691_v20, %v7567_v18  ;;  %v1780_v42 = vpop.f32.mrf.mxu1 }
 0x1b8   : > { %v7958_v28 = vadd.f32 %v1780_v42, %v7728_v12  ;;  %v1693_v24 = vpop.f32.mrf.mxu0 }
 0x1b9   : > { %v7961_v4 = vadd.f32 %v1693_v24, %v7574_v48  ;;  %v1782_v61 = vpop.f32.mrf.mxu1 }
 0x1ba   : > { %v7964_v38 = vadd.f32 %v1782_v61, %v7732_v35  ;;  %v7966_v6 = vpop.f32.mrf.mxu0 }
 0x1bb   : > { %9695 = vst [vmem:[#allocation29_spill] sm:$0xff] %v7966_v6  ;;  %v7968_v55 = vpop.f32.mrf.mxu1 }
 0x1bc   : > { %9696 = vst [vmem:[#allocation30_spill] sm:$0xff] %v7968_v55  ;;  %v1837_v3 = vpop.f32.mrf.mxu0 }
 0x1bd   : > { %v7971_v18 = vadd.f32 %v1837_v3, %v7741_v0  ;;  %v1967_v20 = vpop.f32.mrf.mxu1 }
 0x1be   : > { %v7974_v12 = vadd.f32 %v1967_v20, %v7823_v62  ;;  %v1839_v42 = vpop.f32.mrf.mxu0 }
 0x1bf   : > { %v7977_v48 = vadd.f32 %v1839_v42, %v7747_v32  ;;  %v1969_v24 = vpop.f32.mrf.mxu1 }
 0x1c0   : > { %v7980_v35 = vadd.f32 %v1969_v24, %v7826_v45  ;;  %v1841_v61 = vpop.f32.mrf.mxu0 }
 0x1c1   : > { %v7983_v6 = vadd.f32 %v1841_v61, %v7751_v39  ;;  %v1971_v55 = vpop.f32.mrf.mxu1 }
 0x1c2   : > { %v7986_v0 = vadd.f32 %v1971_v55, %v7829_v36  ;;  %v7988_v3 = vpop.f32.mrf.mxu0 }
 0x1c3   : > { %9697 = vst [vmem:[#allocation31_spill] sm:$0xff] %v7988_v3  ;;  %v7990_v62 = vpop.f32.mrf.mxu1 }
 0x1c4   : > { %9698 = vst [vmem:[#allocation32_spill] sm:$0xff] %v7990_v62  ;;  %v1847_v20 = vpop.f32.mrf.mxu0 }
 0x1c5   : > { %v7993_v32 = vadd.f32 %v1847_v20, %v7763_v33  ;;  %v1977_v42 = vpop.f32.mrf.mxu1 }
 0x1c6   : > { %v7996_v45 = vadd.f32 %v1977_v42, %v7839_v51  ;;  %v1849_v24 = vpop.f32.mrf.mxu0 }
 0x1c7   : > { %v7999_v39 = vadd.f32 %v1849_v24, %v7769_v16  ;;  %v1979_v61 = vpop.f32.mrf.mxu1 }
 0x1c8   : > { %v8002_v36 = vadd.f32 %v1979_v61, %v7842_v46  ;;  %v1851_v55 = vpop.f32.mrf.mxu0 }
 0x1c9   : > { %v8005_v3 = vadd.f32 %v1851_v55, %v7773_v21  ;;  %v1981_v62 = vpop.f32.mrf.mxu1 }
 0x1ca   : > { %v8008_v33 = vadd.f32 %v1981_v62, %v7845_v26  ;;  %v8010_v20 = vpop.f32.mrf.mxu0 }
 0x1cb   : > { %9699 = vst [vmem:[#allocation33_spill] sm:$0xff] %v8010_v20  ;;  %v8012_v51 = vpop.f32.mrf.mxu1 }
 0x1cc   : > { %9700 = vst [vmem:[#allocation34_spill] sm:$0xff] %v8012_v51  ;;  %v1857_v42 = vpop.f32.mrf.mxu0 }
 0x1cd   : > { %v8015_v16 = vadd.f32 %v1857_v42, %v7785_v52  ;;  %v1987_v24 = vpop.f32.mrf.mxu1 }
 0x1ce   : > { %v8018_v46 = vadd.f32 %v1987_v24, %v7855_v17  ;;  %v1859_v61 = vpop.f32.mrf.mxu0 }
 0x1cf   : > { %v8021_v21 = vadd.f32 %v1859_v61, %v7791_v53  ;;  %v1989_v55 = vpop.f32.mrf.mxu1 }
 0x1d0   : > { %v8024_v26 = vadd.f32 %v1989_v55, %v7858_v57  ;;  %v1861_v62 = vpop.f32.mrf.mxu0 }
 0x1d1   : > { %v8027_v20 = vadd.f32 %v1861_v62, %v7795_v58  ;;  %v1991_v51 = vpop.f32.mrf.mxu1 }
 0x1d2   : > { %v8030_v52 = vadd.f32 %v1991_v51, %v7861_v56  ;;  %v8032_v42 = vpop.f32.mrf.mxu0 }
 0x1d3   : > { %9701 = vst [vmem:[#allocation35_spill] sm:$0xff] %v8032_v42  ;;  %v8034_v17 = vpop.f32.mrf.mxu1 }
 0x1d4   : > { %9702 = vst [vmem:[#allocation36_spill] sm:$0xff] %v8034_v17  ;;  %v1867_v24 = vpop.f32.mrf.mxu0 }
 0x1d5   : > { %v8037_v53 = vadd.f32 %v1867_v24, %v7807_v41  ;;  %v1997_v61 = vpop.f32.mrf.mxu1 }
 0x1d6   : > { %v8040_v57 = vadd.f32 %v1997_v61, %v7871_v13  ;;  %v1869_v55 = vpop.f32.mrf.mxu0 }
 0x1d7   : > { %v8043_v58 = vadd.f32 %v1869_v55, %v7812_v7  ;;  %v1999_v62 = vpop.f32.mrf.mxu1 }
 0x1d8   : > { %v8046_v56 = vadd.f32 %v1999_v62, %v7874_v40  ;;  %v1871_v51 = vpop.f32.mrf.mxu0 }
 0x1d9   : > { %v8049_v42 = vadd.f32 %v1871_v51, %v7815_v22  ;;  %v2001_v17 = vpop.f32.mrf.mxu1 }
 0x1da   : > { %v8052_v41 = vadd.f32 %v2001_v17, %v7876_v37  ;;  %v8054_v24 = vpop.f32.mrf.mxu0 }
 0x1db   : > { %v8056_v13 = vpop.f32.mrf.mxu1 }
 0x1dc   : > { %9703 = vst [vmem:[#allocation37_spill] sm:$0xff] %v8056_v13  ;;  %v8058_v61 = vpop.f32.mrf.mxu0 }
 0x1dd   : > { %v2234_v7 = vpop.f32.mrf.mxu1 }
 0x1de   : > { %v8061_v55 = vadd.f32 %v2234_v7, %v7886_v50  ;;  %v2147_v40 = vpop.f32.mrf.mxu0 }
 0x1df   : > { %v8064_v62 = vadd.f32 %v2147_v40, %v7889_v25  ;;  %v8066_v22 = vpop.f32.mrf.mxu1 }
 0x1e0   : > { %v2149_v51 = vpop.f32.mrf.mxu0 }
 0x1e1   : > { %9704 = vst [vmem:[#allocation38_spill] sm:$0xff] %v8064_v62  ;;  %v8069_v37 = vadd.f32 %v2149_v51, %v7895_v44  ;;  %v2238_v17 = vpop.f32.mrf.mxu1 }
 0x1e2   : > { %v8072_v59 = vadd.f32 %v2238_v17, %v7898_v60  ;;  %v8074_v13 = vpop.f32.mrf.mxu0 }
 0x1e3   : > { %v8076_v15 = vpop.f32.mrf.mxu1 }
 0x1e4   : > { %9705 = vst [vmem:[#allocation39_spill] sm:$0xff] %v8072_v59  ;;  %9706 = vst [vmem:[#allocation40_spill] sm:$0xff] %v8076_v15  ;;  %v2155_v50 = vpop.f32.mrf.mxu0 }
 0x1e5   : > { %v8079_v7 = vadd.f32 %v2155_v50, %v7905_v63  ;;  %v2244_v25 = vpop.f32.mrf.mxu1 }
 0x1e6   : > { %v8082_v40 = vadd.f32 %v2244_v25, %v7908_v1  ;;  %v2157_v62 = vpop.f32.mrf.mxu0 }
 0x1e7   : > { %v8085_v44 = vadd.f32 %v2157_v62, %v7911_v2  ;;  %v2246_v51 = vpop.f32.mrf.mxu1 }
 0x1e8   : > { %v8088_v60 = vadd.f32 %v2246_v51, %v7914_v9  ;;  %v2159_v17 = vpop.f32.mrf.mxu0 }
 0x1e9   : > { %v8091_v59 = vadd.f32 %v2159_v17, %v7917_v49  ;;  %v2248_v15 = vpop.f32.mrf.mxu1 }
 0x1ea   : > { %v8094_v63 = vadd.f32 %v2248_v15, %v7920_v8  ;;  %v8096_v50 = vpop.f32.mrf.mxu0 }
 0x1eb   : > { %v8098_v1 = vpop.f32.mrf.mxu1 }
 0x1ec   : > { %9707 = vst [vmem:[#allocation41_spill] sm:$0xff] %v8094_v63  ;;  %9708 = vst [vmem:[#allocation42_spill] sm:$0xff] %v8098_v1  ;;  %v2165_v25 = vpop.f32.mrf.mxu0 }
 0x1ed   : > { %v8101_v2 = vadd.f32 %v2165_v25, %v7927_v11  ;;  %v2254_v62 = vpop.f32.mrf.mxu1 }
 0x1ee   : > { %v8104_v9 = vadd.f32 %v2254_v62, %v7930_v30  ;;  %v2167_v51 = vpop.f32.mrf.mxu0 }
 0x1ef   : > { %v8107_v49 = vadd.f32 %v2167_v51, %v7933_v14  ;;  %v2256_v17 = vpop.f32.mrf.mxu1 }
 0x1f0   : > { %v8110_v15 = vadd.f32 %v2256_v17, %v7936_v19  ;;  %v2169_v8 = vpop.f32.mrf.mxu0 }
 0x1f1   : > { %v8113_v63 = vadd.f32 %v2169_v8, %v7939_v54  ;;  %v2258_v1 = vpop.f32.mrf.mxu1 }
 0x1f2   : > { %v8116_v11 = vadd.f32 %v2258_v1, %v7942_v23  ;;  %v8118_v25 = vpop.f32.mrf.mxu0 }
 0x1f3   : > { %v8120_v30 = vpop.f32.mrf.mxu1 }
 0x1f4   : > { %9709 = vst [vmem:[#allocation43_spill] sm:$0xff] %v8116_v11  ;;  %9710 = vst [vmem:[#allocation44_spill] sm:$0xff] %v8120_v30  ;;  %v2175_v62 = vpop.f32.mrf.mxu0 }
 0x1f5   : > { %v8123_v14 = vadd.f32 %v2175_v62, %v7949_v27  ;;  %v2264_v51 = vpop.f32.mrf.mxu1 }
 0x1f6   : > { %v8126_v19 = vadd.f32 %v2264_v51, %v7952_v10  ;;  %v2177_v17 = vpop.f32.mrf.mxu0 }
 0x1f7   : > { %v8129_v54 = vadd.f32 %v2177_v17, %v7955_v29  ;;  %v2266_v8 = vpop.f32.mrf.mxu1 }
 0x1f8   : > { %9711 = vst [vmem:[#allocation45_spill] sm:$0xff] %v8126_v19  ;;  %v8132_v23 = vadd.f32 %v2266_v8, %v7958_v28  ;;  %v2179_v1 = vpop.f32.mrf.mxu0 }
 0x1f9   : > { %9712 = vst [vmem:[#allocation46_spill] sm:$0xff] %v8129_v54  ;;  %v8135_v11 = vadd.f32 %v2179_v1, %v7961_v4  ;;  %v2268_v30 = vpop.f32.mrf.mxu1 }
 0x1fa   : > { %9713 = vst [vmem:[#allocation47_spill] sm:$0xff] %v8132_v23  ;;  %v8138_v27 = vadd.f32 %v2268_v30, %v7964_v38  ;;  %v8140_v62 = vpop.f32.mrf.mxu0 }
 0x1fb   : > { %9714 = vst [vmem:[#allocation48_spill] sm:$0xff] %v8135_v11  ;;  %9716 = vst [vmem:[#allocation50_spill] sm:$0xff] %v8140_v62  ;;  %v8142_v10 = vpop.f32.mrf.mxu1 }
 0x1fc   : > { %9715 = vst [vmem:[#allocation49_spill] sm:$0xff] %v8138_v27  ;;  %9717 = vst [vmem:[#allocation51_spill] sm:$0xff] %v8142_v10  ;;  %v2323_v51 = vpop.f32.mrf.mxu0 }
 0x1fd   : > { %v8145_v29 = vadd.f32 %v2323_v51, %v7971_v18  ;;  %v2453_v17 = vpop.f32.mrf.mxu1 }
 0x1fe   : > { %v8148_v28 = vadd.f32 %v2453_v17, %v7974_v12  ;;  %v2325_v8 = vpop.f32.mrf.mxu0 }
 0x1ff   : > { %v8151_v4 = vadd.f32 %v2325_v8, %v7977_v48  ;;  %v2455_v1 = vpop.f32.mrf.mxu1 }
 0x200   : > { %v8154_v38 = vadd.f32 %v2455_v1, %v7980_v35  ;;  %v2327_v30 = vpop.f32.mrf.mxu0 }
 0x201   : > { %v8157_v27 = vadd.f32 %v2327_v30, %v7983_v6  ;;  %v2457_v10 = vpop.f32.mrf.mxu1 }
 0x202   : > { %v8160_v18 = vadd.f32 %v2457_v10, %v7986_v0  ;;  %v8162_v51 = vpop.f32.mrf.mxu0 }
 0x203   : > { %v8164_v12 = vpop.f32.mrf.mxu1 }
 0x204   : > { %v2333_v17 = vpop.f32.mrf.mxu0 }
 0x205   : > { %v8167_v48 = vadd.f32 %v2333_v17, %v7993_v32  ;;  %v2463_v8 = vpop.f32.mrf.mxu1 }
 0x206   : > { %v8170_v35 = vadd.f32 %v2463_v8, %v7996_v45  ;;  %v2335_v1 = vpop.f32.mrf.mxu0 }
 0x207   : > { %v8173_v6 = vadd.f32 %v2335_v1, %v7999_v39  ;;  %v2465_v30 = vpop.f32.mrf.mxu1 }
 0x208   : > { %v8176_v0 = vadd.f32 %v2465_v30, %v8002_v36  ;;  %v2337_v10 = vpop.f32.mrf.mxu0 }
 0x209   : > { %v8179_v23 = vadd.f32 %v2337_v10, %v8005_v3  ;;  %v2467_v19 = vpop.f32.mrf.mxu1 }
 0x20a   : > { %v8182_v32 = vadd.f32 %v2467_v19, %v8008_v33  ;;  %v8184_v17 = vpop.f32.mrf.mxu0 }
 0x20b   : > { %v8186_v45 = vpop.f32.mrf.mxu1 }
 0x20c   : > { %v2343_v8 = vpop.f32.mrf.mxu0 }
 0x20d   : > { %v8189_v39 = vadd.f32 %v2343_v8, %v8015_v16  ;;  %v2473_v1 = vpop.f32.mrf.mxu1 }
 0x20e   : > { %v8192_v36 = vadd.f32 %v2473_v1, %v8018_v46  ;;  %v2345_v30 = vpop.f32.mrf.mxu0  ;;  %v8211_v46 = vld [vmem:[%s9633_s3 + $0x50] ss:$8 sps:$4 sm:$0xff]  }
 0x20f   : > { %v8195_v3 = vadd.f32 %v2345_v30, %v8021_v21  ;;  %v2475_v10 = vpop.f32.mrf.mxu1  ;;  %9718 = vst [vmem:[#allocation52_spill] sm:$0xff] %v8211_v46  ;;  %v8216_v21 = vld [vmem:[%s9633_s3 + $0x54] ss:$8 sps:$4 sm:$0xff]  }
 0x210   : > { %v8198_v33 = vadd.f32 %v2475_v10, %v8024_v26  ;;  %v2347_v19 = vpop.f32.mrf.mxu0  ;;  %3607 = vmatprep.subr.bf16.mxu1 %v8216_v21  ;;  %v8231_v10 = vld [vmem:[%s9633_s3 + $0x44] ss:$8 sps:$4 sm:$0xff]  }
 0x211   : > { %v8201_v62 = vadd.f32 %v2347_v19, %v8027_v20  ;;  %v2477_v11 = vpop.f32.mrf.mxu1  ;;  %3608 = vmatpush1.bf16.msra.mxu1 %v8211_v46  ;;  %9720 = vst [vmem:[#allocation54_spill] sm:$0xff] %v8231_v10 }
 0x212   : > { %v8204_v16 = vadd.f32 %v2477_v11, %v8030_v52  ;;  %v8206_v8 = vpop.f32.mrf.mxu0  ;;  %3609 = vmatprep.subr.bf16.mxu1 %v8231_v10 }
 0x213   : > { %v8218_v26 = vpop.f32.mrf.mxu1 }
 0x214   : > { %v2353_v20 = vpop.f32.mrf.mxu0 }
 0x215   : > { %v8222_v52 = vadd.f32 %v2353_v20, %v8037_v53  ;;  %v2483_v11 = vpop.f32.mrf.mxu1  ;;  %v8239_v53 = vld [vmem:[%s9633_s3 + $0x40] ss:$8 sps:$4 sm:$0xff]  }
 0x216   : > { %v8226_v1 = vadd.f32 %v2483_v11, %v8040_v57  ;;  %v2355_v30 = vpop.f32.mrf.mxu0  ;;  %9721 = vst [vmem:[#allocation55_spill] sm:$0xff] %v8239_v53  ;;  %v1891_v11 = vadd.f32 %v8054_v24, %v7817_v31  ;;  %3610 = vmatpush1.bf16.msra.mxu1 %v8239_v53 }
 0x217   : > { %v8234_v19 = vadd.f32 %v2355_v30, %v8043_v58  ;;  %v2485_v54 = vpop.f32.mrf.mxu1 }
 0x218   : > { %9719 = vst [vmem:[#allocation53_spill] sm:$0xff] %v8226_v1  ;;  %v8242_v20 = vadd.f32 %v2485_v54, %v8046_v56  ;;  %v2357_v57 = vpop.f32.mrf.mxu0  ;;  %v8257_v56 = vld [vmem:[%s9633_s3 + $0x34] ss:$8 sps:$4 sm:$0xff]   ;;  %v2184_v54 = vadd.f32 %v8058_v61, %v7883_v43  ;;  %v2274_v43 = vadd.f32 %v8066_v22, %v7892_v47 }
 0x219   : > { %v8248_v46 = vadd.f32 %v2357_v57, %v8049_v42  ;;  %v2487_v58 = vpop.f32.mrf.mxu1  ;;  %9723 = vst [vmem:[#allocation57_spill] sm:$0xff] %v8257_v56  ;;  %v8268_v42 = vld [vmem:[%s9633_s3 + $0x30] ss:$8 sps:$4 sm:$0xff]   ;;  %3611 = vmatprep.subr.bf16.mxu1 %v8257_v56  ;;  %v8297_v56 = vld [vmem:[%s9633_s3 + $0x14] ss:$8 sps:$4 sm:$0xff]  }
 0x21a   : > { %v8252_v30 = vadd.f32 %v2487_v58, %v8052_v41  ;;  %v2359_v1 = vpop.f32.mrf.mxu0  ;;  %9726 = vst [vmem:[#allocation60_spill] sm:$0xff] %v8268_v42  ;;  %3612 = vmatpush1.bf16.msra.mxu1 %v8268_v42  ;;  %v8286_v58 = vld [vmem:[%s9633_s3 + $0x20] ss:$8 sps:$4 sm:$0xff]   ;;  %9731 = vst [vmem:[#allocation65_spill] sm:$0xff] %v8297_v56 }
 0x21b   : > { %v8261_v10 = vadd.f32 %v2359_v1, %v1891_v11  ;;  %v8263_v31 = vpop.f32.mrf.mxu1  ;;  %v8279_v1 = vld [vmem:[%s9633_s3 + $0x24] ss:$8 sps:$4 sm:$0xff]   ;;  %9729 = vst [vmem:[#allocation63_spill] sm:$0xff] %v8286_v58 }
 0x21c   : > { %9722 = vst [vmem:[#allocation56_spill] sm:$0xff] %v8252_v30  ;;  %9725 = vst [vmem:[#allocation59_spill] sm:$0xff] %v8263_v31  ;;  %v2631_v41 = vpop.f32.mrf.mxu0  ;;  %3613 = vmatprep.subr.bf16.mxu1 %v8279_v1  ;;  %v9740_v31 = vld [vmem:[#allocation40_spill] sm:$0xff] }
 0x21d   : > { %9724 = vst [vmem:[#allocation58_spill] sm:$0xff] %v8261_v10  ;;  %v8271_v24 = vadd.f32 %v2631_v41, %v2184_v54  ;;  %v2720_v57 = vpop.f32.mrf.mxu1  ;;  %9728 = vst [vmem:[#allocation62_spill] sm:$0xff] %v8279_v1 }
 0x21e   : > { %v2633_v61 = vpop.f32.mrf.mxu0  ;;  %v8290_v47 = vadd.f32 %v2720_v57, %v8061_v55  ;;  %3614 = vmatpush1.bf16.msra.mxu1 %v8286_v58  ;;  %v8304_v55 = vld [vmem:[%s9633_s3 + $0x10] ss:$8 sps:$4 sm:$0xff]   ;;  %v1701_v57 = vadd.f32 %v7900_v34, %v7501_v5  ;;  %v8320_v5 = vld [vmem:[%s9633_s3 + $0x4] ss:$8 sps:$4 sm:$0xff]  }
 0x21f   : > { %9727 = vst [vmem:[#allocation61_spill] sm:$0xff] %v8271_v24  ;;  %v2722_v11 = vpop.f32.mrf.mxu1  ;;  %3010 = vrot.lane.b32.xlu0 %v8271_v24, %s6657_s14  ;;  %9732 = vst [vmem:[#allocation66_spill] sm:$0xff] %v8304_v55  ;;  %3615 = vmatprep.subr.bf16.mxu1 %v8297_v56 }
 0x220   : > { %v2760_v54 = vadd.f32 %v2722_v11, %v2274_v43  ;;  %v2635_v41 = vpop.f32.mrf.mxu0  ;;  %9730 = vst [vmem:[#allocation64_spill] sm:$0xff] %v8290_v47 }
 0x221   : > { %v2724_v22 = vpop.f32.mrf.mxu1  ;;  %v8309_v43 = vadd.f32 %v2635_v41, %v8069_v37  ;;  %v8326_v37 = vld [vmem:[%s9633_s3] ss:$8 sps:$4 sm:$0xff]  }
 0x222   : > { %3085 = vrot.lane.b32.xlu1 %v2760_v54, %s6657_s14  ;;  %v2637_v42 = vpop.f32.mrf.mxu0  ;;  %v9734_v54 = vld [vmem:[#allocation38_spill] sm:$0xff]  ;;  %3616 = vmatpush1.bf16.msra.mxu1 %v8304_v55  ;;  %9736 = vst [vmem:[#allocation68_spill] sm:$0xff] %v8326_v37  ;;  %v9738_v41 = vld [vmem:[#allocation24_spill] sm:$0xff]  ;;  %v9739_v55 = vld [vmem:[#allocation39_spill] sm:$0xff] }
 0x223   : > { %v2726_v53 = vpop.f32.mrf.mxu1  ;;  %3083 = vrot.lane.b32.xlu0 %v8290_v47, %s6657_s14  ;;  %9733 = vst [vmem:[#allocation67_spill] sm:$0xff] %v8309_v43  ;;  %v2671_v58 = vadd.f32 %v2633_v61, %v9734_v54  ;;  %v2187_v47 = vadd.f32 %v8074_v13, %v1701_v57  ;;  %9735 = vst [vmem:[#allocation38_spill] sm:$0xff] %v8320_v5  ;;  %v9737_v61 = vld [vmem:[#allocation9_spill] sm:$0xff]  ;;  %3617 = vmatprep.subr.bf16.mxu1 %v8320_v5 }
 0x224   : > { %v2641_v11 = vpop.f32.mrf.mxu0  ;;  %v1790_v13 = vadd.f32 %v9738_v41, %v9737_v61  ;;  %v8332_v56 = vadd.f32 %v2724_v22, %v9739_v55  ;;  %v9745_v5 = vld [vmem:[#allocation41_spill] sm:$0xff] }
 0x225   : > { %v2730_v1 = vpop.f32.mrf.mxu1  ;;  %v2673_v57 = vadd.f32 %v2637_v42, %v2187_v47  ;;  %v8341_v61 = vadd.f32 %v2641_v11, %v8079_v7  ;;  %v9741_v7 = vld [vmem:[#allocation6_spill] sm:$0xff] }
 0x226   : > { %3014 = vrot.lane.b32.xlu1 %v8309_v43, %s6657_s14  ;;  %v2643_v24 = vpop.f32.mrf.mxu0  ;;  %3618 = vmatpush1.bf16.msra.mxu1 %v8326_v37 }
 0x227   : > { %v2732_v34 = vpop.f32.mrf.mxu1  ;;  %3012 = vrot.lane.b32.xlu0 %v2671_v58, %s6657_s14  ;;  %v2276_v58 = vadd.f32 %v9740_v31, %v1790_v13  ;;  %3745 = vmatprep.subr.bf16.mxu1 %v8216_v21  ;;  %v2675_v31 = vadd.f32 %v2643_v24, %v8085_v44  ;;  %v8348_v21 = vadd.f32 %v2730_v1, %v8082_v40  ;;  %v9743_v24 = vld [vmem:[#allocation10_spill] sm:$0xff] }
 0x228   : > { %v2645_v54 = vpop.f32.mrf.mxu0  ;;  %v9744_v1 = vld [vmem:[#allocation26_spill] sm:$0xff] }
 0x229   : > { %v2734_v43 = vpop.f32.mrf.mxu1  ;;  %v2762_v42 = vadd.f32 %v2726_v53, %v2276_v58  ;;  %v9742_v53 = vld [vmem:[#allocation25_spill] sm:$0xff]  ;;  %v8357_v58 = vadd.f32 %v2645_v54, %v8091_v59  ;;  %v9746_v59 = vld [vmem:[#allocation42_spill] sm:$0xff] }
 0x22a   : > { %3016 = vrot.lane.b32.xlu1 %v2673_v57, %s6657_s14  ;;  %v2647_v30 = vpop.f32.mrf.mxu0  ;;  %v1705_v11 = vadd.f32 %v9742_v53, %v9741_v7  ;;  %v2764_v57 = vadd.f32 %v2732_v34, %v8088_v60  ;;  %v8366_v7 = vadd.f32 %v2734_v43, %v9745_v5 }
 0x22b   : > { %v2736_v10 = vpop.f32.mrf.mxu1  ;;  %3087 = vrot.lane.b32.xlu0 %v8332_v56, %s6657_s14 }
 0x22c   : > { %v2651_v47 = vpop.f32.mrf.mxu0  ;;  %v2191_v40 = vadd.f32 %v8096_v50, %v1705_v11 }
 0x22d   : > { %v2740_v22 = vpop.f32.mrf.mxu1  ;;  %v8375_v53 = vadd.f32 %v2651_v47, %v8101_v2  ;;  %v8396_v2 = vld [vmem:[%s9633_s3 + $0xb4] ss:$8 sps:$4 sm:$0xff]  }
 0x22e   : > { %3089 = vrot.lane.b32.xlu1 %v2762_v42, %s6657_s14  ;;  %v2653_v55 = vpop.f32.mrf.mxu0  ;;  %v2677_v37 = vadd.f32 %v2647_v30, %v2191_v40  ;;  %v8386_v5 = vadd.f32 %v2740_v22, %v8104_v9  ;;  %v9747_v9 = vld [vmem:[#allocation7_spill] sm:$0xff]  ;;  %3472 = vmatprep.subr.bf16.mxu0 %v8396_v2 }
 0x22f   : > { %3018 = vrot.lane.b32.xlu0 %v8341_v61, %s6657_s14  ;;  %v2742_v41 = vpop.f32.mrf.mxu1  ;;  %v2679_v43 = vadd.f32 %v2653_v55, %v8107_v49  ;;  %v8403_v49 = vld [vmem:[%s9633_s3 + $0xb0] ss:$8 sps:$4 sm:$0xff]  }
 0x230   : > { %v2655_v13 = vpop.f32.mrf.mxu0  ;;  %v9748_v47 = vld [vmem:[#allocation27_spill] sm:$0xff]  ;;  %v2768_v55 = vadd.f32 %v2742_v41, %v8110_v15  ;;  %3473 = vmatpush1.bf16.msra.mxu0 %v8403_v49  ;;  %v9750_v41 = vld [vmem:[#allocation28_spill] sm:$0xff] }
 0x231   : > { %v2744_v42 = vpop.f32.mrf.mxu1  ;;  %v1709_v22 = vadd.f32 %v9748_v47, %v9747_v9  ;;  %v9749_v15 = vld [vmem:[#allocation11_spill] sm:$0xff]  ;;  %v9752_v9 = vld [vmem:[#allocation44_spill] sm:$0xff] }
 0x232   : > { %3020 = vrot.lane.b32.xlu1 %v2675_v31, %s6657_s14  ;;  %v2657_v44 = vpop.f32.mrf.mxu0  ;;  %v1794_v31 = vadd.f32 %v9744_v1, %v9743_v24 }
 0x233   : > { %3091 = vrot.lane.b32.xlu0 %v8348_v21, %s6657_s14  ;;  %v2746_v60 = vpop.f32.mrf.mxu1  ;;  %v2195_v1 = vadd.f32 %v8118_v25, %v1709_v22  ;;  %v9751_v25 = vld [vmem:[#allocation43_spill] sm:$0xff] }
 0x234   : > { %v8368_v34 = vpop.f32.mrf.mxu0  ;;  %v2280_v54 = vadd.f32 %v9746_v59, %v1794_v31  ;;  %v8422_v31 = vld [vmem:[%s9633_s3 + $0xa4] ss:$8 sps:$4 sm:$0xff]   ;;  %v8445_v22 = vld [vmem:[%s9633_s3 + $0x94] ss:$8 sps:$4 sm:$0xff]  }
 0x235   : > { %v8377_v11 = vpop.f32.mrf.mxu1  ;;  %v2681_v59 = vadd.f32 %v2657_v44, %v2195_v1  ;;  %3474 = vmatprep.subr.bf16.mxu0 %v8422_v31  ;;  %9753 = vst [vmem:[#allocation9_spill] sm:$0xff] %v8445_v22 }
 0x236   : > { %3093 = vrot.lane.b32.xlu1 %v2764_v57, %s6657_s14  ;;  %v2766_v50 = vadd.f32 %v2736_v10, %v2280_v54  ;;  %v8379_v30 = vpop.f32.mrf.mxu0  ;;  %v8410_v57 = vadd.f32 %v2655_v13, %v8113_v63  ;;  %v8429_v63 = vld [vmem:[%s9633_s3 + $0xa0] ss:$8 sps:$4 sm:$0xff]   ;;  %v1798_v13 = vadd.f32 %v9750_v41, %v9749_v15  ;;  %v8435_v54 = vadd.f32 %v2744_v42, %v9751_v25  ;;  %v8452_v42 = vld [vmem:[%s9633_s3 + $0x90] ss:$8 sps:$4 sm:$0xff]   ;;  %v8463_v41 = vld [vmem:[%s9633_s3 + $0x84] ss:$8 sps:$4 sm:$0xff]  }
 0x237   : > { %3022 = vrot.lane.b32.xlu0 %v8357_v58, %s6657_s14  ;;  %3475 = vmatpush1.bf16.msra.mxu0 %v8429_v63  ;;  %9754 = vst [vmem:[#allocation24_spill] sm:$0xff] %v8452_v42  ;;  %9755 = vst [vmem:[#allocation39_spill] sm:$0xff] %v8463_v41 }
 0x238   : > { %v8390_v10 = vpop.f32.mrf.mxu0  ;;  %v2284_v47 = vadd.f32 %v9752_v9, %v1798_v13  ;;  %3476 = vmatprep.subr.bf16.mxu0 %v8445_v22  ;;  %v9758_v9 = vld [vmem:[#allocation31_spill] sm:$0xff] }
 0x23a   : > { %3024 = vrot.lane.b32.xlu1 %v2677_v37, %s6657_s14  ;;  %v8388_v37 = vpop.f32.mrf.mxu1  ;;  %v8414_v24 = vpop.f32.mrf.mxu0  ;;  %v2770_v44 = vadd.f32 %v2746_v60, %v2284_v47  ;;  %v8470_v60 = vld [vmem:[%s9633_s3 + $0x80] ss:$8 sps:$4 sm:$0xff]  }
 0x23b   : > { %3095 = vrot.lane.b32.xlu0 %v8366_v7, %s6657_s14  ;;  %3477 = vmatpush1.bf16.msra.mxu0 %v8452_v42  ;;  %9756 = vst [vmem:[#allocation40_spill] sm:$0xff] %v8470_v60 }
 0x23c   : > { %v8412_v40 = vpop.f32.mrf.mxu1  ;;  %3478 = vmatprep.subr.bf16.mxu0 %v8463_v41  ;;  %v9760_v41 = vld [vmem:[#allocation17_spill] sm:$0xff] }
 0x23e   : > { %3097 = vrot.lane.b32.xlu1 %v2766_v50, %s6657_s14  ;;  %v8437_v50 = vpop.f32.mrf.mxu1 }
 0x23f   : > { %3026 = vrot.lane.b32.xlu0 %v8375_v53, %s6657_s14  ;;  %3479 = vmatpush1.bf16.msra.mxu0 %v8470_v60  ;;  %v9759_v60 = vld [vmem:[#allocation16_spill] sm:$0xff] }
 0x240   : > { %v2939_v1 = vpop.f32.mrf.mxu1  ;;  %v1504_v42 = vadd.f32 %v9760_v41, %v9759_v60 }
 0x241   : > { %v8475_v13 = vadd.f32 %v2939_v1, %v8148_v28  ;;  %v9757_v28 = vld [vmem:[#allocation13_spill] sm:$0xff] }
 0x242   : > { %3028 = vrot.lane.b32.xlu1 %v2679_v43, %s6657_s14  ;;  %v2809_v43 = vpop.f32.mrf.mxu0  ;;  %v1879_v47 = vadd.f32 %v9758_v9, %v9757_v28 }
 0x243   : > { %3099 = vrot.lane.b32.xlu0 %v8386_v5, %s6657_s14 }
 0x244   : > { %v2811_v15 = vpop.f32.mrf.mxu0  ;;  %v2365_v22 = vadd.f32 %v8162_v51, %v1879_v47 }
 0x246   : > { %3101 = vrot.lane.b32.xlu1 %v2768_v55, %s6657_s14  ;;  %v8456_v55 = vadd.f32 %v2809_v43, %v8145_v29  ;;  %v2849_v29 = vadd.f32 %v2811_v15, %v8151_v4  ;;  %v2813_v25 = vpop.f32.mrf.mxu0  ;;  %v8482_v43 = vld [vmem:[%s9633_s3 + $0x74] ss:$8 sps:$4 sm:$0xff]   ;;  %v8489_v4 = vld [vmem:[%s9633_s3 + $0x70] ss:$8 sps:$4 sm:$0xff]  }
 0x247   : > { %3030 = vrot.lane.b32.xlu0 %v8410_v57, %s6657_s14  ;;  %3480 = vmatprep.subr.bf16.mxu0 %v8482_v43  ;;  %v8496_v1 = vadd.f32 %v2813_v25, %v8157_v27  ;;  %v8513_v27 = vld [vmem:[%s9633_s3 + $0x60] ss:$8 sps:$4 sm:$0xff]  }
 0x248   : > { %3481 = vmatpush1.bf16.msra.mxu0 %v8489_v4 }
 0x24a   : > { %3032 = vrot.lane.b32.xlu1 %v2681_v59, %s6657_s14  ;;  %v2941_v59 = vpop.f32.mrf.mxu1 }
 0x24b   : > { %3103 = vrot.lane.b32.xlu0 %v8435_v54, %s6657_s14 }
 0x24c   : > { %v2943_v15 = vpop.f32.mrf.mxu1 }
 0x24d   : > { %v8518_v51 = vadd.f32 %v2943_v15, %v8160_v18 }
 0x24e   : > { %3105 = vrot.lane.b32.xlu1 %v2770_v44, %s6657_s14  ;;  %v2979_v44 = vadd.f32 %v2941_v59, %v8154_v38  ;;  %v8506_v38 = vld [vmem:[%s9633_s3 + $0x64] ss:$8 sps:$4 sm:$0xff]   ;;  %v2945_v60 = vpop.f32.mrf.mxu1 }
 0x24f   : > { %3202 = vrot.lane.b32.xlu0 %v8456_v55, %s6657_s14  ;;  %v9761_v59 = vld [vmem:[#allocation32_spill] sm:$0xff]  ;;  %3482 = vmatprep.subr.bf16.mxu0 %v8506_v38 }
 0x250   : > { %v2009_v25 = vadd.f32 %v9761_v59, %v1504_v42  ;;  %3483 = vmatpush1.bf16.msra.mxu0 %v8513_v27  ;;  %v2949_v47 = vpop.f32.mrf.mxu1 }
 0x251   : > { %3682 = vmatprep.subr.bf16.mxu0 %v8396_v2 }
 0x252   : > { %3204 = vrot.lane.b32.xlu1 %v2849_v29, %s6657_s14  ;;  %v2815_v29 = vpop.f32.mrf.mxu0  ;;  %v2495_v9 = vadd.f32 %v8164_v12, %v2009_v25  ;;  %v2951_v2 = vpop.f32.mrf.mxu1 }
 0x253   : > { %3274 = vrot.lane.b32.xlu0 %v8475_v13, %s6657_s14  ;;  %v2851_v41 = vadd.f32 %v2815_v29, %v2365_v22  ;;  %v9763_v29 = vld [vmem:[#allocation33_spill] sm:$0xff]  ;;  %v2983_v25 = vadd.f32 %v2951_v2, %v8176_v0 }
 0x254   : > { %v2819_v28 = vpop.f32.mrf.mxu0  ;;  %v2981_v42 = vadd.f32 %v2945_v60, %v2495_v9  ;;  %v2953_v60 = vpop.f32.mrf.mxu1 }
 0x255   : > { %v8527_v22 = vadd.f32 %v2819_v28, %v8167_v48  ;;  %v9762_v48 = vld [vmem:[#allocation14_spill] sm:$0xff]  ;;  %v8553_v0 = vadd.f32 %v2953_v60, %v8182_v32 }
 0x256   : > { %3276 = vrot.lane.b32.xlu1 %v2979_v44, %s6657_s14  ;;  %v2821_v18 = vpop.f32.mrf.mxu0  ;;  %v8534_v44 = vadd.f32 %v2949_v47, %v8170_v35  ;;  %v1883_v59 = vadd.f32 %v9763_v29, %v9762_v48  ;;  %v9764_v28 = vld [vmem:[#allocation18_spill] sm:$0xff]  ;;  %v9765_v35 = vld [vmem:[#allocation19_spill] sm:$0xff] }
 0x257   : > { %3206 = vrot.lane.b32.xlu0 %v8496_v1, %s6657_s14  ;;  %v2853_v12 = vadd.f32 %v2821_v18, %v8173_v6  ;;  %v1514_v9 = vadd.f32 %v9765_v35, %v9764_v28  ;;  %v9766_v47 = vld [vmem:[#allocation34_spill] sm:$0xff] }
 0x258   : > { %v2823_v15 = vpop.f32.mrf.mxu0 }
 0x259   : > { %v2013_v18 = vadd.f32 %v9766_v47, %v1514_v9  ;;  %v9769_v47 = vld [vmem:[#allocation20_spill] sm:$0xff] }
 0x25a   : > { %3208 = vrot.lane.b32.xlu1 %v2851_v41, %s6657_s14  ;;  %v8543_v41 = vadd.f32 %v2823_v15, %v8179_v23  ;;  %v2825_v6 = vpop.f32.mrf.mxu0  ;;  %v2955_v23 = vpop.f32.mrf.mxu1 }
 0x25b   : > { %3278 = vrot.lane.b32.xlu0 %v8518_v51, %s6657_s14  ;;  %v2499_v15 = vadd.f32 %v8186_v45, %v2013_v18 }
 0x25c   : > { %v2829_v2 = vpop.f32.mrf.mxu0  ;;  %v2959_v29 = vpop.f32.mrf.mxu1 }
 0x25d   : > { %v8560_v48 = vadd.f32 %v2829_v2, %v8189_v39  ;;  %v8567_v45 = vadd.f32 %v2959_v29, %v8192_v36  ;;  %v9767_v39 = vld [vmem:[#allocation15_spill] sm:$0xff]  ;;  %v9770_v36 = vld [vmem:[#allocation21_spill] sm:$0xff]  ;;  %v8594_v29 = vadd.f32 %v8368_v34, %v8123_v14 }
 0x25e   : > { %3280 = vrot.lane.b32.xlu1 %v2981_v42, %s6657_s14  ;;  %v2369_v42 = vadd.f32 %v8184_v17, %v1883_v59  ;;  %v2985_v17 = vadd.f32 %v2955_v23, %v2499_v15  ;;  %v2831_v59 = vpop.f32.mrf.mxu0  ;;  %v1524_v18 = vadd.f32 %v9770_v36, %v9769_v47  ;;  %v9771_v23 = vld [vmem:[#allocation36_spill] sm:$0xff]  ;;  %v9777_v34 = vld [vmem:[#allocation45_spill] sm:$0xff] }
 0x25f   : > { %3210 = vrot.lane.b32.xlu0 %v8527_v22, %s6657_s14  ;;  %v2857_v32 = vadd.f32 %v2831_v59, %v8195_v3  ;;  %v9773_v59 = vld [vmem:[#allocation29_spill] sm:$0xff] }
 0x260   : > { %v2833_v60 = vpop.f32.mrf.mxu0  ;;  %v2017_v2 = vadd.f32 %v9771_v23, %v1524_v18  ;;  %v9781_v36 = vld [vmem:[#allocation49_spill] sm:$0xff] }
 0x261   : > { %v8576_v9 = vadd.f32 %v2833_v60, %v8201_v62  ;;  %v9775_v60 = vld [vmem:[#allocation48_spill] sm:$0xff]  ;;  %v8625_v18 = vadd.f32 %v8412_v40, %v9781_v36  ;;  %v9789_v36 = vld [vmem:[#allocation59_spill] sm:$0xff] }
 0x262   : > { %3212 = vrot.lane.b32.xlu1 %v2853_v12, %s6657_s14  ;;  %v2855_v12 = vadd.f32 %v2825_v6, %v2369_v42  ;;  %v9768_v6 = vld [vmem:[#allocation35_spill] sm:$0xff]  ;;  %v2835_v3 = vpop.f32.mrf.mxu0 }
 0x263   : > { %3282 = vrot.lane.b32.xlu0 %v8534_v44, %s6657_s14  ;;  %v1887_v28 = vadd.f32 %v9768_v6, %v9767_v39  ;;  %v8605_v39 = vadd.f32 %v8390_v10, %v9775_v60  ;;  %v9776_v6 = vld [vmem:[#allocation50_spill] sm:$0xff] }
 0x264   : > { %v9779_v10 = vld [vmem:[#allocation30_spill] sm:$0xff] }
 0x265   : > { %v9784_v60 = vld [vmem:[#allocation22_spill] sm:$0xff] }
 0x266   : > { %3284 = vrot.lane.b32.xlu1 %v2983_v25, %s6657_s14  ;;  %v2961_v25 = vpop.f32.mrf.mxu1 }
 0x267   : > { %3214 = vrot.lane.b32.xlu0 %v8543_v41, %s6657_s14  ;;  %v2987_v35 = vadd.f32 %v2961_v25, %v8198_v33  ;;  %v9774_v25 = vld [vmem:[#allocation46_spill] sm:$0xff] }
 0x268   : > { %v2963_v42 = vpop.f32.mrf.mxu1 }
 0x269   : > { %v8586_v33 = vadd.f32 %v2963_v42, %v8204_v16  ;;  %v9772_v16 = vld [vmem:[#allocation8_spill] sm:$0xff] }
 0x26a   : > { %3216 = vrot.lane.b32.xlu1 %v2855_v12, %s6657_s14  ;;  %v2373_v12 = vadd.f32 %v8206_v8, %v1887_v28  ;;  %v2965_v62 = vpop.f32.mrf.mxu1 }
 0x26b   : > { %3286 = vrot.lane.b32.xlu0 %v8553_v0, %s6657_s14 }
 0x26c   : > { %v2859_v15 = vadd.f32 %v2835_v3, %v2373_v12  ;;  %v9780_v3 = vld [vmem:[#allocation47_spill] sm:$0xff] }
 0x26d   : > { %v2772_v47 = vadd.f32 %v8388_v37, %v9780_v3  ;;  %v9782_v12 = vld [vmem:[#allocation51_spill] sm:$0xff] }
 0x26e   : > { %3288 = vrot.lane.b32.xlu1 %v2985_v17, %s6657_s14  ;;  %v2503_v17 = vadd.f32 %v8218_v26, %v2017_v2  ;;  %v2683_v26 = vadd.f32 %v8379_v30, %v9774_v25  ;;  %v9778_v30 = vld [vmem:[#allocation12_spill] sm:$0xff]  ;;  %v2969_v2 = vpop.f32.mrf.mxu1 }
 0x26f   : > { %3218 = vrot.lane.b32.xlu0 %v8560_v48, %s6657_s14  ;;  %v1802_v42 = vadd.f32 %v9779_v10, %v9778_v30  ;;  %v9787_v30 = vld [vmem:[#allocation58_spill] sm:$0xff] }
 0x270   : > { %v2989_v8 = vadd.f32 %v2965_v62, %v2503_v17  ;;  %v2971_v40 = vpop.f32.mrf.mxu1  ;;  %v9783_v17 = vld [vmem:[#allocation53_spill] sm:$0xff] }
 0x271   : > { %v2288_v23 = vadd.f32 %v9782_v12, %v1802_v42  ;;  %v9788_v42 = vld [vmem:[#allocation56_spill] sm:$0xff] }
 0x272   : > { %3220 = vrot.lane.b32.xlu1 %v2857_v32, %s6657_s14  ;;  %v1713_v32 = vadd.f32 %v9773_v59, %v9772_v16 }
 0x273   : > { %3290 = vrot.lane.b32.xlu0 %v8567_v45, %s6657_s14 }
 0x274   : > { %v2199_v28 = vadd.f32 %v9776_v6, %v1713_v32  ;;  %v9785_v6 = vld [vmem:[#allocation23_spill] sm:$0xff] }
 0x276   : > { %3292 = vrot.lane.b32.xlu1 %v2987_v35, %s6657_s14  ;;  %v2685_v14 = vadd.f32 %v8414_v24, %v2199_v28  ;;  %v8614_v35 = vadd.f32 %v8377_v11, %v9777_v34  ;;  %v2839_v24 = vpop.f32.mrf.mxu0  ;;  %v2774_v11 = vadd.f32 %v8437_v50, %v2288_v23  ;;  %v2973_v50 = vpop.f32.mrf.mxu1  ;;  %v1534_v28 = vadd.f32 %v9785_v6, %v9784_v60  ;;  %v9792_v60 = vld [vmem:[#allocation67_spill] sm:$0xff] }
 0x277   : > { %3222 = vrot.lane.b32.xlu0 %v8576_v9, %s6657_s14  ;;  %v8657_v3 = vadd.f32 %v2973_v50, %v9788_v42 }
 0x278   : > { %v2841_v62 = vpop.f32.mrf.mxu0 }
 0x279   : > { %v2861_v37 = vadd.f32 %v2841_v62, %v8234_v19 }
 0x27a   : > { %3224 = vrot.lane.b32.xlu1 %v2859_v15, %s6657_s14  ;;  %v8633_v15 = vadd.f32 %v2839_v24, %v8222_v52  ;;  %v2843_v16 = vpop.f32.mrf.mxu0  ;;  %v2991_v52 = vadd.f32 %v2971_v40, %v8242_v20 }
 0x27b   : > { %3294 = vrot.lane.b32.xlu0 %v8586_v33, %s6657_s14  ;;  %v8647_v25 = vadd.f32 %v2843_v16, %v8248_v46  ;;  %v2975_v46 = vpop.f32.mrf.mxu1 }
 0x27e   : > { %3296 = vrot.lane.b32.xlu1 %v2989_v8, %s6657_s14  ;;  %v8640_v8 = vadd.f32 %v2969_v2, %v9783_v17  ;;  %v9790_v2 = vld [vmem:[#allocation61_spill] sm:$0xff]  ;;  %v9791_v17 = vld [vmem:[#allocation64_spill] sm:$0xff] }
 0x27f   : > { %3034 = vrot.lane.b32.xlu0 %v8594_v29, %s6657_s14 }
 0x282   : > { %3036 = vrot.lane.b32.xlu1 %v2683_v26, %s6657_s14  ;;  %v2845_v26 = vpop.f32.mrf.mxu0 }
 0x283   : > { %3038 = vrot.lane.b32.xlu0 %v8605_v39, %s6657_s14  ;;  %v2863_v10 = vadd.f32 %v2845_v26, %v9787_v30 }
 0x286   : > { %3040 = vrot.lane.b32.xlu1 %v2685_v14, %s6657_s14  ;;  %v9786_v14 = vld [vmem:[#allocation37_spill] sm:$0xff] }
 0x287   : > { %3107 = vrot.lane.b32.xlu0 %v8614_v35, %s6657_s14  ;;  %v2021_v34 = vadd.f32 %v9786_v14, %v1534_v28 }
 0x289   : > { %v2507_v24 = vadd.f32 %v9789_v36, %v2021_v34 }
 0x28a   : > { %3109 = vrot.lane.b32.xlu1 %v2772_v47, %s6657_s14 }
 0x28b   : > { %3111 = vrot.lane.b32.xlu0 %v8625_v18, %s6657_s14 }
 0x28e   : > { %3113 = vrot.lane.b32.xlu1 %v2774_v11, %s6657_s14  ;;  %v2993_v11 = vadd.f32 %v2975_v46, %v2507_v24 }
 0x28f   : > { %3226 = vrot.lane.b32.xlu0 %v8633_v15, %s6657_s14 }
 0x291   : > { %v3011_v59 = vpop.permute.xlu0 %3010 }
 0x292   : > { %3228 = vrot.lane.b32.xlu1 %v2861_v37, %s6657_s14 }
 0x293   : > { %3298 = vrot.lane.b32.xlu0 %v8640_v8, %s6657_s14 }
 0x294   : > { %v3086_v32 = vpop.permute.xlu1 %3085 }
 0x295   : > { %v3084_v19 = vpop.permute.xlu0 %3083 }
 0x296   : > { %3300 = vrot.lane.b32.xlu1 %v2991_v52, %s6657_s14  ;;  %v3115_v23 = vsel %vm3042_vm2, %v3084_v19, %v3086_v32 }
 0x297   : > { %3230 = vrot.lane.b32.xlu0 %v8647_v25, %s6657_s14  ;;  %v3131_v16 = vmax.f32 %v9791_v17, %v3115_v23  ;;  %v9795_v17 = vld [vmem:[#allocation54_spill] sm:$0xff] }
 0x298   : > { %v3015_v20 = vpop.permute.xlu1 %3014 }
 0x299   : > { %v3013_v47 = vpop.permute.xlu0 %3012 }
 0x29a   : > { %3232 = vrot.lane.b32.xlu1 %v2863_v10, %s6657_s14  ;;  %v3043_v12 = vsel %vm3042_vm2, %v3011_v59, %v3013_v47  ;;  %v8672_v59 = vld [vmem:[%s9632_s2] ss:$0 sm:$0xff] }
 0x29b   : > { %3302 = vrot.lane.b32.xlu0 %v8657_v3, %s6657_s14  ;;  %v3059_v62 = vmax.f32 %v9790_v2, %v3043_v12 }
 0x29c   : > { %v3017_v37 = vpop.permute.xlu1 %3016 }
 0x29d   : > { %v3088_v40 = vpop.permute.xlu0 %3087  ;;  %v3044_v52 = vsel %vm3042_vm2, %v3015_v20, %v3017_v37  ;;  %v3139_v50 = vmax.f32 %v3059_v62, %v3131_v16  ;;  %v9793_v62 = vmov 0   ;;  %v9794_v37 = vld [vmem:[#allocation52_spill] sm:$0xff] }
 0x29e   : > { %3304 = vrot.lane.b32.xlu1 %v2993_v11, %s6657_s14  ;;  %v3060_v6 = vmax.f32 %v9792_v60, %v3044_v52 }
 0x29f   : > { %v3154_v14 = vadd.f32 %v8672_v59, %v3139_v50 }
 0x2a0   : > { %v3090_v26 = vpop.permute.xlu1 %3089 }
 0x2a1   : > { %v3116_v32 = vsel %vm3042_vm2, %v3088_v40, %v3090_v26  ;;  %v3019_v19 = vpop.permute.xlu0 %3018  ;;  %v3162_v42 = vmax.f32 %v3154_v14, 0.0 }
 0x2a2   : > { %v3132_v28 = vmax.f32 %v8332_v56, %v3116_v32  ;;  %v9796_v32 = vld [vmem:[#allocation55_spill] sm:$0xff] }
 0x2a4   : > { %v3140_v34 = vmax.f32 %v3060_v6, %v3132_v28  ;;  %v3021_v30 = vpop.permute.xlu1 %3020  ;;  %v9797_v6 = vld [vmem:[#allocation57_spill] sm:$0xff] }
 0x2a5   : > { %v3092_v10 = vpop.permute.xlu0 %3091  ;;  %v3045_v23 = vsel %vm3042_vm2, %v3019_v19, %v3021_v30  ;;  %v9798_v30 = vld [vmem:[#allocation60_spill] sm:$0xff] }
 0x2a6   : > { %v3155_v20 = vadd.f32 %v8672_v59, %v3140_v34  ;;  %v3061_v40 = vmax.f32 %v8341_v61, %v3045_v23  ;;  %v9801_v23 = vld [vmem:[#allocation65_spill] sm:$0xff] }
 0x2a8   : > { %v3163_v46 = vmax.f32 %v3155_v20, 0.0  ;;  %v3094_v47 = vpop.permute.xlu1 %3093  ;;  %v9799_v20 = vld [vmem:[#allocation62_spill] sm:$0xff] }
 0x2a9   : > { %v3117_v36 = vsel %vm3042_vm2, %v3092_v10, %v3094_v47  ;;  %v3023_v24 = vpop.permute.xlu0 %3022 }
 0x2aa   : > { %v8680_v12 = vpack.c.bf16 %v3163_v46, %v3162_v42  ;;  %v3133_v56 = vmax.f32 %v8348_v21, %v3117_v36 }
 0x2ac   : > { %v3025_v11 = vpop.permute.xlu1 %3024  ;;  %5857 = vmatmul.mubr.msk.bf16.vlgmr.msra.gmra.mxu1 %vm3458_vm3, %v8680_v12  ;;  %v3141_v52 = vmax.f32 %v3061_v40, %v3133_v56  ;;  %v9802_v40 = vld [vmem:[#allocation66_spill] sm:$0xff] }
 0x2ad   : > { %v3096_v2 = vpop.permute.xlu0 %3095  ;;  %3645 = vmatprep.mubr.bf16.mxu1 %v9793_v62  ;;  %3746 = vmatpush1.bf16.msra.mxu1 %v9794_v37  ;;  %v3046_v16 = vsel %vm3042_vm2, %v3023_v24, %v3025_v11 }
 0x2ae   : > { %3747 = vmatprep.subr.bf16.mxu1 %v9795_v17  ;;  %v3062_v19 = vmax.f32 %v8357_v58, %v3046_v16  ;;  %v3156_v28 = vadd.f32 %v8672_v59, %v3141_v52  ;;  %v9803_v16 = vld [vmem:[#allocation38_spill] sm:$0xff] }
 0x2af   : > { %v8716_v52 = vld [vmem:[%s9633_s3 + $0x114] ss:$8 sps:$4 sm:$0xff]  }
 0x2b0   : > { %v3098_v50 = vpop.permute.xlu1 %3097  ;;  %v3164_v42 = vmax.f32 %v3156_v28, 0.0 }
 0x2b1   : > { %v3118_v26 = vsel %vm3042_vm2, %v3096_v2, %v3098_v50  ;;  %v3027_v21 = vpop.permute.xlu0 %3026  ;;  %3748 = vmatpush1.bf16.msra.mxu1 %v9796_v32 }
 0x2b2   : > { %v3134_v60 = vmax.f32 %v8366_v7, %v3118_v26  ;;  %3749 = vmatprep.subr.bf16.mxu1 %v9797_v6  ;;  %v9800_v7 = vld [vmem:[#allocation63_spill] sm:$0xff] }
 0x2b4   : > { %v3142_v61 = vmax.f32 %v3062_v19, %v3134_v60  ;;  %v3029_v14 = vpop.permute.xlu1 %3028  ;;  %v9804_v19 = vld [vmem:[#allocation68_spill] sm:$0xff] }
 0x2b5   : > { %v3100_v34 = vpop.permute.xlu0 %3099  ;;  %3750 = vmatpush1.bf16.msra.mxu1 %v9798_v30  ;;  %v3047_v56 = vsel %vm3042_vm2, %v3027_v21, %v3029_v14 }
 0x2b6   : > { %v3157_v10 = vadd.f32 %v8672_v59, %v3142_v61  ;;  %3751 = vmatprep.subr.bf16.mxu1 %v9799_v20  ;;  %v3063_v17 = vmax.f32 %v8375_v53, %v3047_v56 }
 0x2b8   : > { %v3165_v46 = vmax.f32 %v3157_v10, 0.0  ;;  %v3102_v47 = vpop.permute.xlu1 %3101 }
 0x2b9   : > { %v3119_v58 = vsel %vm3042_vm2, %v3100_v34, %v3102_v47  ;;  %v3031_v36 = vpop.permute.xlu0 %3030  ;;  %3752 = vmatpush1.bf16.msra.mxu1 %v9800_v7 }
 0x2ba   : > { %v8702_v24 = vpack.c.bf16 %v3165_v46, %v3164_v42  ;;  %3753 = vmatprep.subr.bf16.mxu1 %v9801_v23  ;;  %v3135_v11 = vmax.f32 %v8386_v5, %v3119_v58 }
 0x2bc   : > { %v3033_v2 = vpop.permute.xlu1 %3032  ;;  %5858 = vmatmul.mubr.msk.bf16.gmra.mxu1 %vm3458_vm3, %v8702_v24  ;;  %v3143_v50 = vmax.f32 %v3063_v17, %v3135_v11 }
 0x2bd   : > { %v3104_v37 = vpop.permute.xlu0 %3103  ;;  %3655 = vmatprep.mubr.bf16.mxu1 %v9793_v62  ;;  %3754 = vmatpush1.bf16.msra.mxu1 %v9802_v40  ;;  %v3048_v5 = vsel %vm3042_vm2, %v3031_v36, %v3033_v2 }
 0x2be   : > { %3755 = vmatprep.subr.bf16.mxu1 %v9803_v16  ;;  %v3064_v60 = vmax.f32 %v8410_v57, %v3048_v5  ;;  %v3158_v6 = vadd.f32 %v8672_v59, %v3143_v50 }
 0x2c0   : > { %v3106_v26 = vpop.permute.xlu1 %3105  ;;  %v3166_v30 = vmax.f32 %v3158_v6, 0.0  ;;  %v8753_v6 = vld [vmem:[%s9633_s3 + $0x104] ss:$8 sps:$4 sm:$0xff]  }
 0x2c1   : > { %v3120_v21 = vsel %vm3042_vm2, %v3104_v37, %v3106_v26  ;;  %v3203_v32 = vpop.permute.xlu0 %3202  ;;  %3756 = vmatpush1.bf16.msra.mxu1 %v9804_v19 }
 0x2c2   : > { %v3136_v53 = vmax.f32 %v8435_v54, %v3120_v21  ;;  %3968 = vmatprep.subr.bf16.mxu1 %v8716_v52 }
 0x2c4   : > { %v3144_v28 = vmax.f32 %v3064_v60, %v3136_v53  ;;  %v3205_v61 = vpop.permute.xlu1 %3204 }
 0x2c5   : > { %v3275_v14 = vpop.permute.xlu0 %3274  ;;  %v3234_v57 = vsel %vm3042_vm2, %v3203_v32, %v3205_v61 }
 0x2c6   : > { %v3159_v34 = vadd.f32 %v8672_v59, %v3144_v28  ;;  %v3250_v7 = vmax.f32 %v8456_v55, %v3234_v57 }
 0x2c8   : > { %v3167_v10 = vmax.f32 %v3159_v34, 0.0  ;;  %v3277_v20 = vpop.permute.xlu1 %3276 }
 0x2c9   : > { %v3306_v42 = vsel %vm3042_vm2, %v3275_v14, %v3277_v20  ;;  %v3207_v46 = vpop.permute.xlu0 %3206 }
 0x2ca   : > { %v8727_v47 = vpack.c.bf16 %v3167_v10, %v3166_v30  ;;  %v3322_v54 = vmax.f32 %v8475_v13, %v3306_v42  ;;  %v8776_v10 = vld [vmem:[%s9633_s3 + $0xf4] ss:$8 sps:$4 sm:$0xff]  }
 0x2cc   : > { %v3209_v58 = vpop.permute.xlu1 %3208  ;;  %5859 = vmatmul.mubr.msk.bf16.gmra.mxu1 %vm3458_vm3, %v8727_v47  ;;  %v3330_v56 = vmax.f32 %v3250_v7, %v3322_v54  ;;  %v9805_v54 = vld [vmem:[#allocation9_spill] sm:$0xff] }
 0x2cd   : > { %v3279_v36 = vpop.permute.xlu0 %3278  ;;  %3773 = vmatprep.mubr.bf16.mxu1 %v9793_v62  ;;  %v3235_v23 = vsel %vm3042_vm2, %v3207_v46, %v3209_v58  ;;  %v8793_v58 = vld [vmem:[%s9633_s3 + $0xe4] ss:$8 sps:$4 sm:$0xff]  }
 0x2ce   : > { %v3251_v40 = vmax.f32 %v8496_v1, %v3235_v23  ;;  %v3338_v17 = vadd.f32 %v8672_v59, %v3330_v56  ;;  %v8747_v1 = vld [vmem:[%s9633_s3 + $0x110] ss:$8 sps:$4 sm:$0xff]   ;;  %v9806_v23 = vld [vmem:[#allocation24_spill] sm:$0xff] }
 0x2cf   : > { %v8802_v56 = vld [vmem:[%s9633_s3 + $0xe0] ss:$8 sps:$4 sm:$0xff]  }
 0x2d0   : > { %v3281_v11 = vpop.permute.xlu1 %3280  ;;  %v3346_v21 = vmax.f32 %v3338_v17, 0.0 }
 0x2d1   : > { %v3307_v2 = vsel %vm3042_vm2, %v3279_v36, %v3281_v11  ;;  %v3211_v37 = vpop.permute.xlu0 %3210  ;;  %v9807_v11 = vld [vmem:[#allocation39_spill] sm:$0xff] }
 0x2d2   : > { %v3323_v13 = vmax.f32 %v8518_v51, %v3307_v2  ;;  %v8809_v2 = vld [vmem:[%s9633_s3 + $0xd4] ss:$8 sps:$4 sm:$0xff]  }
 0x2d4   : > { %v3331_v16 = vmax.f32 %v3251_v40, %v3323_v13  ;;  %v3213_v5 = vpop.permute.xlu1 %3212 }
 0x2d5   : > { %v3283_v50 = vpop.permute.xlu0 %3282  ;;  %v3236_v51 = vsel %vm3042_vm2, %v3211_v37, %v3213_v5 }
 0x2d6   : > { %v3339_v26 = vadd.f32 %v8672_v59, %v3331_v16  ;;  %v3252_v34 = vmax.f32 %v8527_v22, %v3236_v51 }
 0x2d8   : > { %v3347_v55 = vmax.f32 %v3339_v26, 0.0  ;;  %v3285_v32 = vpop.permute.xlu1 %3284  ;;  %v8819_v26 = vld [vmem:[%s9633_s3 + $0xd0] ss:$8 sps:$4 sm:$0xff]  }
 0x2d9   : > { %v3308_v19 = vsel %vm3042_vm2, %v3283_v50, %v3285_v32  ;;  %v3215_v60 = vpop.permute.xlu0 %3214  ;;  %v9808_v50 = vld [vmem:[#allocation40_spill] sm:$0xff] }
 0x2da   : > { %v8742_v53 = vpack.c.bf16 %v3347_v55, %v3346_v21  ;;  %v3324_v28 = vmax.f32 %v8534_v44, %v3308_v19  ;;  %v8768_v44 = vld [vmem:[%s9633_s3 + $0x100] ss:$8 sps:$4 sm:$0xff]   ;;  %v8827_v55 = vld [vmem:[%s9633_s3 + $0xc4] ss:$8 sps:$4 sm:$0xff]  }
 0x2dc   : > { %v3217_v61 = vpop.permute.xlu1 %3216  ;;  %5842 = vmatmul.mubr.msk.bf16.vlgmr.msra.gmra.mxu0 %vm3458_vm3, %v8742_v53  ;;  %5863 = vmatmul.mubr.msk.bf16.vlgmr.msra.gmra.mxu1 %vm3458_vm3, %v8742_v53  ;;  %v3332_v22 = vmax.f32 %v3252_v34, %v3324_v28  ;;  %v8850_v28 = vld [vmem:[%s9633_s3 + $0x174] ss:$8 sps:$4 sm:$0xff]  }
 0x2dd   : > { %v3287_v14 = vpop.permute.xlu0 %3286  ;;  %3510 = vmatprep.mubr.bf16.mxu0 %v9793_v62  ;;  %3783 = vmatprep.mubr.bf16.mxu1 %v9793_v62  ;;  %v3237_v30 = vsel %vm3042_vm2, %v3215_v60, %v3217_v61 }
 0x2de   : > { %3683 = vmatpush1.bf16.msra.mxu0 %v8403_v49  ;;  %3969 = vmatpush1.bf16.msra.mxu1 %v8747_v1  ;;  %v3253_v46 = vmax.f32 %v8543_v41, %v3237_v30  ;;  %v3340_v41 = vadd.f32 %v8672_v59, %v3332_v22 }
 0x2df   : > { %3684 = vmatprep.subr.bf16.mxu0 %v8422_v31  ;;  %3970 = vmatprep.subr.bf16.mxu1 %v8753_v6  ;;  %v8786_v31 = vld [vmem:[%s9633_s3 + $0xf0] ss:$8 sps:$4 sm:$0xff]  }
 0x2e0   : > { %v3289_v49 = vpop.permute.xlu1 %3288  ;;  %v3348_v37 = vmax.f32 %v3340_v41, 0.0 }
 0x2e1   : > { %v3309_v20 = vsel %vm3042_vm2, %v3287_v14, %v3289_v49  ;;  %v3219_v42 = vpop.permute.xlu0 %3218 }
 0x2e2   : > { %v3325_v57 = vmax.f32 %v8553_v0, %v3309_v20  ;;  %3685 = vmatpush1.bf16.msra.mxu0 %v8429_v63  ;;  %3971 = vmatpush1.bf16.msra.mxu1 %v8768_v44 }
 0x2e3   : > { %3686 = vmatprep.subr.bf16.mxu0 %v9805_v54  ;;  %3972 = vmatprep.subr.bf16.mxu1 %v8776_v10 }
 0x2e4   : > { %v3333_v0 = vmax.f32 %v3253_v46, %v3325_v57  ;;  %v3221_v63 = vpop.permute.xlu1 %3220 }
 0x2e5   : > { %v3291_v36 = vpop.permute.xlu0 %3290  ;;  %v3238_v21 = vsel %vm3042_vm2, %v3219_v42, %v3221_v63  ;;  %v3180_v63 = vunpack.c.l.b16 %v8702_v24 }
 0x2e6   : > { %v3341_v7 = vadd.f32 %v8672_v59, %v3333_v0  ;;  %3687 = vmatpush1.bf16.msra.mxu0 %v9806_v23  ;;  %3973 = vmatpush1.bf16.msra.mxu1 %v8786_v31 }
 0x2e7   : > { %3688 = vmatprep.subr.bf16.mxu0 %v9807_v11  ;;  %3974 = vmatprep.subr.bf16.mxu1 %v8793_v58 }
 0x2e8   : > { %v3349_v40 = vmax.f32 %v3341_v7, 0.0  ;;  %v3293_v13 = vpop.permute.xlu1 %3292 }
 0x2e9   : > { %v3310_v17 = vsel %vm3042_vm2, %v3291_v36, %v3293_v13  ;;  %v3223_v16 = vpop.permute.xlu0 %3222 }
 0x2ea   : > { %v8812_v5 = vpack.c.bf16 %v3349_v40, %v3348_v37  ;;  %3689 = vmatpush1.bf16.msra.mxu0 %v9808_v50  ;;  %3975 = vmatpush1.bf16.msra.mxu1 %v8802_v56  ;;  %v3326_v32 = vmax.f32 %v8567_v45, %v3310_v17  ;;  %v8842_v45 = vld [vmem:[%s9633_s3 + $0xc0] ss:$8 sps:$4 sm:$0xff]   ;;  %v3179_v37 = vunpack.c.h.b16 %v8680_v12  ;;  %v3363_v40 = vunpack.c.h.b16 %v8742_v53 }
 0x2eb   : > { %3690 = vmatprep.subr.bf16.mxu0 %v8482_v43  ;;  %3976 = vmatprep.subr.bf16.mxu1 %v8809_v2  ;;  %v3254_v43 = vmax.f32 %v8560_v48, %v3238_v21 }
 0x2ec   : > { %v3225_v19 = vpop.permute.xlu1 %3224  ;;  %5843 = vmatmul.mubr.msk.bf16.gmra.mxu0 %vm3458_vm3, %v8812_v5  ;;  %5864 = vmatmul.mubr.msk.bf16.gmra.mxu1 %vm3458_vm3, %v8812_v5  ;;  %v3364_v36 = vunpack.c.l.b16 %v8812_v5  ;;  %v8879_v21 = vpack.c.b16 %v3180_v63, %v3179_v37  ;;  %v3183_v63 = vunpack.c.h.b16 %v8727_v47 }
 0x2ed   : > { %v3295_v60 = vpop.permute.xlu0 %3294  ;;  %3520 = vmatprep.mubr.bf16.mxu0 %v9793_v62  ;;  %3793 = vmatprep.mubr.bf16.mxu1 %v9793_v62  ;;  %v3239_v51 = vsel %vm3042_vm2, %v3223_v16, %v3225_v19  ;;  %v3334_v48 = vmax.f32 %v3254_v43, %v3326_v32 }
 0x2ee   : > { %3691 = vmatpush1.bf16.msra.mxu0 %v8489_v4  ;;  %3977 = vmatpush1.bf16.msra.mxu1 %v8819_v26  ;;  %v3255_v34 = vmax.f32 %v8576_v9, %v3239_v51  ;;  %v8881_v32 = vpack.c.b16 %v3364_v36, %v3363_v40  ;;  %v3182_v51 = vunpack.c.l.b16 %v8727_v47 }
 0x2ef   : > { %3692 = vmatprep.subr.bf16.mxu0 %v8506_v38  ;;  %3978 = vmatprep.subr.bf16.mxu1 %v8827_v55  ;;  %v3342_v38 = vadd.f32 %v8672_v59, %v3334_v48 }
 0x2f0   : > { %v3297_v4 = vpop.permute.xlu1 %3296 }
 0x2f1   : > { %v3311_v61 = vsel %vm3042_vm2, %v3295_v60, %v3297_v4  ;;  %v3035_v14 = vpop.permute.xlu0 %3034  ;;  %v3350_v46 = vmax.f32 %v3342_v38, 0.0  ;;  %v8911_v4 = vld [vmem:[%s9633_s3 + $0x160] ss:$8 sps:$4 sm:$0xff]  }
 0x2f2   : > { %v3327_v30 = vmax.f32 %v8586_v33, %v3311_v61  ;;  %3693 = vmatpush1.bf16.msra.mxu0 %v8513_v27  ;;  %3979 = vmatpush1.bf16.msra.mxu1 %v8842_v45 }
 0x2f3   : > { %3881 = vmatprep.subr.bf16.mxu0 %v8716_v52  ;;  %4195 = vmatprep.subr.bf16.mxu1 %v8850_v28 }
 0x2f4   : > { %v3335_v22 = vmax.f32 %v3255_v34, %v3327_v30  ;;  %v3037_v49 = vpop.permute.xlu1 %3036  ;;  %v3181_v34 = vunpack.c.h.b16 %v8702_v24 }
 0x2f5   : > { %v3039_v20 = vpop.permute.xlu0 %3038  ;;  %v3049_v27 = vsel %vm3042_vm2, %v3035_v14, %v3037_v49 }
 0x2f6   : > { %v3343_v42 = vadd.f32 %v8672_v59, %v3335_v22  ;;  %v3065_v7 = vmax.f32 %v8594_v29, %v3049_v27  ;;  %v8920_v49 = vpack.c.b16 %v3182_v51, %v3181_v34 }
 0x2f8   : > { %v3351_v57 = vmax.f32 %v3343_v42, 0.0  ;;  %v3041_v9 = vpop.permute.xlu1 %3040  ;;  %v6516_v42 = vld [vmem:[%s9633_s3 + $0x154] ss:$8 sps:$4 sm:$0xff]  }
 0x2f9   : > { %v3108_v54 = vpop.permute.xlu0 %3107  ;;  %v3050_v11 = vsel %vm3042_vm2, %v3039_v20, %v3041_v9 }
 0x2fa   : > { %v8861_v33 = vpack.c.bf16 %v3351_v57, %v3350_v46  ;;  %v3066_v19 = vmax.f32 %v8605_v39, %v3050_v11  ;;  %v8898_v39 = vld [vmem:[%s9633_s3 + $0x164] ss:$8 sps:$4 sm:$0xff]   ;;  %v6520_v11 = vld [vmem:[%s9633_s3 + $0x130] ss:$8 sps:$4 sm:$0xff]  }
 0x2fc   : > { %v3110_v41 = vpop.permute.xlu1 %3109  ;;  %5844 = vmatmul.mubr.msk.bf16.gmra.mxu0 %vm3458_vm3, %v8861_v33  ;;  %5865 = vmatmul.mubr.msk.bf16.gmra.mxu1 %vm3458_vm3, %v8861_v33  ;;  %v3366_v48 = vunpack.c.l.b16 %v8861_v33 }
 0x2fd   : > { %v3121_v52 = vsel %vm3042_vm2, %v3108_v54, %v3110_v41  ;;  %v3112_v0 = vpop.permute.xlu0 %3111  ;;  %3710 = vmatprep.mubr.bf16.mxu0 %v9793_v62  ;;  %3996 = vmatprep.mubr.bf16.mxu1 %v9793_v62  ;;  %v6517_v41 = vld [vmem:[%s9633_s3 + $0x140] ss:$8 sps:$4 sm:$0xff]  }
 0x2fe   : > { %v3137_v23 = vmax.f32 %v8614_v35, %v3121_v52  ;;  %v8888_v35 = vld [vmem:[%s9633_s3 + $0x170] ss:$8 sps:$4 sm:$0xff]  }
 0x300   : > { %v3145_v13 = vmax.f32 %v3065_v7, %v3137_v23  ;;  %v3114_v17 = vpop.permute.xlu1 %3113 }
 0x301   : > { %v3122_v16 = vsel %vm3042_vm2, %v3112_v0, %v3114_v17  ;;  %v3227_v50 = vpop.permute.xlu0 %3226  ;;  %v6528_v17 = vld [vmem:[%s9633_s3 + $0x1d4] ss:$8 sps:$4 sm:$0xff]  }
 0x302   : > { %v3138_v29 = vmax.f32 %v8625_v18, %v3122_v16  ;;  %v3160_v12 = vadd.f32 %v8672_v59, %v3145_v13 }
 0x304   : > { %v3146_v53 = vmax.f32 %v3066_v19, %v3138_v29  ;;  %v3229_v60 = vpop.permute.xlu1 %3228  ;;  %5860 = vmatmul.mubr.msk.bf16.vlgmr.msra.gmra.mxu0 %vm3458_vm3, %v8879_v21  ;;  %5893 = vmatmul.mubr.msk.bf16.vlgmr.msra.gmra.mxu1 %vm3458_vm3, %v8881_v32  ;;  %v6532_v19 = vld [vmem:[%s9633_s3 + $0x1b0] ss:$8 sps:$4 sm:$0xff]   ;;  %v6537_v29 = vld [vmem:[%s9633_s3 + $0x1a4] ss:$8 sps:$4 sm:$0xff]  }
 0x305   : > { %3882 = vmatpush1.bf16.msra.mxu0 %v8747_v1  ;;  %v3299_v18 = vpop.permute.xlu0 %3298  ;;  %3720 = vmatprep.mubr.bf16.mxu0 %v9793_v62  ;;  %v3168_v1 = vmax.f32 %v3160_v12, 0.0  ;;  %v3240_v46 = vsel %vm3042_vm2, %v3227_v50, %v3229_v60  ;;  %v6529_v50 = vld [vmem:[%s9633_s3 + $0x1c0] ss:$8 sps:$4 sm:$0xff]   ;;  %v6540_v12 = vld [vmem:[%s9633_s3 + $0x194] ss:$8 sps:$4 sm:$0xff]  }
 0x306   : > { %v3161_v43 = vadd.f32 %v8672_v59, %v3146_v53  ;;  %3883 = vmatprep.subr.bf16.mxu0 %v8753_v6  ;;  %4006 = vmatprep.mubr.bf16.mxu1 %v9793_v62  ;;  %v3365_v6 = vunpack.c.h.b16 %v8812_v5  ;;  %v3256_v27 = vmax.f32 %v8633_v15, %v3240_v46  ;;  %v6522_v15 = vld [vmem:[%s9633_s3 + $0x134] ss:$8 sps:$4 sm:$0xff]   ;;  %v6538_v53 = vld [vmem:[%s9633_s3 + $0x190] ss:$8 sps:$4 sm:$0xff]   ;;  %v6543_v60 = vld [vmem:[%s9633_s3 + $0x184] ss:$8 sps:$4 sm:$0xff]  }
 0x307   : > { %4196 = vmatpush1.bf16.msra.mxu1 %v8888_v35 }
 0x308   : > { %v3169_v61 = vmax.f32 %v3161_v43, 0.0  ;;  %v3301_v14 = vpop.permute.xlu1 %3300  ;;  %4197 = vmatprep.subr.bf16.mxu1 %v8898_v39  ;;  %v8923_v20 = vpack.c.b16 %v3366_v48, %v3365_v6 }
 0x309   : > { %v3312_v30 = vsel %vm3042_vm2, %v3299_v18, %v3301_v14  ;;  %3884 = vmatpush1.bf16.msra.mxu0 %v8768_v44  ;;  %v3231_v22 = vpop.permute.xlu0 %3230  ;;  %v6514_v44 = vld [vmem:[%s9633_s3 + $0x150] ss:$8 sps:$4 sm:$0xff]  }
 0x30a   : > { %v8918_v38 = vpack.c.bf16 %v3169_v61, %v3168_v1  ;;  %3885 = vmatprep.subr.bf16.mxu0 %v8776_v10  ;;  %v3328_v57 = vmax.f32 %v8640_v8, %v3312_v30  ;;  %v6519_v10 = vld [vmem:[%s9633_s3 + $0x144] ss:$8 sps:$4 sm:$0xff]  }
 0x30b   : > { %4198 = vmatpush1.bf16.msra.mxu1 %v8911_v4 }
 0x30c   : > { %v3233_v9 = vpop.permute.xlu1 %3232  ;;  %5861 = vmatmul.mubr.msk.bf16.gmra.mxu0 %vm3458_vm3, %v8920_v49  ;;  %5894 = vmatmul.mubr.msk.bf16.gmra.mxu1 %vm3458_vm3, %v8923_v20  ;;  %v3184_v54 = vunpack.c.l.b16 %v8918_v38  ;;  %v3336_v52 = vmax.f32 %v3256_v27, %v3328_v57 }
 0x30d   : > { %3886 = vmatpush1.bf16.msra.mxu0 %v8786_v31  ;;  %3730 = vmatprep.mubr.bf16.mxu0 %v9793_v62  ;;  %v3241_v8 = vsel %vm3042_vm2, %v3231_v22, %v3233_v9  ;;  %v3303_v31 = vpop.permute.xlu0 %3302 }
 0x30e   : > { %3887 = vmatprep.subr.bf16.mxu0 %v8793_v58  ;;  %4199 = vmatprep.subr.bf16.mxu1 %v6516_v42  ;;  %v3257_v36 = vmax.f32 %v8647_v25, %v3241_v8  ;;  %v3668_v23 = vpack.c.b16 %v3184_v54, %v3183_v63  ;;  %v3344_v37 = vadd.f32 %v8672_v59, %v3336_v52  ;;  %v6525_v25 = vld [vmem:[%s9633_s3 + $0x124] ss:$8 sps:$4 sm:$0xff]  }
 0x30f   : > { %4200 = vmatpush1.bf16.msra.mxu1 %v6514_v44  ;;  %4016 = vmatprep.mubr.bf16.mxu1 %v9793_v62 }
 0x310   : > { %v3305_v0 = vpop.permute.xlu1 %3304  ;;  %4201 = vmatprep.subr.bf16.mxu1 %v6519_v10 }
 0x311   : > { %v3313_v58 = vsel %vm3042_vm2, %v3303_v31, %v3305_v0  ;;  %3888 = vmatpush1.bf16.msra.mxu0 %v8802_v56  ;;  %v6523_v56 = vld [vmem:[%s9633_s3 + $0x120] ss:$8 sps:$4 sm:$0xff]  }
 0x312   : > { %v3329_v7 = vmax.f32 %v8657_v3, %v3313_v58  ;;  %3889 = vmatprep.subr.bf16.mxu0 %v8809_v2  ;;  %v3352_v2 = vmax.f32 %v3344_v37, 0.0 }
 0x313   : > { %4202 = vmatpush1.bf16.msra.mxu1 %v6517_v41 }
 0x314   : > { %v3337_v40 = vmax.f32 %v3257_v36, %v3329_v7  ;;  %5862 = vmatmul.mubr.msk.bf16.gmra.mxu0 %vm3458_vm3, %v3668_v23  ;;  %4203 = vmatprep.subr.bf16.mxu1 %v6522_v15 }
 0x315   : > { %3890 = vmatpush1.bf16.msra.mxu0 %v8819_v26  ;;  %3909 = vmatprep.mubr.bf16.mxu0 %v9793_v62 }
 0x316   : > { %v3345_v3 = vadd.f32 %v8672_v59, %v3337_v40  ;;  %3891 = vmatprep.subr.bf16.mxu0 %v8827_v55  ;;  %v3367_v55 = vunpack.c.h.b16 %v8861_v33 }
 0x317   : > { %4204 = vmatpush1.bf16.msra.mxu1 %v6520_v11 }
 0x318   : > { %v3353_v13 = vmax.f32 %v3345_v3, 0.0  ;;  %4205 = vmatprep.subr.bf16.mxu1 %v6525_v25 }
 0x319   : > { %3892 = vmatpush1.bf16.msra.mxu0 %v8842_v45  ;;  %v6526_v45 = vld [vmem:[%s9633_s3 + $0x1d0] ss:$8 sps:$4 sm:$0xff]  }
 0x31a   : > { %v8979_v26 = vpack.c.bf16 %v3353_v13, %v3352_v2  ;;  %4116 = vmatprep.subr.bf16.mxu0 %v8850_v28  ;;  %v6531_v28 = vld [vmem:[%s9633_s3 + $0x1c4] ss:$8 sps:$4 sm:$0xff]  }
 0x31b   : > { %4206 = vmatpush1.bf16.msra.mxu1 %v6523_v56 }
 0x31c   : > { %v3368_v59 = vunpack.c.l.b16 %v8979_v26  ;;  %5890 = vmatmul.mubr.msk.bf16.vlgmr.msra.gmra.mxu0 %vm3458_vm3, %v8879_v21  ;;  %4422 = vmatprep.subr.bf16.mxu1 %v6528_v17  ;;  %v6534_v21 = vld [vmem:[%s9633_s3 + $0x1b4] ss:$8 sps:$4 sm:$0xff]  }
 0x31d   : > { %4117 = vmatpush1.bf16.msra.mxu0 %v8888_v35  ;;  %3919 = vmatprep.mubr.bf16.mxu0 %v9793_v62  ;;  %v6535_v35 = vld [vmem:[%s9633_s3 + $0x1a0] ss:$8 sps:$4 sm:$0xff]  }
 0x31e   : > { %v3954_v16 = vpack.c.b16 %v3368_v59, %v3367_v55  ;;  %4118 = vmatprep.subr.bf16.mxu0 %v8898_v39 }
 0x320   : > { %5895 = vmatmul.mubr.msk.bf16.gmra.mxu1 %vm3458_vm3, %v3954_v16 }
 0x321   : > { %4119 = vmatpush1.bf16.msra.mxu0 %v8911_v4  ;;  %4223 = vmatprep.mubr.bf16.mxu1 %v9793_v62 }
 0x322   : > { %4120 = vmatprep.subr.bf16.mxu0 %v6516_v42 }
 0x324   : > { %5891 = vmatmul.mubr.msk.bf16.gmra.mxu0 %vm3458_vm3, %v8920_v49 }
 0x325   : > { %4121 = vmatpush1.bf16.msra.mxu0 %v6514_v44  ;;  %3929 = vmatprep.mubr.bf16.mxu0 %v9793_v62 }
 0x326   : > { %4122 = vmatprep.subr.bf16.mxu0 %v6519_v10 }
 0x328   : > { %5923 = vmatmul.mubr.msk.bf16.vlgmr.msra.gmra.mxu1 %vm3458_vm3, %v8702_v24 }
 0x329   : > { %4123 = vmatpush1.bf16.msra.mxu0 %v6517_v41  ;;  %4423 = vmatpush1.bf16.msra.mxu1 %v6526_v45 }
 0x32a   : > { %4124 = vmatprep.subr.bf16.mxu0 %v6522_v15  ;;  %4424 = vmatprep.subr.bf16.mxu1 %v6531_v28 }
 0x32b   : > { %4233 = vmatprep.mubr.bf16.mxu1 %v9793_v62 }
 0x32c   : > { %5892 = vmatmul.mubr.msk.bf16.gmra.mxu0 %vm3458_vm3, %v3668_v23 }
 0x32d   : > { %4125 = vmatpush1.bf16.msra.mxu0 %v6520_v11  ;;  %4425 = vmatpush1.bf16.msra.mxu1 %v6529_v50 }
 0x32e   : > { %4126 = vmatprep.subr.bf16.mxu0 %v6525_v25  ;;  %4426 = vmatprep.subr.bf16.mxu1 %v6534_v21 }
 0x32f   : > { %4144 = vmatprep.mubr.bf16.mxu0 %v9793_v62 }
 0x330   : > { %5924 = vmatmul.mubr.msk.bf16.gmra.mxu1 %vm3458_vm3, %v8727_v47 }
 0x331   : > { %4127 = vmatpush1.bf16.msra.mxu0 %v6523_v56  ;;  %4427 = vmatpush1.bf16.msra.mxu1 %v6532_v19 }
 0x332   : > { %4343 = vmatprep.subr.bf16.mxu0 %v6528_v17  ;;  %4428 = vmatprep.subr.bf16.mxu1 %v6537_v29 }
 0x333   : > { %4243 = vmatprep.mubr.bf16.mxu1 %v9793_v62 }
 0x334   : > { %5920 = vmatmul.mubr.msk.bf16.vlgmr.msra.gmra.mxu0 %vm3458_vm3, %v8881_v32  ;;  %v6541_v32 = vld [vmem:[%s9633_s3 + $0x180] ss:$8 sps:$4 sm:$0xff]  }
 0x335   : > { %4344 = vmatpush1.bf16.msra.mxu0 %v6526_v45  ;;  %4429 = vmatpush1.bf16.msra.mxu1 %v6535_v35 }
 0x336   : > { %4345 = vmatprep.subr.bf16.mxu0 %v6531_v28  ;;  %4430 = vmatprep.subr.bf16.mxu1 %v6540_v12 }
 0x337   : > { %4154 = vmatprep.mubr.bf16.mxu0 %v9793_v62 }
 0x338   : > { %5925 = vmatmul.mubr.msk.bf16.gmra.mxu1 %vm3458_vm3, %v8918_v38 }
 0x339   : > { %4346 = vmatpush1.bf16.msra.mxu0 %v6529_v50  ;;  %4431 = vmatpush1.bf16.msra.mxu1 %v6538_v53 }
 0x33a   : > { %4347 = vmatprep.subr.bf16.mxu0 %v6534_v21  ;;  %4432 = vmatprep.subr.bf16.mxu1 %v6543_v60 }
 0x33b   : > { %4450 = vmatprep.mubr.bf16.mxu1 %v9793_v62 }
 0x33c   : > { %5921 = vmatmul.mubr.msk.bf16.gmra.mxu0 %vm3458_vm3, %v8923_v20 }
 0x33d   : > { %4348 = vmatpush1.bf16.msra.mxu0 %v6532_v19  ;;  %4433 = vmatpush1.bf16.msra.mxu1 %v6541_v32 }
 0x33e   : > { %4349 = vmatprep.subr.bf16.mxu0 %v6537_v29  ;;  %4164 = vmatprep.mubr.bf16.mxu0 %v9793_v62 }
 0x340   : > { %5953 = vmatmul.mubr.msk.bf16.vlgmr.msra.gmra.mxu1 %vm3458_vm3, %v8812_v5 }
 0x341   : > { %4350 = vmatpush1.bf16.msra.mxu0 %v6535_v35  ;;  %4460 = vmatprep.mubr.bf16.mxu1 %v9793_v62 }
 0x342   : > { %4351 = vmatprep.subr.bf16.mxu0 %v6540_v12 }
 0x344   : > { %5922 = vmatmul.mubr.msk.bf16.gmra.mxu0 %vm3458_vm3, %v3954_v16 }
 0x345   : > { %4352 = vmatpush1.bf16.msra.mxu0 %v6538_v53  ;;  %4371 = vmatprep.mubr.bf16.mxu0 %v9793_v62 }
 0x346   : > { %4353 = vmatprep.subr.bf16.mxu0 %v6543_v60 }
 0x348   : > { %5954 = vmatmul.mubr.msk.bf16.gmra.mxu1 %vm3458_vm3, %v8861_v33 }
 0x349   : > { %4354 = vmatpush1.bf16.msra.mxu0 %v6541_v32  ;;  %4470 = vmatprep.mubr.bf16.mxu1 %v9793_v62 }
 0x34c   : > { %5950 = vmatmul.mubr.msk.bf16.vlgmr.msra.gmra.mxu0 %vm3458_vm3, %v8702_v24 }
 0x34d   : > { %4381 = vmatprep.mubr.bf16.mxu0 %v9793_v62 }
 0x350   : > { %5955 = vmatmul.mubr.msk.bf16.gmra.mxu1 %vm3458_vm3, %v8979_v26 }
 0x354   : > { %5951 = vmatmul.mubr.msk.bf16.gmra.mxu0 %vm3458_vm3, %v8727_v47 }
 0x355   : > { %4391 = vmatprep.mubr.bf16.mxu0 %v9793_v62 }
 0x35c   : > { %5952 = vmatmul.mubr.msk.bf16.gmra.mxu0 %vm3458_vm3, %v8918_v38 }
 0x36c   : > { %v3637_v5 = vpop.f32.mrf.mxu1 }
 0x36e   : > { %v3639_v33 = vpop.f32.mrf.mxu1 }
 0x370   : > { %v3641_v39 = vpop.f32.mrf.mxu1 }
 0x372   : > { %v3643_v18 = vpop.f32.mrf.mxu1 }
 0x37c   : > { %v3647_v43 = vpop.f32.mrf.mxu1 }
 0x37e   : > { %v3649_v51 = vpop.f32.mrf.mxu1 }
 0x380   : > { %v3651_v24 = vpop.f32.mrf.mxu1 }
 0x382   : > { %v3653_v48 = vpop.f32.mrf.mxu1 }
 0x38c   : > { %v3657_v4 = vpop.f32.mrf.mxu1 }
 0x38e   : > { %v3659_v1 = vpop.f32.mrf.mxu1 }
 0x390   : > { %v3661_v61 = vpop.f32.mrf.mxu1 }
 0x392   : > { %v3663_v47 = vpop.f32.mrf.mxu1 }
 0x39c   : > { %v3502_v14 = vpop.f32.mrf.mxu0  ;;  %v9067_v30 = vpop.f32.mrf.mxu1 }
 0x39d   : > { %v9063_v34 = vadd.f32 %v3637_v5, %v3502_v14 }
 0x39e   : > { %v3504_v6 = vpop.f32.mrf.mxu0  ;;  %v9073_v42 = vpop.f32.mrf.mxu1 }
 0x39f   : > { %v9065_v62 = vadd.f32 %v3639_v33, %v3504_v6 }
 0x3a0   : > { %v3506_v38 = vpop.f32.mrf.mxu0  ;;  %v3779_v46 = vpop.f32.mrf.mxu1 }
 0x3a1   : > { %v9069_v22 = vadd.f32 %v3641_v39, %v3506_v38 }
 0x3a2   : > { %v3508_v49 = vpop.f32.mrf.mxu0  ;;  %v3781_v44 = vpop.f32.mrf.mxu1 }
 0x3a3   : > { %v9071_v20 = vadd.f32 %v3643_v18, %v3508_v49 }
 0x3ac   : > { %v3512_v57 = vpop.f32.mrf.mxu0  ;;  %v3785_v10 = vpop.f32.mrf.mxu1 }
 0x3ad   : > { %v9075_v9 = vadd.f32 %v3647_v43, %v3512_v57 }
 0x3ae   : > { %v3514_v54 = vpop.f32.mrf.mxu0  ;;  %v3787_v52 = vpop.f32.mrf.mxu1 }
 0x3af   : > { %v9077_v27 = vadd.f32 %v3649_v51, %v3514_v54 }
 0x3b0   : > { %v3516_v8 = vpop.f32.mrf.mxu0  ;;  %v3789_v63 = vpop.f32.mrf.mxu1 }
 0x3b1   : > { %v9079_v41 = vadd.f32 %v3651_v24, %v3516_v8 }
 0x3b2   : > { %v3518_v31 = vpop.f32.mrf.mxu0  ;;  %v3791_v15 = vpop.f32.mrf.mxu1 }
 0x3b3   : > { %v9081_v0 = vadd.f32 %v3653_v48, %v3518_v31 }
 0x3bc   : > { %v3522_v58 = vpop.f32.mrf.mxu0  ;;  %v3795_v36 = vpop.f32.mrf.mxu1 }
 0x3bd   : > { %v9083_v7 = vadd.f32 %v3657_v4, %v3522_v58 }
 0x3be   : > { %v3524_v23 = vpop.f32.mrf.mxu0  ;;  %v3797_v11 = vpop.f32.mrf.mxu1 }
 0x3bf   : > { %v9085_v37 = vadd.f32 %v3659_v1, %v3524_v23 }
 0x3c0   : > { %v3526_v40 = vpop.f32.mrf.mxu0  ;;  %v3799_v25 = vpop.f32.mrf.mxu1 }
 0x3c1   : > { %v9087_v3 = vadd.f32 %v3661_v61, %v3526_v40 }
 0x3c2   : > { %v3528_v56 = vpop.f32.mrf.mxu0  ;;  %v3801_v2 = vpop.f32.mrf.mxu1 }
 0x3c3   : > { %v9089_v13 = vadd.f32 %v3663_v47, %v3528_v56 }
 0x3c4   : > { %v9091_v17 = vpop.f32.mrf.mxu0  ;;  %v9093_v26 = vpop.f32.mrf.mxu1 }
 0x3c5   : > { %9809 = vst [vmem:[#allocation6_spill] sm:$0xff] %v9089_v13 }
 0x3c6   : > { %v9095_v59 = vpop.f32.mrf.mxu0  ;;  %v9097_v55 = vpop.f32.mrf.mxu1 }
 0x3c8   : > { %v3716_v16 = vpop.f32.mrf.mxu0  ;;  %v9099_v45 = vpop.f32.mrf.mxu1 }
 0x3c9   : > { %v9101_v28 = vadd.f32 %v3779_v46, %v3716_v16 }
 0x3ca   : > { %v3718_v50 = vpop.f32.mrf.mxu0  ;;  %v9103_v21 = vpop.f32.mrf.mxu1 }
 0x3cb   : > { %v9105_v19 = vadd.f32 %v3781_v44, %v3718_v50 }
 0x3cc   : > { %v3722_v29 = vpop.f32.mrf.mxu0  ;;  %v9107_v35 = vpop.f32.mrf.mxu1 }
 0x3cd   : > { %v9109_v12 = vadd.f32 %v3785_v10, %v3722_v29 }
 0x3ce   : > { %v3724_v53 = vpop.f32.mrf.mxu0  ;;  %v9111_v60 = vpop.f32.mrf.mxu1 }
 0x3cf   : > { %v9113_v32 = vadd.f32 %v3787_v52, %v3724_v53 }
 0x3d0   : > { %v3726_v5 = vpop.f32.mrf.mxu0  ;;  %v4012_v33 = vpop.f32.mrf.mxu1 }
 0x3d1   : > { %v3790_v39 = vadd.f32 %v3789_v63, %v3726_v5 }
 0x3d2   : > { %v3728_v18 = vpop.f32.mrf.mxu0  ;;  %v4014_v24 = vpop.f32.mrf.mxu1 }
 0x3d3   : > { %v9115_v43 = vadd.f32 %v4012_v33, %v3790_v39  ;;  %v3792_v51 = vadd.f32 %v3791_v15, %v3728_v18 }
 0x3d4   : > { %v3732_v48 = vpop.f32.mrf.mxu0 }
 0x3d5   : > { %v9117_v4 = vadd.f32 %v4014_v24, %v3792_v51  ;;  %v3796_v1 = vadd.f32 %v3795_v36, %v3732_v48 }
 0x3d6   : > { %v3734_v61 = vpop.f32.mrf.mxu0 }
 0x3d7   : > { %v3798_v14 = vadd.f32 %v3797_v11, %v3734_v61 }
 0x3d8   : > { %v3736_v47 = vpop.f32.mrf.mxu0 }
 0x3d9   : > { %v3800_v6 = vadd.f32 %v3799_v25, %v3736_v47  ;;  %v3776_v47 = vadd.f32 %v9067_v30, %v9091_v17  ;;  %v3778_v30 = vadd.f32 %v9073_v42, %v9095_v59 }
 0x3da   : > { %v3738_v38 = vpop.f32.mrf.mxu0 }
 0x3db   : > { %v3802_v49 = vadd.f32 %v3801_v2, %v3738_v38  ;;  %v6545_v38 = vld [vmem:[%s9635_s5 + $0x58] sm:$0xff]  }
 0x3dc   : > { %v9119_v46 = vpop.f32.mrf.mxu0 }
 0x3de   : > { %v9121_v44 = vpop.f32.mrf.mxu0 }
 0x3e0   : > { %v9123_v57 = vpop.f32.mrf.mxu0  ;;  %v4018_v10 = vpop.f32.mrf.mxu1 }
 0x3e1   : > { %v9125_v54 = vadd.f32 %v4018_v10, %v3796_v1 }
 0x3e2   : > { %v9127_v8 = vpop.f32.mrf.mxu0  ;;  %v4020_v52 = vpop.f32.mrf.mxu1 }
 0x3e3   : > { %v9129_v31 = vadd.f32 %v4020_v52, %v3798_v14  ;;  %v9664_v52 = vmov 0.0  }
 0x3e4   : > { %v9131_v63 = vpop.f32.mrf.mxu0  ;;  %v4022_v15 = vpop.f32.mrf.mxu1  ;;  %6156 = vmatprep.subr.bf16.mxu1 %v9664_v52  ;;  %6140 = vmatprep.subr.bf16.mxu0 %v9664_v52 }
 0x3e5   : > { %v9133_v58 = vadd.f32 %v4022_v15, %v3800_v6  ;;  %v6544_v6 = vld [vmem:[%s9635_s5 + $0x28] sm:$0xff]   ;;  %6141 = vmatpush3.bf16.msra.mxu0 %v6545_v38 }
 0x3e6   : > { %v9135_v36 = vpop.f32.mrf.mxu0  ;;  %v4024_v23 = vpop.f32.mrf.mxu1  ;;  %6157 = vmatpush3.bf16.msra.mxu1 %v6544_v6  ;;  %6142 = vmatprep.subr.bf16.mxu0 %v9664_v52 }
 0x3e7   : > { %9810 = vst [vmem:[#allocation25_spill] sm:$0xff] %v9133_v58  ;;  %v9137_v11 = vadd.f32 %v4024_v23, %v3802_v49  ;;  %6158 = vmatprep.subr.bf16.mxu1 %v9664_v52  ;;  %v4027_v23 = vadd.f32 %v9093_v26, %v3776_v47 }
 0x3e8   : > { %v9139_v40 = vpop.f32.mrf.mxu0  ;;  %v4225_v25 = vpop.f32.mrf.mxu1 }
 0x3e9   : > { %9811 = vst [vmem:[#allocation10_spill] sm:$0xff] %v9137_v11  ;;  %v4254_v13 = vadd.f32 %v4225_v25, %v4027_v23  ;;  %v3940_v23 = vadd.f32 %v9119_v46, %v9063_v34  ;;  %v3942_v46 = vadd.f32 %v9123_v57, %v9069_v22  ;;  %v6553_v22 = vld [vmem:[%s9635_s5 + $0x38] sm:$0xff]  }
 0x3ea   : > { %v9141_v56 = vpop.f32.mrf.mxu0  ;;  %v4227_v2 = vpop.f32.mrf.mxu1 }
 0x3ec   : > { %v9143_v16 = vpop.f32.mrf.mxu0  ;;  %v9145_v50 = vpop.f32.mrf.mxu1 }
 0x3ee   : > { %v9147_v29 = vpop.f32.mrf.mxu0  ;;  %v9149_v53 = vpop.f32.mrf.mxu1 }
 0x3f0   : > { %v9151_v5 = vpop.f32.mrf.mxu0  ;;  %v9153_v33 = vpop.f32.mrf.mxu1 }
 0x3f2   : > { %v9155_v39 = vpop.f32.mrf.mxu0  ;;  %v9157_v18 = vpop.f32.mrf.mxu1 }
 0x3f3   : > { %9812 = vst [vmem:[#allocation26_spill] sm:$0xff] %v9155_v39  ;;  %v4028_v39 = vadd.f32 %v9097_v55, %v3778_v30  ;;  %v6547_v55 = vld [vmem:[%s9635_s5 + $0x50] sm:$0xff]   ;;  %v6549_v30 = vld [vmem:[%s9635_s5 + $0x48] sm:$0xff]  }
 0x3f4   : > { %v4146_v51 = vpop.f32.mrf.mxu0  ;;  %v9159_v24 = vpop.f32.mrf.mxu1  ;;  %6143 = vmatpush3.bf16.msra.mxu0 %v6547_v55  ;;  %v6551_v55 = vld [vmem:[%s9635_s5 + $0x40] sm:$0xff]  }
 0x3f5   : > { %v4255_v6 = vadd.f32 %v4227_v2, %v4028_v39  ;;  %v6548_v2 = vld [vmem:[%s9635_s5 + $0x18] sm:$0xff]  }
 0x3f6   : > { %v4148_v48 = vpop.f32.mrf.mxu0  ;;  %v9161_v1 = vpop.f32.mrf.mxu1 }
 0x3f8   : > { %v9163_v61 = vpop.f32.mrf.mxu0  ;;  %v9165_v14 = vpop.f32.mrf.mxu1 }
 0x3fa   : > { %v9175_v49 = vpop.f32.mrf.mxu0  ;;  %v9177_v10 = vpop.f32.mrf.mxu1 }
 0x3fc   : > { %v9183_v17 = vpop.f32.mrf.mxu0  ;;  %v9185_v15 = vpop.f32.mrf.mxu1 }
 0x3fd   : > { %9813 = vst [vmem:[#allocation41_spill] sm:$0xff] %v9185_v15  ;;  %v6546_v15 = vld [vmem:[%s9635_s5 + $0x20] sm:$0xff]  }
 0x3fe   : > { %v9190_v11 = vpop.f32.mrf.mxu0  ;;  %v9192_v58 = vpop.f32.mrf.mxu1  ;;  %6159 = vmatpush3.bf16.msra.mxu1 %v6546_v15 }
 0x400   : > { %v9195_v42 = vpop.f32.mrf.mxu0  ;;  %v4452_v59 = vpop.f32.mrf.mxu1 }
 0x401   : > { %v9197_v38 = vadd.f32 %v4452_v59, %v4254_v13  ;;  %v9815_v13 = vmov 0.0   ;;  %v6550_v59 = vld [vmem:[%s9635_s5 + $0x10] sm:$0xff]  }
 0x402   : > { %v9202_v52 = vpop.f32.mrf.mxu0  ;;  %v4454_v26 = vpop.f32.mrf.mxu1  ;;  %6160 = vmatprep.subr.bf16.mxu1 %v9815_v13  ;;  %6144 = vmatprep.subr.bf16.mxu0 %v9815_v13 }
 0x403   : > { %9814 = vst [vmem:[#allocation42_spill] sm:$0xff] %v9197_v38  ;;  %v4482_v47 = vadd.f32 %v4454_v26, %v4255_v6  ;;  %4559 = vrot.lane.b32.xlu0 %v9197_v38, %s6657_s14  ;;  %6161 = vmatpush3.bf16.msra.mxu1 %v6548_v2  ;;  %v3941_v26 = vadd.f32 %v9121_v44, %v9065_v62  ;;  %v6552_v62 = vld [vmem:[%s9635_s5 + $0x8] sm:$0xff]  }
 0x404   : > { %v9209_v25 = vpop.f32.mrf.mxu0  ;;  %6162 = vmatprep.subr.bf16.mxu1 %v9815_v13  ;;  %6145 = vmatpush3.bf16.msra.mxu0 %v6549_v30  ;;  %v4456_v2 = vpop.f32.mrf.mxu1 }
 0x405   : > { %4561 = vrot.lane.b32.xlu1 %v4482_v47, %s6657_s14  ;;  %6146 = vmatprep.subr.bf16.mxu0 %v9815_v13  ;;  %v4175_v47 = vadd.f32 %v4146_v51, %v3940_v23  ;;  %v4176_v30 = vadd.f32 %v4148_v48, %v3941_v26  ;;  %v3943_v51 = vadd.f32 %v9127_v8, %v9071_v20 }
 0x406   : > { %v9216_v39 = vpop.f32.mrf.mxu0  ;;  %v4177_v23 = vadd.f32 %v9163_v61, %v3942_v46  ;;  %v4458_v57 = vpop.f32.mrf.mxu1  ;;  %v4029_v26 = vadd.f32 %v9099_v45, %v9101_v28  ;;  %v6554_v61 = vld [vmem:[%s9635_s5] sm:$0xff]   ;;  %v6555_v28 = vld [vmem:[%s9635_s5 + $0x30] sm:$0xff]   ;;  %6168 = vmatprep.mubr.msk.bf16.mxu1 %vm6659_vm4, %v9815_v13  ;;  %6152 = vmatprep.mubr.msk.bf16.mxu0 %vm6659_vm4, %v9815_v13 }
 0x407   : > { %6163 = vmatpush3.bf16.msra.mxu1 %v6550_v59  ;;  %v4178_v20 = vadd.f32 %v9175_v49, %v3943_v51 }
 0x408   : > { %v9222_v15 = vpop.f32.mrf.mxu0  ;;  %6164 = vmatprep.subr.bf16.mxu1 %v9815_v13  ;;  %6147 = vmatpush3.bf16.msra.mxu0 %v6551_v55  ;;  %v4030_v55 = vadd.f32 %v9103_v21, %v9105_v19  ;;  %v4462_v49 = vpop.f32.mrf.mxu1 }
 0x409   : > { %6148 = vmatprep.subr.bf16.mxu0 %v9815_v13 }
 0x40a   : > { %v9230_v6 = vpop.f32.mrf.mxu0  ;;  %v4257_v21 = vadd.f32 %v9149_v53, %v4030_v55 }
 0x40b   : > { %6165 = vmatpush3.bf16.msra.mxu1 %v6552_v62 }
 0x40c   : > { %v4373_v34 = vpop.f32.mrf.mxu0  ;;  %6166 = vmatprep.subr.bf16.mxu1 %v9815_v13  ;;  %6149 = vmatpush3.bf16.msra.mxu0 %v6553_v22 }
 0x40d   : > { %v9241_v38 = vadd.f32 %v4373_v34, %v4175_v47  ;;  %6150 = vmatprep.subr.bf16.mxu0 %v9815_v13  ;;  %v4256_v34 = vadd.f32 %v9145_v50, %v4029_v26  ;;  %v4032_v50 = vadd.f32 %v9111_v60, %v9113_v32  ;;  %v3945_v60 = vadd.f32 %v9135_v36, %v9077_v27 }
 0x40e   : > { %v4375_v44 = vpop.f32.mrf.mxu0  ;;  %v3947_v27 = vadd.f32 %v9141_v56, %v9081_v0 }
 0x40f   : > { %v4403_v59 = vadd.f32 %v4375_v44, %v4176_v30  ;;  %4505 = vrot.lane.b32.xlu0 %v9241_v38, %s6657_s14  ;;  %6167 = vmatpush3.bf16.msra.mxu1 %v6554_v61  ;;  %v4031_v30 = vadd.f32 %v9107_v35, %v9109_v12  ;;  %v9278_v19 = vadd.f32 %v4456_v2, %v4256_v34  ;;  %v4464_v12 = vpop.f32.mrf.mxu1  ;;  %v9817_v34 = vld [vmem:[#allocation26_spill] sm:$0xff] }
 0x410   : > { %v4377_v48 = vpop.f32.mrf.mxu0  ;;  %6188 = vmatprep.subr.bf16.mxu1 %v9815_v13  ;;  %6151 = vmatpush3.bf16.msra.mxu0 %v6555_v28  ;;  %v4484_v35 = vadd.f32 %v4458_v57, %v4257_v21  ;;  %v3944_v2 = vadd.f32 %v9131_v63, %v9075_v9  ;;  %v4259_v44 = vadd.f32 %v9157_v18, %v4032_v50  ;;  %v9820_v21 = vld [vmem:[#allocation10_spill] sm:$0xff] }
 0x411   : > { %v9259_v8 = vadd.f32 %v4377_v48, %v4177_v23  ;;  %4507 = vrot.lane.b32.xlu1 %v4403_v59, %s6657_s14  ;;  %v4258_v62 = vadd.f32 %v9153_v33, %v4031_v30  ;;  %6172 = vmatprep.subr.bf16.mxu0 %v9815_v13  ;;  %v4466_v23 = vpop.f32.mrf.mxu1  ;;  %v3946_v9 = vadd.f32 %v9139_v40, %v9079_v41 }
 0x412   : > { %v4379_v47 = vpop.f32.mrf.mxu0  ;;  %v4179_v32 = vadd.f32 %v9183_v17, %v3944_v2  ;;  %v4486_v33 = vadd.f32 %v4464_v12, %v4259_v44  ;;  %v4180_v63 = vadd.f32 %v9190_v11, %v3945_v60  ;;  %v4182_v48 = vadd.f32 %v9202_v52, %v3947_v27 }
 0x413   : > { %v4405_v45 = vadd.f32 %v4379_v47, %v4178_v20  ;;  %4509 = vrot.lane.b32.xlu0 %v9259_v8, %s6657_s14  ;;  %v9294_v51 = vadd.f32 %v4462_v49, %v4258_v62  ;;  %v4181_v36 = vadd.f32 %v9195_v42, %v3946_v9  ;;  %v4468_v22 = vpop.f32.mrf.mxu1  ;;  %v4260_v11 = vadd.f32 %v9159_v24, %v9115_v43 }
 0x414   : > { %v4383_v46 = vpop.f32.mrf.mxu0  ;;  %v4261_v42 = vadd.f32 %v9161_v1, %v9117_v4  ;;  %v4262_v52 = vadd.f32 %v9165_v14, %v9125_v54  ;;  %v3948_v61 = vadd.f32 %v9143_v16, %v9083_v7  ;;  %v4263_v47 = vadd.f32 %v9177_v10, %v9129_v31  ;;  %v9816_v10 = vld [vmem:[#allocation6_spill] sm:$0xff] }
 0x415   : > { %4511 = vrot.lane.b32.xlu1 %v4405_v45, %s6657_s14  ;;  %v9305_v18 = vadd.f32 %v4383_v46, %v4179_v32  ;;  %v4472_v0 = vpop.f32.mrf.mxu1  ;;  %v9323_v26 = vadd.f32 %v4466_v23, %v4260_v11  ;;  %v3949_v1 = vadd.f32 %v9147_v29, %v9085_v37  ;;  %v3950_v7 = vadd.f32 %v9151_v5, %v9087_v3  ;;  %v9818_v5 = vld [vmem:[#allocation25_spill] sm:$0xff]  ;;  %v9821_v23 = vld [vmem:[#allocation42_spill] sm:$0xff] }
 0x416   : > { %v4385_v53 = vpop.f32.mrf.mxu0  ;;  %v4488_v20 = vadd.f32 %v4468_v22, %v4261_v42  ;;  %v9334_v4 = vadd.f32 %v4472_v0, %v4262_v52  ;;  %v4183_v54 = vadd.f32 %v9209_v25, %v3948_v61  ;;  %v3951_v45 = vadd.f32 %v9817_v34, %v9816_v10  ;;  %v6559_v10 = vld [vmem:[%s9635_s5 + $0x80] sm:$0xff]  }
 0x417   : > { %4563 = vrot.lane.b32.xlu0 %v9278_v19, %s6657_s14  ;;  %v4407_v17 = vadd.f32 %v4385_v53, %v4180_v63  ;;  %v4474_v43 = vpop.f32.mrf.mxu1  ;;  %v4184_v16 = vadd.f32 %v9216_v39, %v3949_v1  ;;  %v4185_v37 = vadd.f32 %v9222_v15, %v3950_v7  ;;  %v9819_v39 = vld [vmem:[#allocation41_spill] sm:$0xff]  ;;  %v4265_v50 = vadd.f32 %v9192_v58, %v9820_v21 }
 0x418   : > { %v4387_v59 = vpop.f32.mrf.mxu0  ;;  %v4490_v14 = vadd.f32 %v4474_v43, %v4263_v47  ;;  %v4186_v49 = vadd.f32 %v9230_v6, %v3951_v45  ;;  %v4264_v46 = vadd.f32 %v9819_v39, %v9818_v5 }
 0x419   : > { %4565 = vrot.lane.b32.xlu1 %v4484_v35, %s6657_s14  ;;  %v9314_v41 = vadd.f32 %v4387_v59, %v4181_v36  ;;  %v4476_v25 = vpop.f32.mrf.mxu1 }
 0x41a   : > { %v4389_v57 = vpop.f32.mrf.mxu0  ;;  %v9363_v62 = vadd.f32 %v4476_v25, %v4264_v46 }
 0x41b   : > { %4567 = vrot.lane.b32.xlu0 %v9294_v51, %s6657_s14  ;;  %v4409_v40 = vadd.f32 %v4389_v57, %v4182_v48  ;;  %v4478_v15 = vpop.f32.mrf.mxu1 }
 0x41c   : > { %v4393_v56 = vpop.f32.mrf.mxu0  ;;  %v4492_v6 = vadd.f32 %v4478_v15, %v4265_v50  ;;  %v6563_v15 = vld [vmem:[%s9635_s5 + $0x70] sm:$0xff]  }
 0x41d   : > { %4569 = vrot.lane.b32.xlu1 %v4486_v33, %s6657_s14  ;;  %v9345_v31 = vadd.f32 %v4393_v56, %v4183_v54 }
 0x41e   : > { %v4395_v24 = vpop.f32.mrf.mxu0 }
 0x41f   : > { %4513 = vrot.lane.b32.xlu0 %v9305_v18, %s6657_s14  ;;  %v4411_v29 = vadd.f32 %v4395_v24, %v4184_v16  ;;  %v6556_v24 = vld [vmem:[%s9635_s5 + $0xb8] sm:$0xff]  }
 0x420   : > { %v4397_v55 = vpop.f32.mrf.mxu0 }
 0x421   : > { %4515 = vrot.lane.b32.xlu1 %v4407_v17, %s6657_s14  ;;  %v9354_v3 = vadd.f32 %v4397_v55, %v4185_v37  ;;  %v9377_v17 = vld [vmem:[%s9634_s4] ss:$0 sm:$0xff] }
 0x422   : > { %v4399_v28 = vpop.f32.mrf.mxu0 }
 0x423   : > { %4517 = vrot.lane.b32.xlu0 %v9314_v41, %s6657_s14  ;;  %v4413_v30 = vadd.f32 %v4399_v28, %v4186_v49 }
 0x425   : > { %4519 = vrot.lane.b32.xlu1 %v4409_v40, %s6657_s14 }
 0x427   : > { %4571 = vrot.lane.b32.xlu0 %v9323_v26, %s6657_s14 }
 0x429   : > { %4573 = vrot.lane.b32.xlu1 %v4488_v20, %s6657_s14 }
 0x42b   : > { %4575 = vrot.lane.b32.xlu0 %v9334_v4, %s6657_s14 }
 0x42d   : > { %4577 = vrot.lane.b32.xlu1 %v4490_v14, %s6657_s14  ;;  %v6558_v14 = vld [vmem:[%s9635_s5 + $0xb0] sm:$0xff]  }
 0x42f   : > { %4521 = vrot.lane.b32.xlu0 %v9345_v31, %s6657_s14 }
 0x431   : > { %4523 = vrot.lane.b32.xlu1 %v4411_v29, %s6657_s14  ;;  %v6560_v29 = vld [vmem:[%s9635_s5 + $0xa8] sm:$0xff]  }
 0x433   : > { %4525 = vrot.lane.b32.xlu0 %v9354_v3, %s6657_s14 }
 0x435   : > { %4527 = vrot.lane.b32.xlu1 %v4413_v30, %s6657_s14 }
 0x437   : > { %4579 = vrot.lane.b32.xlu0 %v9363_v62, %s6657_s14 }
 0x439   : > { %4581 = vrot.lane.b32.xlu1 %v4492_v6, %s6657_s14  ;;  %v6564_v6 = vld [vmem:[%s9635_s5 + $0x98] sm:$0xff]  }
 0x475   : > { %v4560_v35 = vpop.permute.xlu0 %4559 }
 0x477   : > { %v4562_v12 = vpop.permute.xlu1 %4561 }
 0x478   : > { %v4583_v32 = vsel %vm3042_vm2, %v4560_v35, %v4562_v12  ;;  %v6565_v12 = vld [vmem:[%s9635_s5 + $0x68] sm:$0xff]  }
 0x479   : > { %v4595_v59 = vmax.f32 %v9821_v23, %v4583_v32  ;;  %v6568_v23 = vld [vmem:[%s9635_s5 + $0x118] sm:$0xff]  }
 0x481   : > { %v4506_v53 = vpop.permute.xlu0 %4505 }
 0x483   : > { %v4508_v2 = vpop.permute.xlu1 %4507 }
 0x484   : > { %v4529_v44 = vsel %vm3042_vm2, %v4506_v53, %v4508_v2 }
 0x485   : > { %v4510_v60 = vpop.permute.xlu0 %4509  ;;  %v4541_v58 = vmax.f32 %v9241_v38, %v4529_v44 }
 0x487   : > { %v4512_v33 = vpop.permute.xlu1 %4511  ;;  %v4601_v27 = vmax.f32 %v4541_v58, %v4595_v59  ;;  %v6567_v58 = vld [vmem:[%s9635_s5 + $0x60] sm:$0xff]  }
 0x488   : > { %v4530_v63 = vsel %vm3042_vm2, %v4510_v60, %v4512_v33  ;;  %v6566_v60 = vld [vmem:[%s9635_s5 + $0x90] sm:$0xff]  }
 0x489   : > { %v4564_v9 = vpop.permute.xlu0 %4563  ;;  %v4542_v57 = vmax.f32 %v9259_v8, %v4530_v63  ;;  %v4614_v11 = vadd.f32 %v9377_v17, %v4601_v27  ;;  %v6557_v8 = vld [vmem:[%s9635_s5 + $0x88] sm:$0xff]  }
 0x48a   : > { %v6569_v27 = vld [vmem:[%s9635_s5 + $0xe8] sm:$0xff]  }
 0x48b   : > { %v4566_v36 = vpop.permute.xlu1 %4565  ;;  %v4620_v52 = vmax.f32 %v4614_v11, 0.0  ;;  %v6571_v11 = vld [vmem:[%s9635_s5 + $0xe0] sm:$0xff]  }
 0x48c   : > { %v4584_v22 = vsel %vm3042_vm2, %v4564_v9, %v4566_v36 }
 0x48d   : > { %v4596_v48 = vmax.f32 %v9278_v19, %v4584_v22  ;;  %v4568_v38 = vpop.permute.xlu0 %4567 }
 0x48f   : > { %v4602_v40 = vmax.f32 %v4542_v57, %v4596_v48  ;;  %v4570_v0 = vpop.permute.xlu1 %4569  ;;  %v6570_v57 = vld [vmem:[%s9635_s5 + $0x110] sm:$0xff]  }
 0x490   : > { %v4585_v7 = vsel %vm3042_vm2, %v4568_v38, %v4570_v0 }
 0x491   : > { %v4615_v56 = vadd.f32 %v9377_v17, %v4602_v40  ;;  %v4514_v42 = vpop.permute.xlu0 %4513  ;;  %v4597_v25 = vmax.f32 %v9294_v51, %v4585_v7  ;;  %v6562_v51 = vld [vmem:[%s9635_s5 + $0xa0] sm:$0xff]   ;;  %v6581_v7 = vld [vmem:[%s9637_s7 + $0x30] sm:$0xff]  }
 0x493   : > { %v4621_v20 = vmax.f32 %v4615_v56, 0.0  ;;  %v4516_v43 = vpop.permute.xlu1 %4515 }
 0x494   : > { %v4531_v54 = vsel %vm3042_vm2, %v4514_v42, %v4516_v43 }
 0x495   : > { %v4626_v61 = vpack.c.bf16 %v4621_v20, %v4620_v52  ;;  %v4518_v47 = vpop.permute.xlu0 %4517  ;;  %v4543_v34 = vmax.f32 %v9305_v18, %v4531_v54  ;;  %v6561_v18 = vld [vmem:[%s9635_s5 + $0x78] sm:$0xff]  }
 0x496   : > { %v6573_v52 = vld [vmem:[%s9635_s5 + $0xd8] sm:$0xff]  }
 0x497   : > { %v4655_v19 = vrot.slane %v4626_v61, 4  ;;  %6169 = vmatmul.mubr.msk.bf16.vlgmr.msra.gmra.mxu1 %vm3458_vm3, %v4626_v61  ;;  %v4520_v1 = vpop.permute.xlu1 %4519  ;;  %v4603_v39 = vmax.f32 %v4543_v34, %v4597_v25  ;;  %v6584_v34 = vld [vmem:[%s9637_s7 + $0x18] sm:$0xff]   ;;  %v6588_v25 = vld [vmem:[%s9639_s9 + $0x28] ss:$0 sps:$4 sm:$0x33]  }
 0x498   : > { %6189 = vmatpush3.bf16.msra.mxu1 %v6556_v24  ;;  %6200 = vmatprep.mubr.msk.bf16.mxu1 %vm6659_vm4, %v9815_v13  ;;  %v4532_v16 = vsel %vm3042_vm2, %v4518_v47, %v4520_v1  ;;  %v6576_v24 = vld [vmem:[%s9635_s5 + $0xf8] sm:$0xff]   ;;  %v6577_v47 = vld [vmem:[%s9635_s5 + $0xc8] sm:$0xff]   ;;  %v6579_v1 = vld [vmem:[%s9635_s5 + $0xc0] sm:$0xff]  }
 0x499   : > { %6153 = vmatmul.mubr.msk.bf16.vlgmr.msra.gmra.mxu0 %vm3458_vm3, %v4655_v19  ;;  %v4572_v55 = vpop.permute.xlu0 %4571  ;;  %6190 = vmatprep.subr.bf16.mxu1 %v9815_v13  ;;  %v4544_v28 = vmax.f32 %v9314_v41, %v4532_v16  ;;  %v4616_v21 = vadd.f32 %v9377_v17, %v4603_v39  ;;  %v6582_v16 = vld [vmem:[%s9637_s7 + $0x28] sm:$0xff]  }
 0x49a   : > { %6173 = vmatpush3.bf16.msra.mxu0 %v6557_v8  ;;  %6184 = vmatprep.mubr.msk.bf16.mxu0 %vm6659_vm4, %v9815_v13 }
 0x49b   : > { %v4574_v45 = vpop.permute.xlu1 %4573  ;;  %6174 = vmatprep.subr.bf16.mxu0 %v9815_v13  ;;  %v4622_v53 = vmax.f32 %v4616_v21, 0.0 }
 0x49c   : > { %6191 = vmatpush3.bf16.msra.mxu1 %v6558_v14  ;;  %v4586_v37 = vsel %vm3042_vm2, %v4572_v55, %v4574_v45  ;;  %v6580_v14 = vld [vmem:[%s9637_s7 + $0x38] ss:$0 sps:$4 sm:$0xff]   ;;  %v6585_v45 = vld [vmem:[%s9637_s7 + $0x10] sm:$0xff]  }
 0x49d   : > { %v4598_v49 = vmax.f32 %v9323_v26, %v4586_v37  ;;  %v4576_v5 = vpop.permute.xlu0 %4575  ;;  %6192 = vmatprep.subr.bf16.mxu1 %v9815_v13  ;;  %v5273_v55 = vsel %vm5271_vm5, %v6580_v14, 0  ;;  %v6586_v37 = vld [vmem:[%s9637_s7 + $0x8] sm:$0xff]  }
 0x49e   : > { %6175 = vmatpush3.bf16.msra.mxu0 %v6559_v10  ;;  %v6583_v10 = vld [vmem:[%s9637_s7 + $0x20] sm:$0xff]  }
 0x49f   : > { %v4604_v46 = vmax.f32 %v4544_v28, %v4598_v49  ;;  %v4578_v30 = vpop.permute.xlu1 %4577  ;;  %6176 = vmatprep.subr.bf16.mxu0 %v9815_v13  ;;  %v5374_v28 = vsel %vm5372_vm6, %v6588_v25, 0  ;;  %v6589_v49 = vld [vmem:[%s9639_s9 + $0x20] sm:$0xff]  }
 0x4a0   : > { %6193 = vmatpush3.bf16.msra.mxu1 %v6560_v29  ;;  %v4587_v38 = vsel %vm3042_vm2, %v4576_v5, %v4578_v30  ;;  %v6587_v29 = vld [vmem:[%s9637_s7] sm:$0xff]   ;;  %v6590_v5 = vld [vmem:[%s9639_s9 + $0x18] sm:$0xff]  }
 0x4a1   : > { %v4617_v41 = vadd.f32 %v9377_v17, %v4604_v46  ;;  %v4522_v26 = vpop.permute.xlu0 %4521  ;;  %6194 = vmatprep.subr.bf16.mxu1 %v9815_v13  ;;  %v4599_v56 = vmax.f32 %v9334_v4, %v4587_v38  ;;  %v6575_v4 = vld [vmem:[%s9635_s5 + $0xd0] sm:$0xff]  }
 0x4a2   : > { %6177 = vmatpush3.bf16.msra.mxu0 %v6561_v18  ;;  %v6591_v18 = vld [vmem:[%s9639_s9 + $0x10] sm:$0xff]  }
 0x4a3   : > { %v4524_v50 = vpop.permute.xlu1 %4523  ;;  %6178 = vmatprep.subr.bf16.mxu0 %v9815_v13  ;;  %v4623_v35 = vmax.f32 %v4617_v41, 0.0 }
 0x4a4   : > { %6195 = vmatpush3.bf16.msra.mxu1 %v6562_v51  ;;  %v4533_v36 = vsel %vm3042_vm2, %v4522_v26, %v4524_v50 }
 0x4a5   : > { %6196 = vmatprep.subr.bf16.mxu1 %v9815_v13  ;;  %v4526_v2 = vpop.permute.xlu0 %4525  ;;  %v4627_v32 = vpack.c.bf16 %v4623_v35, %v4622_v53  ;;  %v4545_v40 = vmax.f32 %v9345_v31, %v4533_v36 }
 0x4a6   : > { %6179 = vmatpush3.bf16.msra.mxu0 %v6563_v15 }
 0x4a7   : > { %v4528_v44 = vpop.permute.xlu1 %4527  ;;  %6180 = vmatprep.subr.bf16.mxu0 %v9815_v13  ;;  %v4921_v59 = vrot.slane %v4627_v32, 4  ;;  %v4605_v31 = vmax.f32 %v4545_v40, %v4599_v56  ;;  %v6592_v56 = vld [vmem:[%s9639_s9 + $0x8] sm:$0xff]  }
 0x4a8   : > { %6197 = vmatpush3.bf16.msra.mxu1 %v6564_v6  ;;  %v4534_v22 = vsel %vm3042_vm2, %v4526_v2, %v4528_v44 }
 0x4a9   : > { %6198 = vmatprep.subr.bf16.mxu1 %v9815_v13  ;;  %v4580_v9 = vpop.permute.xlu0 %4579  ;;  %v4546_v0 = vmax.f32 %v9354_v3, %v4534_v22  ;;  %v6574_v3 = vld [vmem:[%s9635_s5 + $0x100] sm:$0xff]   ;;  %v4618_v43 = vadd.f32 %v9377_v17, %v4605_v31 }
 0x4aa   : > { %6181 = vmatpush3.bf16.msra.mxu0 %v6565_v12 }
 0x4ab   : > { %v4582_v33 = vpop.permute.xlu1 %4581  ;;  %6182 = vmatprep.subr.bf16.mxu0 %v9815_v13  ;;  %v4624_v8 = vmax.f32 %v4618_v43, 0.0 }
 0x4ac   : > { %6199 = vmatpush3.bf16.msra.mxu1 %v6566_v60  ;;  %v4588_v63 = vsel %vm3042_vm2, %v4580_v9, %v4582_v33 }
 0x4ad   : > { %6220 = vmatprep.subr.bf16.mxu1 %v9815_v13  ;;  %v4600_v48 = vmax.f32 %v9363_v62, %v4588_v63  ;;  %v6572_v62 = vld [vmem:[%s9635_s5 + $0x108] sm:$0xff]  }
 0x4ae   : > { %6183 = vmatpush3.bf16.msra.mxu0 %v6567_v58 }
 0x4af   : > { %6201 = vmatmul.mubr.msk.bf16.vlgmr.msra.gmra.mxu1 %vm3458_vm3, %v4921_v59  ;;  %6204 = vmatprep.subr.bf16.mxu0 %v9815_v13  ;;  %v4606_v42 = vmax.f32 %v4546_v0, %v4600_v48 }
 0x4b0   : > { %6221 = vmatpush3.bf16.msra.mxu1 %v6568_v23  ;;  %6232 = vmatprep.mubr.msk.bf16.mxu1 %vm6659_vm4, %v9815_v13 }
 0x4b1   : > { %6185 = vmatmul.mubr.msk.bf16.vlgmr.msra.gmra.mxu0 %vm3458_vm3, %v4627_v32  ;;  %6222 = vmatprep.subr.bf16.mxu1 %v9815_v13  ;;  %v4619_v20 = vadd.f32 %v9377_v17, %v4606_v42  ;;  %v6578_v17 = vld [vmem:[%s9635_s5 + $0xf0] sm:$0xff]   ;;  %v6593_v42 = vld [vmem:[%s9639_s9] sm:$0xff]  }
 0x4b2   : > { %6205 = vmatpush3.bf16.msra.mxu0 %v6569_v27  ;;  %6216 = vmatprep.mubr.msk.bf16.mxu0 %vm6659_vm4, %v9815_v13  ;;  %v6059_v27 = vld [vmem:[%s9636_s6] ss:$0 sm:$0xff] }
 0x4b3   : > { %6206 = vmatprep.subr.bf16.mxu0 %v9815_v13  ;;  %v4625_v61 = vmax.f32 %v4619_v20, 0.0 }
 0x4b4   : > { %6223 = vmatpush3.bf16.msra.mxu1 %v6570_v57 }
 0x4b5   : > { %6224 = vmatprep.subr.bf16.mxu1 %v9815_v13  ;;  %v4628_v19 = vpack.c.bf16 %v4625_v61, %v4624_v8 }
 0x4b6   : > { %6207 = vmatpush3.bf16.msra.mxu0 %v6571_v11 }
 0x4b7   : > { %6208 = vmatprep.subr.bf16.mxu0 %v9815_v13  ;;  %v5109_v54 = vrot.slane %v4628_v19, 4 }
 0x4b8   : > { %6225 = vmatpush3.bf16.msra.mxu1 %v6572_v62 }
 0x4b9   : > { %6226 = vmatprep.subr.bf16.mxu1 %v9815_v13 }
 0x4ba   : > { %6209 = vmatpush3.bf16.msra.mxu0 %v6573_v52  ;;  %v6060_v52 = vld [vmem:[%s9638_s8] ss:$0 sm:$0xff] }
 0x4bb   : > { %6210 = vmatprep.subr.bf16.mxu0 %v9815_v13 }
 0x4bc   : > { %6227 = vmatpush3.bf16.msra.mxu1 %v6574_v3 }
 0x4bd   : > { %6228 = vmatprep.subr.bf16.mxu1 %v9815_v13 }
 0x4be   : > { %6211 = vmatpush3.bf16.msra.mxu0 %v6575_v4 }
 0x4bf   : > { %6212 = vmatprep.subr.bf16.mxu0 %v9815_v13 }
 0x4c0   : > { %6229 = vmatpush3.bf16.msra.mxu1 %v6576_v24 }
 0x4c1   : > { %6230 = vmatprep.subr.bf16.mxu1 %v9815_v13 }
 0x4c2   : > { %6213 = vmatpush3.bf16.msra.mxu0 %v6577_v47 }
 0x4c3   : > { %6214 = vmatprep.subr.bf16.mxu0 %v9815_v13 }
 0x4c4   : > { %6231 = vmatpush3.bf16.msra.mxu1 %v6578_v17 }
 0x4c5   : > { %6256 = vmatprep.subr.bf16.mxu1 %v9815_v13 }
 0x4c6   : > { %6215 = vmatpush3.bf16.msra.mxu0 %v6579_v1 }
 0x4c7   : > { %6233 = vmatmul.mubr.msk.bf16.vlgmr.msra.gmra.mxu1 %vm3458_vm3, %v5109_v54  ;;  %6236 = vmatprep.subr.bf16.mxu0 %v9815_v13 }
 0x4c8   : > { %6268 = vmatprep.mubr.msk.bf16.mxu1 %vm6659_vm4, %v9815_v13  ;;  %6257 = vmatpush3.bf16.msra.mxu1 %v5374_v28 }
 0x4c9   : > { %6217 = vmatmul.mubr.msk.bf16.vlgmr.msra.gmra.mxu0 %vm3458_vm3, %v4628_v19  ;;  %6258 = vmatprep.subr.bf16.mxu1 %v9815_v13 }
 0x4ca   : > { %6252 = vmatprep.mubr.msk.bf16.mxu0 %vm6659_vm4, %v9815_v13  ;;  %6237 = vmatpush3.bf16.msra.mxu0 %v5273_v55 }
 0x4cb   : > { %6238 = vmatprep.subr.bf16.mxu0 %v9815_v13 }
 0x4cc   : > { %6259 = vmatpush3.bf16.msra.mxu1 %v6589_v49 }
 0x4cd   : > { %6260 = vmatprep.subr.bf16.mxu1 %v9815_v13 }
 0x4ce   : > { %6239 = vmatpush3.bf16.msra.mxu0 %v6581_v7 }
 0x4cf   : > { %6240 = vmatprep.subr.bf16.mxu0 %v9815_v13 }
 0x4d0   : > { %6261 = vmatpush3.bf16.msra.mxu1 %v6590_v5 }
 0x4d1   : > { %6262 = vmatprep.subr.bf16.mxu1 %v9815_v13 }
 0x4d2   : > { %6241 = vmatpush3.bf16.msra.mxu0 %v6582_v16 }
 0x4d3   : > { %6242 = vmatprep.subr.bf16.mxu0 %v9815_v13 }
 0x4d4   : > { %6263 = vmatpush3.bf16.msra.mxu1 %v6591_v18 }
 0x4d5   : > { %6264 = vmatprep.subr.bf16.mxu1 %v9815_v13 }
 0x4d6   : > { %6243 = vmatpush3.bf16.msra.mxu0 %v6583_v10 }
 0x4d7   : > { %6244 = vmatprep.subr.bf16.mxu0 %v9815_v13 }
 0x4d8   : > { %6265 = vmatpush3.bf16.msra.mxu1 %v6592_v56 }
 0x4d9   : > { %6266 = vmatprep.subr.bf16.mxu1 %v9815_v13 }
 0x4da   : > { %6245 = vmatpush3.bf16.msra.mxu0 %v6584_v34 }
 0x4db   : > { %6246 = vmatprep.subr.bf16.mxu0 %v9815_v13 }
 0x4dc   : > { %6267 = vmatpush3.bf16.msra.mxu1 %v6593_v42 }
 0x4de   : > { %6247 = vmatpush3.bf16.msra.mxu0 %v6585_v45 }
 0x4df   : > { %6248 = vmatprep.subr.bf16.mxu0 %v9815_v13 }
 0x4e2   : > { %6249 = vmatpush3.bf16.msra.mxu0 %v6586_v37 }
 0x4e3   : > { %6250 = vmatprep.subr.bf16.mxu0 %v9815_v13  ;;  %v6070_v13 = vld [vmem:[%s9640_s10] ss:$0 sm:$0xff] }
 0x4e6   : > { %6251 = vmatpush3.bf16.msra.mxu0 %v6587_v29 }
 0x557   : > { %v4808_v39 = vpop.f32.mrf.mxu1 }
 0x559   : > { %v4729_v46 = vpop.f32.mrf.mxu0  ;;  %v6170_v30 = vpop.f32.mrf.mxu1 }
 0x55a   : > { %v4809_v32 = vadd.f32 %v4808_v39, %v4729_v46 }
 0x55b   : > { %v6154_v51 = vpop.f32.mrf.mxu0  ;;  %v4811_v41 = vpop.f32.mrf.mxu1 }
 0x55d   : > { %v4732_v26 = vpop.f32.mrf.mxu0  ;;  %v6171_v15 = vpop.f32.mrf.mxu1 }
 0x55f   : > { %v6155_v21 = vpop.f32.mrf.mxu0 }
 0x56f   : > { %v4995_v50 = vpop.f32.mrf.mxu1 }
 0x571   : > { %v4900_v6 = vpop.f32.mrf.mxu0  ;;  %v6202_v35 = vpop.f32.mrf.mxu1 }
 0x572   : > { %v4906_v58 = vadd.f32 %v4900_v6, %v4809_v32 }
 0x573   : > { %v6186_v12 = vpop.f32.mrf.mxu0  ;;  %v4998_v53 = vpop.f32.mrf.mxu1 }
 0x574   : > { %v5001_v23 = vadd.f32 %v4995_v50, %v4906_v58 }
 0x575   : > { %v4903_v2 = vpop.f32.mrf.mxu0  ;;  %v6203_v44 = vpop.f32.mrf.mxu1 }
 0x577   : > { %v6187_v60 = vpop.f32.mrf.mxu0 }
 0x587   : > { %v5183_v33 = vpop.f32.mrf.mxu1 }
 0x589   : > { %v5088_v59 = vpop.f32.mrf.mxu0  ;;  %v6234_v9 = vpop.f32.mrf.mxu1 }
 0x58a   : > { %v5094_v63 = vadd.f32 %v5088_v59, %v5001_v23 }
 0x58b   : > { %v6218_v36 = vpop.f32.mrf.mxu0  ;;  %v5186_v22 = vpop.f32.mrf.mxu1 }
 0x58c   : > { %v5189_v57 = vadd.f32 %v5183_v33, %v5094_v63 }
 0x58d   : > { %v5091_v48 = vpop.f32.mrf.mxu0  ;;  %v6235_v38 = vpop.f32.mrf.mxu1 }
 0x58e   : > { %v5197_v11 = vadd.f32 %v6059_v27, %v5189_v57 }
 0x58f   : > { %v6219_v40 = vpop.f32.mrf.mxu0 }
 0x590   : > { %v5198_v0 = vmax.f32 %v5197_v11, 0.0 }
 0x592   : > { %v5199_v62 = vpack.c.bf16 %v5198_v0, %v5198_v0 }
 0x594   : > { %6253 = vmatmul.mubr.msk.bf16.vlgmr.msra.gmra.mxu0 %vm5267_vm7, %v5199_v62 }
 0x654   : > { %v5309_v31 = vpop.f32.mrf.mxu0 }
 0x655   : > { %v5310_v3 = vadd.f32 %v6060_v52, %v5309_v31 }
 0x656   : > { %v6254_v20 = vpop.f32.mrf.mxu0 }
 0x657   : > { %v5315_v4 = vmax.f32 %v5310_v3, 0.0 }
 0x658   : > { %v5312_v43 = vpop.f32.mrf.mxu0 }
 0x659   : > { %v5316_v24 = vpack.c.bf16 %v5315_v4, %v5315_v4 }
 0x65a   : > { %v6255_v61 = vpop.f32.mrf.mxu0 }
 0x65b   : > { %6269 = vmatmul.mubr.msk.bf16.vlgmr.msra.gmra.mxu1 %vm5368_vm8, %v5316_v24 }
 0x71b   : > { %v5410_v47 = vpop.f32.mrf.mxu1 }
 0x71c   : > { %v5411_v8 = vadd.f32 %v6070_v13, %v5410_v47 }
 0x71d   : > { %v6270_v17 = vpop.f32.mrf.mxu1 }
 0x71e   : > { %5417 = vst.msk [vmem:[%s567_s12] sm:$0xff] %vm5416_vm9, %v5411_v8 }
 0x71f   : > { %v5413_v19 = vpop.f32.mrf.mxu1 }
 0x720   : > { %6607 = shalt.err (!%p6604_p5)
}
 0x721   : > { %s6608_s25 = scalar_lea.hbm %s9587_s21, 128  ;;  %s6612_s14 = scalar_lea.hbm %s9641_s11, 256 }
 0x722   : > { %p6609_p7 = scmp.ne.s32.totalorder %s9587_s21, %s6608_s25  ;;  %p6613_p12 = scmp.lt.s32.totalorder %s9587_s21, %s9641_s11 }
 0x723   : > { %p6614_p13 = scmp.lt.s32.totalorder %s6612_s14, %s6608_s25 }
 0x724   : > { %p6610_p10 = pnand %p6609_p7, %p6759_p6 }
 0x725   : > { %p6615_p0 = por %p6614_p13, %p6613_p12 }
 0x726   : > { %p6611_p11 = pneg %p6610_p10 }
 0x728   : > { %p6616_p1 = pnand %p6615_p0, %p6611_p11 }
 0x72a   : > { %6619 = shalt.err (!%p6616_p1)
}
 0x72b   : > { %6274 = dma.vmem_to_hbm [thread:$0]  (%p6759_p6), %s9589_s29, 128, %s9587_s21, %s5419_s13   ;;  %v6271_v1 = vpop.f32.mrf.mxu1 }
 0x72c PF: > { %s5444_s22 = sand.u32 1, %s6642_s17   ;;  %p6277_p2 = pnand %p5499_p9, %p6763_p8 }
 0x72d   : > { %s5445_s0 = scalar_lea.sflag [#allocation4], %s5444_s22 }
 0x72e   : > { %p6278_p3 = pneg %p6277_p2 }
 0x730   : > { %6637 = dma.done.wait (%p6278_p3), %s5445_s0, 128  }
 0x731   : > { %6639 = vsyncadd (%p6278_p3), %s5445_s0, 4294967168  ;;  %p21_p4 = scmp.ge.s32.totalorder %s6744_s23, 4   ;;  %s9823_s17 = smov %s6646_s18 }
 0x732   : > { %s9824_s18 = smov %s6650_s19  ;;  %s9825_s19 = smov %s6757_s26 }
 0x733   : > { %s9826_s20 = smov %s6744_s23  ;;  %23 = sbr.rel (!%p21_p4) target bundleno = 5 (0x5), region = 165 }
 0x738   :  { %5450 = vsyncpa [#allocation4], 1 }
 0x739   :  { %5452 = vsyncpa [#allocation4 + $0x1], 1 }

</bundles_post_ra>
